<compile_context>
chip_gen: v7x
topology: tpu7x:2x2x1
jax: 0.10.0
libtpu: 0.0.40
codegen_flags: <defaults>
</compile_context>

<pallas_src>
import functools

import jax
import jax.numpy as jnp
from jax.experimental import pallas as pl
from jax.experimental.pallas import tpu as pltpu


_VMEM_LIMIT = 48 * 1024 * 1024   # generation-safe (<= v7x 64 MiB per TC)
_SLOPE = 0.2                     # LeakyReLU negative slope
_EPS = 0.8                       # BatchNorm2d(out, 0.8) -> eps = 0.8


# ----------------------------------------------------------------------------
# In-kernel conv row: sum over (di, dj) taps of shifted reads @ per-tap weight
# ----------------------------------------------------------------------------
def _row_conv(x_ref, w_ref, i, kh, kw, wo):
    """x_ref: (Hp, Wp, Cin); w_ref: (kh*kw, Cin, Cout).  Returns (wo, Cout) f32."""
    acc = None
    for di in range(kh):
        for dj in range(kw):
            lhs = x_ref[i + di, pl.ds(dj, wo), :]          # (wo, Cin) bf16
            rhs = w_ref[di * kw + dj]                      # (Cin, Cout) bf16
            d = jnp.dot(lhs, rhs, preferred_element_type=jnp.float32)
            acc = d if acc is None else acc + d
    return acc


# ----------------------------------------------------------------------------
# Kernel 1: conv + bias (+ optional LeakyReLU)            [layers 1 and 4]
# ----------------------------------------------------------------------------
def _conv_bias_act_kernel(x_ref, w_ref, b_ref, o_ref, *, kh, kw, ho, wo,
                          activate, slope):
    b = b_ref[...]                                         # (1, Cout) f32

    def body(i, carry):
        acc = _row_conv(x_ref, w_ref, i, kh, kw, wo) + b
        if activate:
            acc = jnp.where(acc >= 0.0, acc, slope * acc)
        o_ref[i, :, :] = acc.astype(o_ref.dtype)
        return carry

    jax.lax.fori_loop(0, ho, body, 0)


def _conv_bias_act(x, w_taps, bias, *, kh, kw, activate, out_dtype):
    """x: (N, Hp, Wp, Cin) bf16 (already conv-padded); w_taps: (kh*kw, Cin, Cout)
    bf16; bias: (Cout,) f32.  Returns (N, Hp-kh+1, Wp-kw+1, Cout)."""
    N, Hp, Wp, Cin = x.shape
    Cout = w_taps.shape[-1]
    Ho, Wo = Hp - kh + 1, Wp - kw + 1
    b = bias.reshape(1, Cout).astype(jnp.float32)
    kern = functools.partial(_conv_bias_act_kernel, kh=kh, kw=kw, ho=Ho, wo=Wo,
                             activate=activate, slope=_SLOPE)
    return pl.pallas_call(
        kern,
        out_shape=jax.ShapeDtypeStruct((N, Ho, Wo, Cout), out_dtype),
        grid=(N,),
        in_specs=[
            pl.BlockSpec((pl.Squeezed(), Hp, Wp, Cin), lambda n: (n, 0, 0, 0)),
            pl.BlockSpec((kh * kw, Cin, Cout), lambda n: (0, 0, 0)),
            pl.BlockSpec((1, Cout), lambda n: (0, 0)),
        ],
        out_specs=pl.BlockSpec((pl.Squeezed(), Ho, Wo, Cout),
                               lambda n: (n, 0, 0, 0)),
        compiler_params=pltpu.CompilerParams(
            dimension_semantics=("parallel",),
            vmem_limit_bytes=_VMEM_LIMIT),
    )(x, w_taps, b)


# ----------------------------------------------------------------------------
# Kernel 2: conv (no bias) + per-batch partial sum / sumsq    [BN layers 2, 3]
# ----------------------------------------------------------------------------
def _conv_stats_kernel(x_ref, w_ref, o_ref, sum_ref, sq_ref, *, kh, kw, ho, wo):
    cout = sum_ref.shape[-1]

    def body(i, carry):
        s, sq = carry
        acc = _row_conv(x_ref, w_ref, i, kh, kw, wo)       # (wo, Cout) f32
        o_ref[i, :, :] = acc.astype(o_ref.dtype)           # bf16 store
        s = s + jnp.sum(acc, axis=0, keepdims=True)
        sq = sq + jnp.sum(acc * acc, axis=0, keepdims=True)
        return s, sq

    init = (jnp.zeros((1, cout), jnp.float32),
            jnp.zeros((1, cout), jnp.float32))
    s, sq = jax.lax.fori_loop(0, ho, body, init)
    sum_ref[...] = s
    sq_ref[...] = sq


def _conv_stats(x, w_taps, *, kh, kw):
    """Returns (conv bf16 (N,Ho,Wo,Cout), per-batch sum (N,1,Cout) f32,
    per-batch sumsq (N,1,Cout) f32)."""
    N, Hp, Wp, Cin = x.shape
    Cout = w_taps.shape[-1]
    Ho, Wo = Hp - kh + 1, Wp - kw + 1
    kern = functools.partial(_conv_stats_kernel, kh=kh, kw=kw, ho=Ho, wo=Wo)
    return pl.pallas_call(
        kern,
        out_shape=(
            jax.ShapeDtypeStruct((N, Ho, Wo, Cout), jnp.bfloat16),
            jax.ShapeDtypeStruct((N, 1, Cout), jnp.float32),
            jax.ShapeDtypeStruct((N, 1, Cout), jnp.float32),
        ),
        grid=(N,),
        in_specs=[
            pl.BlockSpec((pl.Squeezed(), Hp, Wp, Cin), lambda n: (n, 0, 0, 0)),
            pl.BlockSpec((kh * kw, Cin, Cout), lambda n: (0, 0, 0)),
        ],
        out_specs=(
            pl.BlockSpec((pl.Squeezed(), Ho, Wo, Cout), lambda n: (n, 0, 0, 0)),
            pl.BlockSpec((pl.Squeezed(), 1, Cout), lambda n: (n, 0, 0)),
            pl.BlockSpec((pl.Squeezed(), 1, Cout), lambda n: (n, 0, 0)),
        ),
        compiler_params=pltpu.CompilerParams(
            dimension_semantics=("parallel",),
            vmem_limit_bytes=_VMEM_LIMIT),
    )(x, w_taps)


# ----------------------------------------------------------------------------
# Layout plumbing (plain JAX, fused by XLA): pad + space-to-depth, weight taps,
# and the BN affine + LeakyReLU epilogue (fused into the next pad/s2d).
# ----------------------------------------------------------------------------
def _pad_s2d(x):
    """k=4/s=2/p=1 conv input -> bf16 space-to-depth tensor (N, Hs, Ws, 4C)."""
    N, H, W, C = x.shape
    assert H % 2 == 0 and W % 2 == 0
    xp = jnp.pad(x, ((0, 0), (1, 1), (1, 1), (0, 0)))
    s = xp.reshape(N, (H + 2) // 2, 2, (W + 2) // 2, 2, C)
    s = jnp.transpose(s, (0, 1, 3, 2, 4, 5))
    return s.reshape(N, (H + 2) // 2, (W + 2) // 2, 4 * C).astype(jnp.bfloat16)


def _w_taps_s2d(w2d, cin):
    """(16*cin, cout) weight with rows (ki,kj,c) -> (4, 4*cin, cout) s2d taps
    (tap index di*2+dj, rows ordered (a,b,c) matching _pad_s2d channels)."""
    cout = w2d.shape[1]
    w = w2d.reshape(2, 2, 2, 2, cin, cout)           # (di, a, dj, b, c, cout)
    w = jnp.transpose(w, (0, 2, 1, 3, 4, 5))         # (di, dj, a, b, c, cout)
    return w.reshape(4, 4 * cin, cout).astype(jnp.bfloat16)


def _w_taps_full(w2d, cin, k):
    """(k*k*cin, cout) weight with rows (ki,kj,c) -> (k*k, cin, cout) taps."""
    cout = w2d.shape[1]
    return w2d.reshape(k * k, cin, cout).astype(jnp.bfloat16)


def _bn_act(conv_bf16, psum, psq):
    """Training-mode BatchNorm (gamma=1, beta=0, eps=0.8) + LeakyReLU, in JAX
    so XLA fuses it with the next layer's pad + space-to-depth."""
    N, Ho, Wo, Cout = conv_bf16.shape
    M = N * Ho * Wo
    s = jnp.sum(psum, axis=(0, 1))                   # (Cout,) f32
    sq = jnp.sum(psq, axis=(0, 1))
    mean = s / M
    var = sq / M - mean * mean                       # biased batch variance
    inv = jax.lax.rsqrt(var + _EPS)
    y = (conv_bf16.astype(jnp.float32) - mean) * inv
    y = jnp.where(y >= 0.0, y, _SLOPE * y)
    return y.astype(jnp.bfloat16)


# ----------------------------------------------------------------------------
# Parameters (deterministic init, PyTorch conv default init shapes/bounds)
# ----------------------------------------------------------------------------
def init_params(key, in_channels=1):
    # weights stored in im2col layout: rows ordered (kh, kw, cin), shape
    # (kh*kw*cin, cout); biases (cout,).
    defs = [(in_channels, 64), (64, 128), (128, 256), (256, 1)]
    params = []
    for cin, cout in defs:
        key, kw_, kb_ = jax.random.split(key, 3)
        fan_in = cin * 4 * 4
        bound = 1.0 / jnp.sqrt(fan_in)
        w = jax.random.uniform(kw_, (4 * 4 * cin, cout), jnp.float32,
                               -bound, bound)
        b = jax.random.uniform(kb_, (cout,), jnp.float32, -bound, bound)
        params.append((w, b))
    return params


# ----------------------------------------------------------------------------
# Forward pass
# ----------------------------------------------------------------------------
def discriminator_forward(img_nchw, params):
    """img_nchw: (N, Cin, H, W) -> (N, 1, H/8 - 2, W/8 - 2)."""
    x = jnp.transpose(img_nchw, (0, 2, 3, 1)).astype(jnp.float32)   # NHWC
    cin = x.shape[-1]

    # Block 1: conv(cin->64, k4 s2 p1) + bias + LeakyReLU (no BN).
    # Lane-dense store: pad Cout 64 -> 128; real channels sliced back before
    # block 2 (slice fuses into the next pad/s2d).
    w, b = params[0]
    w_p = jnp.pad(w, ((0, 0), (0, 64)))
    b_p = jnp.pad(b, (0, 64))
    s1 = _pad_s2d(x)                                                # (N,Hs,Ws,4cin)
    y1 = _conv_bias_act(s1, _w_taps_s2d(w_p, cin), b_p, kh=2, kw=2,
                        activate=True, out_dtype=jnp.bfloat16)[..., :64]

    # Block 2: conv(64->128, bias dropped) + BN(train stats) + LeakyReLU.
    w, _ = params[1]
    s2 = _pad_s2d(y1)                                               # (N,Hs,Ws,256)
    c2, ps2, pq2 = _conv_stats(s2, _w_taps_s2d(w, 64), kh=2, kw=2)
    y2 = _bn_act(c2, ps2, pq2)

    # Block 3: conv(128->256, bias dropped) + BN(train stats) + LeakyReLU.
    w, _ = params[2]
    s3 = _pad_s2d(y2)                                               # (N,Hs,Ws,512)
    c3, ps3, pq3 = _conv_stats(s3, _w_taps_s2d(w, 128), kh=2, kw=2)
    y3 = _bn_act(c3, ps3, pq3)

    # ZeroPad2d((left=1, right=0, top=1, bottom=0)) + Conv2d(256, 1, k=4).
    # Cout padded 1 -> 128 for lane-dense stores; real column sliced out.
    w, b = params[3]
    w_p = jnp.pad(w, ((0, 0), (0, 127)))
    b_p = jnp.pad(b, (0, 127))
    x4 = jnp.pad(y3, ((0, 0), (1, 0), (1, 0), (0, 0)))
    y4 = _conv_bias_act(x4, _w_taps_full(w_p, 256, k=4), b_p, kh=4, kw=4,
                        activate=False, out_dtype=jnp.float32)[..., :1]

    return jnp.transpose(y4, (0, 3, 1, 2))                          # back to NCHW


# ----------------------------------------------------------------------------
if __name__ == "__main__":
    key = jax.random.PRNGKey(0)
    k_img, k_par = jax.random.split(key)

    # Small but valid: 32x32 input -> 16 -> 8 -> 4 -> pad 5 -> conv4 -> 2x2
    img = jax.random.normal(k_img, (2, 1, 32, 32), jnp.float32)
    params = init_params(k_par, in_channels=1)

    fwd = jax.jit(discriminator_forward)
    out = jax.block_until_ready(fwd(img, params))

    assert out.shape == (2, 1, 2, 2), out.shape
    assert bool(jnp.all(jnp.isfinite(out)))
    print("KERNEL_OK")
</pallas_src>

<mosaic_0001>
module attributes {stable_mosaic.version = 11 : i64} {
  func.func @_conv_bias_act_kernel(%arg0: i32, %arg1: memref<1x17x17x4xbf16, #tpu.memory_space<vmem>>, %arg2: memref<4x4x128xbf16, #tpu.memory_space<vmem>>, %arg3: memref<1x128xf32, #tpu.memory_space<vmem>>, %arg4: memref<1x16x16x128xbf16, #tpu.memory_space<vmem>>) attributes {dimension_semantics = [#tpu.dimension_semantics<parallel>], iteration_bounds = array<i64: 2>, scalar_prefetch = 0 : i64, scratch_operands = 0 : i64, tpu.core_type = #tpu.core_type<tc>, window_params = [{transform_indices = @transform_0, window_bounds = array<i64: 1, 17, 17, 4>}, {pipeline_mode = #tpu.pipeline_mode<synchronous>, transform_indices = @transform_1, window_bounds = array<i64: 4, 4, 128>}, {pipeline_mode = #tpu.pipeline_mode<synchronous>, transform_indices = @transform_2, window_bounds = array<i64: 1, 128>}, {transform_indices = @transform_3, window_bounds = array<i64: 1, 16, 16, 128>}]} {
    %c0 = arith.constant 0 : index
    %c0_0 = arith.constant 0 : index
    %0 = vector.load %arg3[%c0, %c0_0] : memref<1x128xf32, #tpu.memory_space<vmem>>, vector<1x128xf32>
    %c0_i32 = arith.constant 0 : i32
    %c16_i32 = arith.constant 16 : i32
    %1 = arith.addi %c0_i32, %c16_i32 : i32
    %c1_i32 = arith.constant 1 : i32
    scf.for %arg5 = %c0_i32 to %1 step %c1_i32  : i32 {
      %c0_i32_2 = arith.constant 0 : i32
      %2 = arith.addi %arg5, %c0_i32_2 : i32
      %c0_3 = arith.constant 0 : index
      %3 = arith.index_cast %2 : i32 to index
      %c0_4 = arith.constant 0 : index
      %c0_5 = arith.constant 0 : index
      %4 = vector.load %arg1[%c0_3, %3, %c0_4, %c0_5] : memref<1x17x17x4xbf16, #tpu.memory_space<vmem>>, vector<1x1x16x4xbf16>
      %5 = vector.shape_cast %4 : vector<1x1x16x4xbf16> to vector<16x4xbf16>
      %c0_6 = arith.constant 0 : index
      %c0_7 = arith.constant 0 : index
      %c0_8 = arith.constant 0 : index
      %6 = vector.load %arg2[%c0_6, %c0_7, %c0_8] : memref<4x4x128xbf16, #tpu.memory_space<vmem>>, vector<1x4x128xbf16>
      %7 = vector.shape_cast %6 : vector<1x4x128xbf16> to vector<4x128xbf16>
      %cst = arith.constant dense<0.000000e+00> : vector<16x128xf32>
      %8 = tpu.matmul %5, %7, %cst {dimension_numbers = #tpu.dot_dimension_numbers<[1], [0], [0], [1], [0, 0, 1, 1], [], []>} : vector<16x4xbf16>, vector<4x128xbf16>, vector<16x128xf32> -> vector<16x128xf32>
      %c0_i32_9 = arith.constant 0 : i32
      %9 = arith.addi %arg5, %c0_i32_9 : i32
      %c0_10 = arith.constant 0 : index
      %10 = arith.index_cast %9 : i32 to index
      %c1 = arith.constant 1 : index
      %c0_11 = arith.constant 0 : index
      %11 = vector.load %arg1[%c0_10, %10, %c1, %c0_11] : memref<1x17x17x4xbf16, #tpu.memory_space<vmem>>, vector<1x1x16x4xbf16>
      %12 = vector.shape_cast %11 : vector<1x1x16x4xbf16> to vector<16x4xbf16>
      %c1_12 = arith.constant 1 : index
      %c0_13 = arith.constant 0 : index
      %c0_14 = arith.constant 0 : index
      %13 = vector.load %arg2[%c1_12, %c0_13, %c0_14] : memref<4x4x128xbf16, #tpu.memory_space<vmem>>, vector<1x4x128xbf16>
      %14 = vector.shape_cast %13 : vector<1x4x128xbf16> to vector<4x128xbf16>
      %cst_15 = arith.constant dense<0.000000e+00> : vector<16x128xf32>
      %15 = tpu.matmul %12, %14, %cst_15 {dimension_numbers = #tpu.dot_dimension_numbers<[1], [0], [0], [1], [0, 0, 1, 1], [], []>} : vector<16x4xbf16>, vector<4x128xbf16>, vector<16x128xf32> -> vector<16x128xf32>
      %16 = arith.addf %8, %15 : vector<16x128xf32>
      %c1_i32_16 = arith.constant 1 : i32
      %17 = arith.addi %arg5, %c1_i32_16 : i32
      %c0_17 = arith.constant 0 : index
      %18 = arith.index_cast %17 : i32 to index
      %c0_18 = arith.constant 0 : index
      %c0_19 = arith.constant 0 : index
      %19 = vector.load %arg1[%c0_17, %18, %c0_18, %c0_19] : memref<1x17x17x4xbf16, #tpu.memory_space<vmem>>, vector<1x1x16x4xbf16>
      %20 = vector.shape_cast %19 : vector<1x1x16x4xbf16> to vector<16x4xbf16>
      %c2 = arith.constant 2 : index
      %c0_20 = arith.constant 0 : index
      %c0_21 = arith.constant 0 : index
      %21 = vector.load %arg2[%c2, %c0_20, %c0_21] : memref<4x4x128xbf16, #tpu.memory_space<vmem>>, vector<1x4x128xbf16>
      %22 = vector.shape_cast %21 : vector<1x4x128xbf16> to vector<4x128xbf16>
      %cst_22 = arith.constant dense<0.000000e+00> : vector<16x128xf32>
      %23 = tpu.matmul %20, %22, %cst_22 {dimension_numbers = #tpu.dot_dimension_numbers<[1], [0], [0], [1], [0, 0, 1, 1], [], []>} : vector<16x4xbf16>, vector<4x128xbf16>, vector<16x128xf32> -> vector<16x128xf32>
      %24 = arith.addf %16, %23 : vector<16x128xf32>
      %c1_i32_23 = arith.constant 1 : i32
      %25 = arith.addi %arg5, %c1_i32_23 : i32
      %c0_24 = arith.constant 0 : index
      %26 = arith.index_cast %25 : i32 to index
      %c1_25 = arith.constant 1 : index
      %c0_26 = arith.constant 0 : index
      %27 = vector.load %arg1[%c0_24, %26, %c1_25, %c0_26] : memref<1x17x17x4xbf16, #tpu.memory_space<vmem>>, vector<1x1x16x4xbf16>
      %28 = vector.shape_cast %27 : vector<1x1x16x4xbf16> to vector<16x4xbf16>
      %c3 = arith.constant 3 : index
      %c0_27 = arith.constant 0 : index
      %c0_28 = arith.constant 0 : index
      %29 = vector.load %arg2[%c3, %c0_27, %c0_28] : memref<4x4x128xbf16, #tpu.memory_space<vmem>>, vector<1x4x128xbf16>
      %30 = vector.shape_cast %29 : vector<1x4x128xbf16> to vector<4x128xbf16>
      %cst_29 = arith.constant dense<0.000000e+00> : vector<16x128xf32>
      %31 = tpu.matmul %28, %30, %cst_29 {dimension_numbers = #tpu.dot_dimension_numbers<[1], [0], [0], [1], [0, 0, 1, 1], [], []>} : vector<16x4xbf16>, vector<4x128xbf16>, vector<16x128xf32> -> vector<16x128xf32>
      %32 = arith.addf %24, %31 : vector<16x128xf32>
      %33 = vector.broadcast %0 : vector<1x128xf32> to vector<16x128xf32>
      %34 = arith.addf %32, %33 : vector<16x128xf32>
      %cst_30 = arith.constant 0.000000e+00 : f32
      %35 = vector.broadcast %cst_30 : f32 to vector<16x128xf32>
      %36 = arith.cmpf oge, %34, %35 : vector<16x128xf32>
      %cst_31 = arith.constant 2.000000e-01 : f32
      %37 = vector.broadcast %cst_31 : f32 to vector<16x128xf32>
      %38 = arith.mulf %37, %34 : vector<16x128xf32>
      %39 = arith.select %36, %34, %38 : vector<16x128xi1>, vector<16x128xf32>
      %40 = arith.truncf %39 : vector<16x128xf32> to vector<16x128xbf16>
      %c0_32 = arith.constant 0 : index
      %41 = arith.index_cast %arg5 : i32 to index
      %c0_33 = arith.constant 0 : index
      %c0_34 = arith.constant 0 : index
      %42 = vector.load %arg4[%c0_32, %41, %c0_33, %c0_34] : memref<1x16x16x128xbf16, #tpu.memory_space<vmem>>, vector<1x1x16x128xbf16>
      %43 = vector.shape_cast %42 : vector<1x1x16x128xbf16> to vector<16x128xbf16>
      %44 = vector.shape_cast %40 : vector<16x128xbf16> to vector<1x1x16x128xbf16>
      tpu.vector_store %arg4[%c0_32, %41, %c0_33, %c0_34], %44 {strides = array<i32>} : memref<1x16x16x128xbf16, #tpu.memory_space<vmem>>, vector<1x1x16x128xbf16>,
    }
    %c16_i32_1 = arith.constant 16 : i32
    return
  }
  func.func @transform_0(%arg0: i32) -> (i32, i32, i32, i32) {
    %c0_i32 = arith.constant 0 : i32
    %c0_i32_0 = arith.constant 0 : i32
    %c0_i32_1 = arith.constant 0 : i32
    %c0_i32_2 = arith.constant 0 : i32
    return %arg0, %c0_i32, %c0_i32_0, %c0_i32_1 : i32, i32, i32, i32
  }
  func.func @transform_1(%arg0: i32) -> (i32, i32, i32) {
    %c0_i32 = arith.constant 0 : i32
    %c0_i32_0 = arith.constant 0 : i32
    %c0_i32_1 = arith.constant 0 : i32
    %c0_i32_2 = arith.constant 0 : i32
    return %c0_i32, %c0_i32_0, %c0_i32_1 : i32, i32, i32
  }
  func.func @transform_2(%arg0: i32) -> (i32, i32) {
    %c0_i32 = arith.constant 0 : i32
    %c0_i32_0 = arith.constant 0 : i32
    %c0_i32_1 = arith.constant 0 : i32
    return %c0_i32, %c0_i32_0 : i32, i32
  }
  func.func @transform_3(%arg0: i32) -> (i32, i32, i32, i32) {
    %c0_i32 = arith.constant 0 : i32
    %c0_i32_0 = arith.constant 0 : i32
    %c0_i32_1 = arith.constant 0 : i32
    %c0_i32_2 = arith.constant 0 : i32
    return %arg0, %c0_i32, %c0_i32_0, %c0_i32_1 : i32, i32, i32, i32
  }
}

module attributes {stable_mosaic.version = 11 : i64} {
  func.func @_conv_stats_kernel(%arg0: i32, %arg1: memref<1x9x9x256xbf16, #tpu.memory_space<vmem>>, %arg2: memref<4x256x128xbf16, #tpu.memory_space<vmem>>, %arg3: memref<1x8x8x128xbf16, #tpu.memory_space<vmem>>, %arg4: memref<1x1x128xf32, #tpu.memory_space<vmem>>, %arg5: memref<1x1x128xf32, #tpu.memory_space<vmem>>) attributes {dimension_semantics = [#tpu.dimension_semantics<parallel>], iteration_bounds = array<i64: 2>, scalar_prefetch = 0 : i64, scratch_operands = 0 : i64, tpu.core_type = #tpu.core_type<tc>, window_params = [{transform_indices = @transform_0, window_bounds = array<i64: 1, 9, 9, 256>}, {pipeline_mode = #tpu.pipeline_mode<synchronous>, transform_indices = @transform_1, window_bounds = array<i64: 4, 256, 128>}, {transform_indices = @transform_2, window_bounds = array<i64: 1, 8, 8, 128>}, {transform_indices = @transform_3, window_bounds = array<i64: 1, 1, 128>}, {transform_indices = @transform_4, window_bounds = array<i64: 1, 1, 128>}]} {
    %cst = arith.constant 0.000000e+00 : f32
    %0 = vector.broadcast %cst : f32 to vector<1x128xf32>
    %cst_0 = arith.constant 0.000000e+00 : f32
    %1 = vector.broadcast %cst_0 : f32 to vector<1x128xf32>
    %c0_i32 = arith.constant 0 : i32
    %c8_i32 = arith.constant 8 : i32
    %2 = arith.addi %c0_i32, %c8_i32 : i32
    %c1_i32 = arith.constant 1 : i32
    %3:2 = scf.for %arg6 = %c0_i32 to %2 step %c1_i32 iter_args(%arg7 = %0, %arg8 = %1) -> (vector<1x128xf32>, vector<1x128xf32>)  : i32 {
      %c0_i32_7 = arith.constant 0 : i32
      %10 = arith.addi %arg6, %c0_i32_7 : i32
      %c0_8 = arith.constant 0 : index
      %11 = arith.index_cast %10 : i32 to index
      %c0_9 = arith.constant 0 : index
      %c0_10 = arith.constant 0 : index
      %12 = vector.load %arg1[%c0_8, %11, %c0_9, %c0_10] : memref<1x9x9x256xbf16, #tpu.memory_space<vmem>>, vector<1x1x8x256xbf16>
      %13 = vector.shape_cast %12 : vector<1x1x8x256xbf16> to vector<8x256xbf16>
      %c0_11 = arith.constant 0 : index
      %c0_12 = arith.constant 0 : index
      %c0_13 = arith.constant 0 : index
      %14 = vector.load %arg2[%c0_11, %c0_12, %c0_13] : memref<4x256x128xbf16, #tpu.memory_space<vmem>>, vector<1x256x128xbf16>
      %15 = vector.shape_cast %14 : vector<1x256x128xbf16> to vector<256x128xbf16>
      %cst_14 = arith.constant dense<0.000000e+00> : vector<8x128xf32>
      %16 = tpu.matmul %13, %15, %cst_14 {dimension_numbers = #tpu.dot_dimension_numbers<[1], [0], [0], [1], [0, 0, 1, 1], [], []>} : vector<8x256xbf16>, vector<256x128xbf16>, vector<8x128xf32> -> vector<8x128xf32>
      %c0_i32_15 = arith.constant 0 : i32
      %17 = arith.addi %arg6, %c0_i32_15 : i32
      %c0_16 = arith.constant 0 : index
      %18 = arith.index_cast %17 : i32 to index
      %c1 = arith.constant 1 : index
      %c0_17 = arith.constant 0 : index
      %19 = vector.load %arg1[%c0_16, %18, %c1, %c0_17] : memref<1x9x9x256xbf16, #tpu.memory_space<vmem>>, vector<1x1x8x256xbf16>
      %20 = vector.shape_cast %19 : vector<1x1x8x256xbf16> to vector<8x256xbf16>
      %c1_18 = arith.constant 1 : index
      %c0_19 = arith.constant 0 : index
      %c0_20 = arith.constant 0 : index
      %21 = vector.load %arg2[%c1_18, %c0_19, %c0_20] : memref<4x256x128xbf16, #tpu.memory_space<vmem>>, vector<1x256x128xbf16>
      %22 = vector.shape_cast %21 : vector<1x256x128xbf16> to vector<256x128xbf16>
      %cst_21 = arith.constant dense<0.000000e+00> : vector<8x128xf32>
      %23 = tpu.matmul %20, %22, %cst_21 {dimension_numbers = #tpu.dot_dimension_numbers<[1], [0], [0], [1], [0, 0, 1, 1], [], []>} : vector<8x256xbf16>, vector<256x128xbf16>, vector<8x128xf32> -> vector<8x128xf32>
      %24 = arith.addf %16, %23 : vector<8x128xf32>
      %c1_i32_22 = arith.constant 1 : i32
      %25 = arith.addi %arg6, %c1_i32_22 : i32
      %c0_23 = arith.constant 0 : index
      %26 = arith.index_cast %25 : i32 to index
      %c0_24 = arith.constant 0 : index
      %c0_25 = arith.constant 0 : index
      %27 = vector.load %arg1[%c0_23, %26, %c0_24, %c0_25] : memref<1x9x9x256xbf16, #tpu.memory_space<vmem>>, vector<1x1x8x256xbf16>
      %28 = vector.shape_cast %27 : vector<1x1x8x256xbf16> to vector<8x256xbf16>
      %c2 = arith.constant 2 : index
      %c0_26 = arith.constant 0 : index
      %c0_27 = arith.constant 0 : index
      %29 = vector.load %arg2[%c2, %c0_26, %c0_27] : memref<4x256x128xbf16, #tpu.memory_space<vmem>>, vector<1x256x128xbf16>
      %30 = vector.shape_cast %29 : vector<1x256x128xbf16> to vector<256x128xbf16>
      %cst_28 = arith.constant dense<0.000000e+00> : vector<8x128xf32>
      %31 = tpu.matmul %28, %30, %cst_28 {dimension_numbers = #tpu.dot_dimension_numbers<[1], [0], [0], [1], [0, 0, 1, 1], [], []>} : vector<8x256xbf16>, vector<256x128xbf16>, vector<8x128xf32> -> vector<8x128xf32>
      %32 = arith.addf %24, %31 : vector<8x128xf32>
      %c1_i32_29 = arith.constant 1 : i32
      %33 = arith.addi %arg6, %c1_i32_29 : i32
      %c0_30 = arith.constant 0 : index
      %34 = arith.index_cast %33 : i32 to index
      %c1_31 = arith.constant 1 : index
      %c0_32 = arith.constant 0 : index
      %35 = vector.load %arg1[%c0_30, %34, %c1_31, %c0_32] : memref<1x9x9x256xbf16, #tpu.memory_space<vmem>>, vector<1x1x8x256xbf16>
      %36 = vector.shape_cast %35 : vector<1x1x8x256xbf16> to vector<8x256xbf16>
      %c3 = arith.constant 3 : index
      %c0_33 = arith.constant 0 : index
      %c0_34 = arith.constant 0 : index
      %37 = vector.load %arg2[%c3, %c0_33, %c0_34] : memref<4x256x128xbf16, #tpu.memory_space<vmem>>, vector<1x256x128xbf16>
      %38 = vector.shape_cast %37 : vector<1x256x128xbf16> to vector<256x128xbf16>
      %cst_35 = arith.constant dense<0.000000e+00> : vector<8x128xf32>
      %39 = tpu.matmul %36, %38, %cst_35 {dimension_numbers = #tpu.dot_dimension_numbers<[1], [0], [0], [1], [0, 0, 1, 1], [], []>} : vector<8x256xbf16>, vector<256x128xbf16>, vector<8x128xf32> -> vector<8x128xf32>
      %40 = arith.addf %32, %39 : vector<8x128xf32>
      %41 = arith.truncf %40 : vector<8x128xf32> to vector<8x128xbf16>
      %c0_36 = arith.constant 0 : index
      %42 = arith.index_cast %arg6 : i32 to index
      %c0_37 = arith.constant 0 : index
      %c0_38 = arith.constant 0 : index
      %43 = vector.load %arg3[%c0_36, %42, %c0_37, %c0_38] : memref<1x8x8x128xbf16, #tpu.memory_space<vmem>>, vector<1x1x8x128xbf16>
      %44 = vector.shape_cast %43 : vector<1x1x8x128xbf16> to vector<8x128xbf16>
      %45 = vector.shape_cast %41 : vector<8x128xbf16> to vector<1x1x8x128xbf16>
      tpu.vector_store %arg3[%c0_36, %42, %c0_37, %c0_38], %45 {strides = array<i32>} : memref<1x8x8x128xbf16, #tpu.memory_space<vmem>>, vector<1x1x8x128xbf16>,
      %cst_39 = arith.constant dense<0.000000e+00> : vector<128xf32>
      %46 = vector.multi_reduction <add>, %40, %cst_39 [0] : vector<8x128xf32> to vector<128xf32>
      %47 = vector.shape_cast %46 : vector<128xf32> to vector<1x128xf32>
      %48 = arith.addf %arg7, %47 : vector<1x128xf32>
      %49 = arith.mulf %40, %40 : vector<8x128xf32>
      %cst_40 = arith.constant dense<0.000000e+00> : vector<128xf32>
      %50 = vector.multi_reduction <add>, %49, %cst_40 [0] : vector<8x128xf32> to vector<128xf32>
      %51 = vector.shape_cast %50 : vector<128xf32> to vector<1x128xf32>
      %52 = arith.addf %arg8, %51 : vector<1x128xf32>
      scf.yield %48, %52 : vector<1x128xf32>, vector<1x128xf32>
    }
    %c8_i32_1 = arith.constant 8 : i32
    %c0 = arith.constant 0 : index
    %c0_2 = arith.constant 0 : index
    %c0_3 = arith.constant 0 : index
    %4 = vector.load %arg4[%c0, %c0_2, %c0_3] : memref<1x1x128xf32, #tpu.memory_space<vmem>>, vector<1x1x128xf32>
    %5 = vector.shape_cast %4 : vector<1x1x128xf32> to vector<1x128xf32>
    %6 = vector.shape_cast %3#0 : vector<1x128xf32> to vector<1x1x128xf32>
    tpu.vector_store %arg4[%c0, %c0_2, %c0_3], %6 {strides = array<i32>} : memref<1x1x128xf32, #tpu.memory_space<vmem>>, vector<1x1x128xf32>,
    %c0_4 = arith.constant 0 : index
    %c0_5 = arith.constant 0 : index
    %c0_6 = arith.constant 0 : index
    %7 = vector.load %arg5[%c0_4, %c0_5, %c0_6] : memref<1x1x128xf32, #tpu.memory_space<vmem>>, vector<1x1x128xf32>
    %8 = vector.shape_cast %7 : vector<1x1x128xf32> to vector<1x128xf32>
    %9 = vector.shape_cast %3#1 : vector<1x128xf32> to vector<1x1x128xf32>
    tpu.vector_store %arg5[%c0_4, %c0_5, %c0_6], %9 {strides = array<i32>} : memref<1x1x128xf32, #tpu.memory_space<vmem>>, vector<1x1x128xf32>,
    return
  }
  func.func @transform_0(%arg0: i32) -> (i32, i32, i32, i32) {
    %c0_i32 = arith.constant 0 : i32
    %c0_i32_0 = arith.constant 0 : i32
    %c0_i32_1 = arith.constant 0 : i32
    %c0_i32_2 = arith.constant 0 : i32
    return %arg0, %c0_i32, %c0_i32_0, %c0_i32_1 : i32, i32, i32, i32
  }
  func.func @transform_1(%arg0: i32) -> (i32, i32, i32) {
    %c0_i32 = arith.constant 0 : i32
    %c0_i32_0 = arith.constant 0 : i32
    %c0_i32_1 = arith.constant 0 : i32
    %c0_i32_2 = arith.constant 0 : i32
    return %c0_i32, %c0_i32_0, %c0_i32_1 : i32, i32, i32
  }
  func.func @transform_2(%arg0: i32) -> (i32, i32, i32, i32) {
    %c0_i32 = arith.constant 0 : i32
    %c0_i32_0 = arith.constant 0 : i32
    %c0_i32_1 = arith.constant 0 : i32
    %c0_i32_2 = arith.constant 0 : i32
    return %arg0, %c0_i32, %c0_i32_0, %c0_i32_1 : i32, i32, i32, i32
  }
  func.func @transform_3(%arg0: i32) -> (i32, i32, i32) {
    %c0_i32 = arith.constant 0 : i32
    %c0_i32_0 = arith.constant 0 : i32
    %c0_i32_1 = arith.constant 0 : i32
    return %arg0, %c0_i32, %c0_i32_0 : i32, i32, i32
  }
  func.func @transform_4(%arg0: i32) -> (i32, i32, i32) {
    %c0_i32 = arith.constant 0 : i32
    %c0_i32_0 = arith.constant 0 : i32
    %c0_i32_1 = arith.constant 0 : i32
    return %arg0, %c0_i32, %c0_i32_0 : i32, i32, i32
  }
}

module attributes {stable_mosaic.version = 11 : i64} {
  func.func @_conv_stats_kernel(%arg0: i32, %arg1: memref<1x5x5x512xbf16, #tpu.memory_space<vmem>>, %arg2: memref<4x512x256xbf16, #tpu.memory_space<vmem>>, %arg3: memref<1x4x4x256xbf16, #tpu.memory_space<vmem>>, %arg4: memref<1x1x256xf32, #tpu.memory_space<vmem>>, %arg5: memref<1x1x256xf32, #tpu.memory_space<vmem>>) attributes {dimension_semantics = [#tpu.dimension_semantics<parallel>], iteration_bounds = array<i64: 2>, scalar_prefetch = 0 : i64, scratch_operands = 0 : i64, tpu.core_type = #tpu.core_type<tc>, window_params = [{transform_indices = @transform_0, window_bounds = array<i64: 1, 5, 5, 512>}, {pipeline_mode = #tpu.pipeline_mode<synchronous>, transform_indices = @transform_1, window_bounds = array<i64: 4, 512, 256>}, {transform_indices = @transform_2, window_bounds = array<i64: 1, 4, 4, 256>}, {transform_indices = @transform_3, window_bounds = array<i64: 1, 1, 256>}, {transform_indices = @transform_4, window_bounds = array<i64: 1, 1, 256>}]} {
    %cst = arith.constant 0.000000e+00 : f32
    %0 = vector.broadcast %cst : f32 to vector<1x256xf32>
    %cst_0 = arith.constant 0.000000e+00 : f32
    %1 = vector.broadcast %cst_0 : f32 to vector<1x256xf32>
    %c0_i32 = arith.constant 0 : i32
    %c4_i32 = arith.constant 4 : i32
    %2 = arith.addi %c0_i32, %c4_i32 : i32
    %c1_i32 = arith.constant 1 : i32
    %3:2 = scf.for %arg6 = %c0_i32 to %2 step %c1_i32 iter_args(%arg7 = %0, %arg8 = %1) -> (vector<1x256xf32>, vector<1x256xf32>)  : i32 {
      %c0_i32_7 = arith.constant 0 : i32
      %10 = arith.addi %arg6, %c0_i32_7 : i32
      %c0_8 = arith.constant 0 : index
      %11 = arith.index_cast %10 : i32 to index
      %c0_9 = arith.constant 0 : index
      %c0_10 = arith.constant 0 : index
      %12 = vector.load %arg1[%c0_8, %11, %c0_9, %c0_10] : memref<1x5x5x512xbf16, #tpu.memory_space<vmem>>, vector<1x1x4x512xbf16>
      %13 = vector.shape_cast %12 : vector<1x1x4x512xbf16> to vector<4x512xbf16>
      %c0_11 = arith.constant 0 : index
      %c0_12 = arith.constant 0 : index
      %c0_13 = arith.constant 0 : index
      %14 = vector.load %arg2[%c0_11, %c0_12, %c0_13] : memref<4x512x256xbf16, #tpu.memory_space<vmem>>, vector<1x512x256xbf16>
      %15 = vector.shape_cast %14 : vector<1x512x256xbf16> to vector<512x256xbf16>
      %cst_14 = arith.constant dense<0.000000e+00> : vector<4x256xf32>
      %16 = tpu.matmul %13, %15, %cst_14 {dimension_numbers = #tpu.dot_dimension_numbers<[1], [0], [0], [1], [0, 0, 1, 1], [], []>} : vector<4x512xbf16>, vector<512x256xbf16>, vector<4x256xf32> -> vector<4x256xf32>
      %c0_i32_15 = arith.constant 0 : i32
      %17 = arith.addi %arg6, %c0_i32_15 : i32
      %c0_16 = arith.constant 0 : index
      %18 = arith.index_cast %17 : i32 to index
      %c1 = arith.constant 1 : index
      %c0_17 = arith.constant 0 : index
      %19 = vector.load %arg1[%c0_16, %18, %c1, %c0_17] : memref<1x5x5x512xbf16, #tpu.memory_space<vmem>>, vector<1x1x4x512xbf16>
      %20 = vector.shape_cast %19 : vector<1x1x4x512xbf16> to vector<4x512xbf16>
      %c1_18 = arith.constant 1 : index
      %c0_19 = arith.constant 0 : index
      %c0_20 = arith.constant 0 : index
      %21 = vector.load %arg2[%c1_18, %c0_19, %c0_20] : memref<4x512x256xbf16, #tpu.memory_space<vmem>>, vector<1x512x256xbf16>
      %22 = vector.shape_cast %21 : vector<1x512x256xbf16> to vector<512x256xbf16>
      %cst_21 = arith.constant dense<0.000000e+00> : vector<4x256xf32>
      %23 = tpu.matmul %20, %22, %cst_21 {dimension_numbers = #tpu.dot_dimension_numbers<[1], [0], [0], [1], [0, 0, 1, 1], [], []>} : vector<4x512xbf16>, vector<512x256xbf16>, vector<4x256xf32> -> vector<4x256xf32>
      %24 = arith.addf %16, %23 : vector<4x256xf32>
      %c1_i32_22 = arith.constant 1 : i32
      %25 = arith.addi %arg6, %c1_i32_22 : i32
      %c0_23 = arith.constant 0 : index
      %26 = arith.index_cast %25 : i32 to index
      %c0_24 = arith.constant 0 : index
      %c0_25 = arith.constant 0 : index
      %27 = vector.load %arg1[%c0_23, %26, %c0_24, %c0_25] : memref<1x5x5x512xbf16, #tpu.memory_space<vmem>>, vector<1x1x4x512xbf16>
      %28 = vector.shape_cast %27 : vector<1x1x4x512xbf16> to vector<4x512xbf16>
      %c2 = arith.constant 2 : index
      %c0_26 = arith.constant 0 : index
      %c0_27 = arith.constant 0 : index
      %29 = vector.load %arg2[%c2, %c0_26, %c0_27] : memref<4x512x256xbf16, #tpu.memory_space<vmem>>, vector<1x512x256xbf16>
      %30 = vector.shape_cast %29 : vector<1x512x256xbf16> to vector<512x256xbf16>
      %cst_28 = arith.constant dense<0.000000e+00> : vector<4x256xf32>
      %31 = tpu.matmul %28, %30, %cst_28 {dimension_numbers = #tpu.dot_dimension_numbers<[1], [0], [0], [1], [0, 0, 1, 1], [], []>} : vector<4x512xbf16>, vector<512x256xbf16>, vector<4x256xf32> -> vector<4x256xf32>
      %32 = arith.addf %24, %31 : vector<4x256xf32>
      %c1_i32_29 = arith.constant 1 : i32
      %33 = arith.addi %arg6, %c1_i32_29 : i32
      %c0_30 = arith.constant 0 : index
      %34 = arith.index_cast %33 : i32 to index
      %c1_31 = arith.constant 1 : index
      %c0_32 = arith.constant 0 : index
      %35 = vector.load %arg1[%c0_30, %34, %c1_31, %c0_32] : memref<1x5x5x512xbf16, #tpu.memory_space<vmem>>, vector<1x1x4x512xbf16>
      %36 = vector.shape_cast %35 : vector<1x1x4x512xbf16> to vector<4x512xbf16>
      %c3 = arith.constant 3 : index
      %c0_33 = arith.constant 0 : index
      %c0_34 = arith.constant 0 : index
      %37 = vector.load %arg2[%c3, %c0_33, %c0_34] : memref<4x512x256xbf16, #tpu.memory_space<vmem>>, vector<1x512x256xbf16>
      %38 = vector.shape_cast %37 : vector<1x512x256xbf16> to vector<512x256xbf16>
      %cst_35 = arith.constant dense<0.000000e+00> : vector<4x256xf32>
      %39 = tpu.matmul %36, %38, %cst_35 {dimension_numbers = #tpu.dot_dimension_numbers<[1], [0], [0], [1], [0, 0, 1, 1], [], []>} : vector<4x512xbf16>, vector<512x256xbf16>, vector<4x256xf32> -> vector<4x256xf32>
      %40 = arith.addf %32, %39 : vector<4x256xf32>
      %41 = arith.truncf %40 : vector<4x256xf32> to vector<4x256xbf16>
      %c0_36 = arith.constant 0 : index
      %42 = arith.index_cast %arg6 : i32 to index
      %c0_37 = arith.constant 0 : index
      %c0_38 = arith.constant 0 : index
      %43 = vector.load %arg3[%c0_36, %42, %c0_37, %c0_38] : memref<1x4x4x256xbf16, #tpu.memory_space<vmem>>, vector<1x1x4x256xbf16>
      %44 = vector.shape_cast %43 : vector<1x1x4x256xbf16> to vector<4x256xbf16>
      %45 = vector.shape_cast %41 : vector<4x256xbf16> to vector<1x1x4x256xbf16>
      tpu.vector_store %arg3[%c0_36, %42, %c0_37, %c0_38], %45 {strides = array<i32>} : memref<1x4x4x256xbf16, #tpu.memory_space<vmem>>, vector<1x1x4x256xbf16>,
      %cst_39 = arith.constant dense<0.000000e+00> : vector<256xf32>
      %46 = vector.multi_reduction <add>, %40, %cst_39 [0] : vector<4x256xf32> to vector<256xf32>
      %47 = vector.shape_cast %46 : vector<256xf32> to vector<1x256xf32>
      %48 = arith.addf %arg7, %47 : vector<1x256xf32>
      %49 = arith.mulf %40, %40 : vector<4x256xf32>
      %cst_40 = arith.constant dense<0.000000e+00> : vector<256xf32>
      %50 = vector.multi_reduction <add>, %49, %cst_40 [0] : vector<4x256xf32> to vector<256xf32>
      %51 = vector.shape_cast %50 : vector<256xf32> to vector<1x256xf32>
      %52 = arith.addf %arg8, %51 : vector<1x256xf32>
      scf.yield %48, %52 : vector<1x256xf32>, vector<1x256xf32>
    }
    %c4_i32_1 = arith.constant 4 : i32
    %c0 = arith.constant 0 : index
    %c0_2 = arith.constant 0 : index
    %c0_3 = arith.constant 0 : index
    %4 = vector.load %arg4[%c0, %c0_2, %c0_3] : memref<1x1x256xf32, #tpu.memory_space<vmem>>, vector<1x1x256xf32>
    %5 = vector.shape_cast %4 : vector<1x1x256xf32> to vector<1x256xf32>
    %6 = vector.shape_cast %3#0 : vector<1x256xf32> to vector<1x1x256xf32>
    tpu.vector_store %arg4[%c0, %c0_2, %c0_3], %6 {strides = array<i32>} : memref<1x1x256xf32, #tpu.memory_space<vmem>>, vector<1x1x256xf32>,
    %c0_4 = arith.constant 0 : index
    %c0_5 = arith.constant 0 : index
    %c0_6 = arith.constant 0 : index
    %7 = vector.load %arg5[%c0_4, %c0_5, %c0_6] : memref<1x1x256xf32, #tpu.memory_space<vmem>>, vector<1x1x256xf32>
    %8 = vector.shape_cast %7 : vector<1x1x256xf32> to vector<1x256xf32>
    %9 = vector.shape_cast %3#1 : vector<1x256xf32> to vector<1x1x256xf32>
    tpu.vector_store %arg5[%c0_4, %c0_5, %c0_6], %9 {strides = array<i32>} : memref<1x1x256xf32, #tpu.memory_space<vmem>>, vector<1x1x256xf32>,
    return
  }
  func.func @transform_0(%arg0: i32) -> (i32, i32, i32, i32) {
    %c0_i32 = arith.constant 0 : i32
    %c0_i32_0 = arith.constant 0 : i32
    %c0_i32_1 = arith.constant 0 : i32
    %c0_i32_2 = arith.constant 0 : i32
    return %arg0, %c0_i32, %c0_i32_0, %c0_i32_1 : i32, i32, i32, i32
  }
  func.func @transform_1(%arg0: i32) -> (i32, i32, i32) {
    %c0_i32 = arith.constant 0 : i32
    %c0_i32_0 = arith.constant 0 : i32
    %c0_i32_1 = arith.constant 0 : i32
    %c0_i32_2 = arith.constant 0 : i32
    return %c0_i32, %c0_i32_0, %c0_i32_1 : i32, i32, i32
  }
  func.func @transform_2(%arg0: i32) -> (i32, i32, i32, i32) {
    %c0_i32 = arith.constant 0 : i32
    %c0_i32_0 = arith.constant 0 : i32
    %c0_i32_1 = arith.constant 0 : i32
    %c0_i32_2 = arith.constant 0 : i32
    return %arg0, %c0_i32, %c0_i32_0, %c0_i32_1 : i32, i32, i32, i32
  }
  func.func @transform_3(%arg0: i32) -> (i32, i32, i32) {
    %c0_i32 = arith.constant 0 : i32
    %c0_i32_0 = arith.constant 0 : i32
    %c0_i32_1 = arith.constant 0 : i32
    return %arg0, %c0_i32, %c0_i32_0 : i32, i32, i32
  }
  func.func @transform_4(%arg0: i32) -> (i32, i32, i32) {
    %c0_i32 = arith.constant 0 : i32
    %c0_i32_0 = arith.constant 0 : i32
    %c0_i32_1 = arith.constant 0 : i32
    return %arg0, %c0_i32, %c0_i32_0 : i32, i32, i32
  }
}

module attributes {stable_mosaic.version = 11 : i64} {
  func.func @_conv_bias_act_kernel(%arg0: i32, %arg1: memref<1x5x5x256xbf16, #tpu.memory_space<vmem>>, %arg2: memref<16x256x128xbf16, #tpu.memory_space<vmem>>, %arg3: memref<1x128xf32, #tpu.memory_space<vmem>>, %arg4: memref<1x2x2x128xf32, #tpu.memory_space<vmem>>) attributes {dimension_semantics = [#tpu.dimension_semantics<parallel>], iteration_bounds = array<i64: 2>, scalar_prefetch = 0 : i64, scratch_operands = 0 : i64, tpu.core_type = #tpu.core_type<tc>, window_params = [{transform_indices = @transform_0, window_bounds = array<i64: 1, 5, 5, 256>}, {pipeline_mode = #tpu.pipeline_mode<synchronous>, transform_indices = @transform_1, window_bounds = array<i64: 16, 256, 128>}, {pipeline_mode = #tpu.pipeline_mode<synchronous>, transform_indices = @transform_2, window_bounds = array<i64: 1, 128>}, {transform_indices = @transform_3, window_bounds = array<i64: 1, 2, 2, 128>}]} {
    %c0 = arith.constant 0 : index
    %c0_0 = arith.constant 0 : index
    %0 = vector.load %arg3[%c0, %c0_0] : memref<1x128xf32, #tpu.memory_space<vmem>>, vector<1x128xf32>
    %c0_i32 = arith.constant 0 : i32
    %c2_i32 = arith.constant 2 : i32
    %1 = arith.addi %c0_i32, %c2_i32 : i32
    %c1_i32 = arith.constant 1 : i32
    scf.for %arg5 = %c0_i32 to %1 step %c1_i32  : i32 {
      %c0_i32_2 = arith.constant 0 : i32
      %2 = arith.addi %arg5, %c0_i32_2 : i32
      %c0_3 = arith.constant 0 : index
      %3 = arith.index_cast %2 : i32 to index
      %c0_4 = arith.constant 0 : index
      %c0_5 = arith.constant 0 : index
      %4 = vector.load %arg1[%c0_3, %3, %c0_4, %c0_5] : memref<1x5x5x256xbf16, #tpu.memory_space<vmem>>, vector<1x1x2x256xbf16>
      %5 = vector.shape_cast %4 : vector<1x1x2x256xbf16> to vector<2x256xbf16>
      %c0_6 = arith.constant 0 : index
      %c0_7 = arith.constant 0 : index
      %c0_8 = arith.constant 0 : index
      %6 = vector.load %arg2[%c0_6, %c0_7, %c0_8] : memref<16x256x128xbf16, #tpu.memory_space<vmem>>, vector<1x256x128xbf16>
      %7 = vector.shape_cast %6 : vector<1x256x128xbf16> to vector<256x128xbf16>
      %cst = arith.constant dense<0.000000e+00> : vector<2x128xf32>
      %8 = tpu.matmul %5, %7, %cst {dimension_numbers = #tpu.dot_dimension_numbers<[1], [0], [0], [1], [0, 0, 1, 1], [], []>} : vector<2x256xbf16>, vector<256x128xbf16>, vector<2x128xf32> -> vector<2x128xf32>
      %c0_i32_9 = arith.constant 0 : i32
      %9 = arith.addi %arg5, %c0_i32_9 : i32
      %c0_10 = arith.constant 0 : index
      %10 = arith.index_cast %9 : i32 to index
      %c1 = arith.constant 1 : index
      %c0_11 = arith.constant 0 : index
      %11 = vector.load %arg1[%c0_10, %10, %c1, %c0_11] : memref<1x5x5x256xbf16, #tpu.memory_space<vmem>>, vector<1x1x2x256xbf16>
      %12 = vector.shape_cast %11 : vector<1x1x2x256xbf16> to vector<2x256xbf16>
      %c1_12 = arith.constant 1 : index
      %c0_13 = arith.constant 0 : index
      %c0_14 = arith.constant 0 : index
      %13 = vector.load %arg2[%c1_12, %c0_13, %c0_14] : memref<16x256x128xbf16, #tpu.memory_space<vmem>>, vector<1x256x128xbf16>
      %14 = vector.shape_cast %13 : vector<1x256x128xbf16> to vector<256x128xbf16>
      %cst_15 = arith.constant dense<0.000000e+00> : vector<2x128xf32>
      %15 = tpu.matmul %12, %14, %cst_15 {dimension_numbers = #tpu.dot_dimension_numbers<[1], [0], [0], [1], [0, 0, 1, 1], [], []>} : vector<2x256xbf16>, vector<256x128xbf16>, vector<2x128xf32> -> vector<2x128xf32>
      %16 = arith.addf %8, %15 : vector<2x128xf32>
      %c0_i32_16 = arith.constant 0 : i32
      %17 = arith.addi %arg5, %c0_i32_16 : i32
      %c0_17 = arith.constant 0 : index
      %18 = arith.index_cast %17 : i32 to index
      %c2 = arith.constant 2 : index
      %c0_18 = arith.constant 0 : index
      %19 = vector.load %arg1[%c0_17, %18, %c2, %c0_18] : memref<1x5x5x256xbf16, #tpu.memory_space<vmem>>, vector<1x1x2x256xbf16>
      %20 = vector.shape_cast %19 : vector<1x1x2x256xbf16> to vector<2x256xbf16>
      %c2_19 = arith.constant 2 : index
      %c0_20 = arith.constant 0 : index
      %c0_21 = arith.constant 0 : index
      %21 = vector.load %arg2[%c2_19, %c0_20, %c0_21] : memref<16x256x128xbf16, #tpu.memory_space<vmem>>, vector<1x256x128xbf16>
      %22 = vector.shape_cast %21 : vector<1x256x128xbf16> to vector<256x128xbf16>
      %cst_22 = arith.constant dense<0.000000e+00> : vector<2x128xf32>
      %23 = tpu.matmul %20, %22, %cst_22 {dimension_numbers = #tpu.dot_dimension_numbers<[1], [0], [0], [1], [0, 0, 1, 1], [], []>} : vector<2x256xbf16>, vector<256x128xbf16>, vector<2x128xf32> -> vector<2x128xf32>
      %24 = arith.addf %16, %23 : vector<2x128xf32>
      %c0_i32_23 = arith.constant 0 : i32
      %25 = arith.addi %arg5, %c0_i32_23 : i32
      %c0_24 = arith.constant 0 : index
      %26 = arith.index_cast %25 : i32 to index
      %c3 = arith.constant 3 : index
      %c0_25 = arith.constant 0 : index
      %27 = vector.load %arg1[%c0_24, %26, %c3, %c0_25] : memref<1x5x5x256xbf16, #tpu.memory_space<vmem>>, vector<1x1x2x256xbf16>
      %28 = vector.shape_cast %27 : vector<1x1x2x256xbf16> to vector<2x256xbf16>
      %c3_26 = arith.constant 3 : index
      %c0_27 = arith.constant 0 : index
      %c0_28 = arith.constant 0 : index
      %29 = vector.load %arg2[%c3_26, %c0_27, %c0_28] : memref<16x256x128xbf16, #tpu.memory_space<vmem>>, vector<1x256x128xbf16>
      %30 = vector.shape_cast %29 : vector<1x256x128xbf16> to vector<256x128xbf16>
      %cst_29 = arith.constant dense<0.000000e+00> : vector<2x128xf32>
      %31 = tpu.matmul %28, %30, %cst_29 {dimension_numbers = #tpu.dot_dimension_numbers<[1], [0], [0], [1], [0, 0, 1, 1], [], []>} : vector<2x256xbf16>, vector<256x128xbf16>, vector<2x128xf32> -> vector<2x128xf32>
      %32 = arith.addf %24, %31 : vector<2x128xf32>
      %c1_i32_30 = arith.constant 1 : i32
      %33 = arith.addi %arg5, %c1_i32_30 : i32
      %c0_31 = arith.constant 0 : index
      %34 = arith.index_cast %33 : i32 to index
      %c0_32 = arith.constant 0 : index
      %c0_33 = arith.constant 0 : index
      %35 = vector.load %arg1[%c0_31, %34, %c0_32, %c0_33] : memref<1x5x5x256xbf16, #tpu.memory_space<vmem>>, vector<1x1x2x256xbf16>
      %36 = vector.shape_cast %35 : vector<1x1x2x256xbf16> to vector<2x256xbf16>
      %c4 = arith.constant 4 : index
      %c0_34 = arith.constant 0 : index
      %c0_35 = arith.constant 0 : index
      %37 = vector.load %arg2[%c4, %c0_34, %c0_35] : memref<16x256x128xbf16, #tpu.memory_space<vmem>>, vector<1x256x128xbf16>
      %38 = vector.shape_cast %37 : vector<1x256x128xbf16> to vector<256x128xbf16>
      %cst_36 = arith.constant dense<0.000000e+00> : vector<2x128xf32>
      %39 = tpu.matmul %36, %38, %cst_36 {dimension_numbers = #tpu.dot_dimension_numbers<[1], [0], [0], [1], [0, 0, 1, 1], [], []>} : vector<2x256xbf16>, vector<256x128xbf16>, vector<2x128xf32> -> vector<2x128xf32>
      %40 = arith.addf %32, %39 : vector<2x128xf32>
      %c1_i32_37 = arith.constant 1 : i32
      %41 = arith.addi %arg5, %c1_i32_37 : i32
      %c0_38 = arith.constant 0 : index
      %42 = arith.index_cast %41 : i32 to index
      %c1_39 = arith.constant 1 : index
      %c0_40 = arith.constant 0 : index
      %43 = vector.load %arg1[%c0_38, %42, %c1_39, %c0_40] : memref<1x5x5x256xbf16, #tpu.memory_space<vmem>>, vector<1x1x2x256xbf16>
      %44 = vector.shape_cast %43 : vector<1x1x2x256xbf16> to vector<2x256xbf16>
      %c5 = arith.constant 5 : index
      %c0_41 = arith.constant 0 : index
      %c0_42 = arith.constant 0 : index
      %45 = vector.load %arg2[%c5, %c0_41, %c0_42] : memref<16x256x128xbf16, #tpu.memory_space<vmem>>, vector<1x256x128xbf16>
      %46 = vector.shape_cast %45 : vector<1x256x128xbf16> to vector<256x128xbf16>
      %cst_43 = arith.constant dense<0.000000e+00> : vector<2x128xf32>
      %47 = tpu.matmul %44, %46, %cst_43 {dimension_numbers = #tpu.dot_dimension_numbers<[1], [0], [0], [1], [0, 0, 1, 1], [], []>} : vector<2x256xbf16>, vector<256x128xbf16>, vector<2x128xf32> -> vector<2x128xf32>
      %48 = arith.addf %40, %47 : vector<2x128xf32>
      %c1_i32_44 = arith.constant 1 : i32
      %49 = arith.addi %arg5, %c1_i32_44 : i32
      %c0_45 = arith.constant 0 : index
      %50 = arith.index_cast %49 : i32 to index
      %c2_46 = arith.constant 2 : index
      %c0_47 = arith.constant 0 : index
      %51 = vector.load %arg1[%c0_45, %50, %c2_46, %c0_47] : memref<1x5x5x256xbf16, #tpu.memory_space<vmem>>, vector<1x1x2x256xbf16>
      %52 = vector.shape_cast %51 : vector<1x1x2x256xbf16> to vector<2x256xbf16>
      %c6 = arith.constant 6 : index
      %c0_48 = arith.constant 0 : index
      %c0_49 = arith.constant 0 : index
      %53 = vector.load %arg2[%c6, %c0_48, %c0_49] : memref<16x256x128xbf16, #tpu.memory_space<vmem>>, vector<1x256x128xbf16>
      %54 = vector.shape_cast %53 : vector<1x256x128xbf16> to vector<256x128xbf16>
      %cst_50 = arith.constant dense<0.000000e+00> : vector<2x128xf32>
      %55 = tpu.matmul %52, %54, %cst_50 {dimension_numbers = #tpu.dot_dimension_numbers<[1], [0], [0], [1], [0, 0, 1, 1], [], []>} : vector<2x256xbf16>, vector<256x128xbf16>, vector<2x128xf32> -> vector<2x128xf32>
      %56 = arith.addf %48, %55 : vector<2x128xf32>
      %c1_i32_51 = arith.constant 1 : i32
      %57 = arith.addi %arg5, %c1_i32_51 : i32
      %c0_52 = arith.constant 0 : index
      %58 = arith.index_cast %57 : i32 to index
      %c3_53 = arith.constant 3 : index
      %c0_54 = arith.constant 0 : index
      %59 = vector.load %arg1[%c0_52, %58, %c3_53, %c0_54] : memref<1x5x5x256xbf16, #tpu.memory_space<vmem>>, vector<1x1x2x256xbf16>
      %60 = vector.shape_cast %59 : vector<1x1x2x256xbf16> to vector<2x256xbf16>
      %c7 = arith.constant 7 : index
      %c0_55 = arith.constant 0 : index
      %c0_56 = arith.constant 0 : index
      %61 = vector.load %arg2[%c7, %c0_55, %c0_56] : memref<16x256x128xbf16, #tpu.memory_space<vmem>>, vector<1x256x128xbf16>
      %62 = vector.shape_cast %61 : vector<1x256x128xbf16> to vector<256x128xbf16>
      %cst_57 = arith.constant dense<0.000000e+00> : vector<2x128xf32>
      %63 = tpu.matmul %60, %62, %cst_57 {dimension_numbers = #tpu.dot_dimension_numbers<[1], [0], [0], [1], [0, 0, 1, 1], [], []>} : vector<2x256xbf16>, vector<256x128xbf16>, vector<2x128xf32> -> vector<2x128xf32>
      %64 = arith.addf %56, %63 : vector<2x128xf32>
      %c2_i32_58 = arith.constant 2 : i32
      %65 = arith.addi %arg5, %c2_i32_58 : i32
      %c0_59 = arith.constant 0 : index
      %66 = arith.index_cast %65 : i32 to index
      %c0_60 = arith.constant 0 : index
      %c0_61 = arith.constant 0 : index
      %67 = vector.load %arg1[%c0_59, %66, %c0_60, %c0_61] : memref<1x5x5x256xbf16, #tpu.memory_space<vmem>>, vector<1x1x2x256xbf16>
      %68 = vector.shape_cast %67 : vector<1x1x2x256xbf16> to vector<2x256xbf16>
      %c8 = arith.constant 8 : index
      %c0_62 = arith.constant 0 : index
      %c0_63 = arith.constant 0 : index
      %69 = vector.load %arg2[%c8, %c0_62, %c0_63] : memref<16x256x128xbf16, #tpu.memory_space<vmem>>, vector<1x256x128xbf16>
      %70 = vector.shape_cast %69 : vector<1x256x128xbf16> to vector<256x128xbf16>
      %cst_64 = arith.constant dense<0.000000e+00> : vector<2x128xf32>
      %71 = tpu.matmul %68, %70, %cst_64 {dimension_numbers = #tpu.dot_dimension_numbers<[1], [0], [0], [1], [0, 0, 1, 1], [], []>} : vector<2x256xbf16>, vector<256x128xbf16>, vector<2x128xf32> -> vector<2x128xf32>
      %72 = arith.addf %64, %71 : vector<2x128xf32>
      %c2_i32_65 = arith.constant 2 : i32
      %73 = arith.addi %arg5, %c2_i32_65 : i32
      %c0_66 = arith.constant 0 : index
      %74 = arith.index_cast %73 : i32 to index
      %c1_67 = arith.constant 1 : index
      %c0_68 = arith.constant 0 : index
      %75 = vector.load %arg1[%c0_66, %74, %c1_67, %c0_68] : memref<1x5x5x256xbf16, #tpu.memory_space<vmem>>, vector<1x1x2x256xbf16>
      %76 = vector.shape_cast %75 : vector<1x1x2x256xbf16> to vector<2x256xbf16>
      %c9 = arith.constant 9 : index
      %c0_69 = arith.constant 0 : index
      %c0_70 = arith.constant 0 : index
      %77 = vector.load %arg2[%c9, %c0_69, %c0_70] : memref<16x256x128xbf16, #tpu.memory_space<vmem>>, vector<1x256x128xbf16>
      %78 = vector.shape_cast %77 : vector<1x256x128xbf16> to vector<256x128xbf16>
      %cst_71 = arith.constant dense<0.000000e+00> : vector<2x128xf32>
      %79 = tpu.matmul %76, %78, %cst_71 {dimension_numbers = #tpu.dot_dimension_numbers<[1], [0], [0], [1], [0, 0, 1, 1], [], []>} : vector<2x256xbf16>, vector<256x128xbf16>, vector<2x128xf32> -> vector<2x128xf32>
      %80 = arith.addf %72, %79 : vector<2x128xf32>
      %c2_i32_72 = arith.constant 2 : i32
      %81 = arith.addi %arg5, %c2_i32_72 : i32
      %c0_73 = arith.constant 0 : index
      %82 = arith.index_cast %81 : i32 to index
      %c2_74 = arith.constant 2 : index
      %c0_75 = arith.constant 0 : index
      %83 = vector.load %arg1[%c0_73, %82, %c2_74, %c0_75] : memref<1x5x5x256xbf16, #tpu.memory_space<vmem>>, vector<1x1x2x256xbf16>
      %84 = vector.shape_cast %83 : vector<1x1x2x256xbf16> to vector<2x256xbf16>
      %c10 = arith.constant 10 : index
      %c0_76 = arith.constant 0 : index
      %c0_77 = arith.constant 0 : index
      %85 = vector.load %arg2[%c10, %c0_76, %c0_77] : memref<16x256x128xbf16, #tpu.memory_space<vmem>>, vector<1x256x128xbf16>
      %86 = vector.shape_cast %85 : vector<1x256x128xbf16> to vector<256x128xbf16>
      %cst_78 = arith.constant dense<0.000000e+00> : vector<2x128xf32>
      %87 = tpu.matmul %84, %86, %cst_78 {dimension_numbers = #tpu.dot_dimension_numbers<[1], [0], [0], [1], [0, 0, 1, 1], [], []>} : vector<2x256xbf16>, vector<256x128xbf16>, vector<2x128xf32> -> vector<2x128xf32>
      %88 = arith.addf %80, %87 : vector<2x128xf32>
      %c2_i32_79 = arith.constant 2 : i32
      %89 = arith.addi %arg5, %c2_i32_79 : i32
      %c0_80 = arith.constant 0 : index
      %90 = arith.index_cast %89 : i32 to index
      %c3_81 = arith.constant 3 : index
      %c0_82 = arith.constant 0 : index
      %91 = vector.load %arg1[%c0_80, %90, %c3_81, %c0_82] : memref<1x5x5x256xbf16, #tpu.memory_space<vmem>>, vector<1x1x2x256xbf16>
      %92 = vector.shape_cast %91 : vector<1x1x2x256xbf16> to vector<2x256xbf16>
      %c11 = arith.constant 11 : index
      %c0_83 = arith.constant 0 : index
      %c0_84 = arith.constant 0 : index
      %93 = vector.load %arg2[%c11, %c0_83, %c0_84] : memref<16x256x128xbf16, #tpu.memory_space<vmem>>, vector<1x256x128xbf16>
      %94 = vector.shape_cast %93 : vector<1x256x128xbf16> to vector<256x128xbf16>
      %cst_85 = arith.constant dense<0.000000e+00> : vector<2x128xf32>
      %95 = tpu.matmul %92, %94, %cst_85 {dimension_numbers = #tpu.dot_dimension_numbers<[1], [0], [0], [1], [0, 0, 1, 1], [], []>} : vector<2x256xbf16>, vector<256x128xbf16>, vector<2x128xf32> -> vector<2x128xf32>
      %96 = arith.addf %88, %95 : vector<2x128xf32>
      %c3_i32 = arith.constant 3 : i32
      %97 = arith.addi %arg5, %c3_i32 : i32
      %c0_86 = arith.constant 0 : index
      %98 = arith.index_cast %97 : i32 to index
      %c0_87 = arith.constant 0 : index
      %c0_88 = arith.constant 0 : index
      %99 = vector.load %arg1[%c0_86, %98, %c0_87, %c0_88] : memref<1x5x5x256xbf16, #tpu.memory_space<vmem>>, vector<1x1x2x256xbf16>
      %100 = vector.shape_cast %99 : vector<1x1x2x256xbf16> to vector<2x256xbf16>
      %c12 = arith.constant 12 : index
      %c0_89 = arith.constant 0 : index
      %c0_90 = arith.constant 0 : index
      %101 = vector.load %arg2[%c12, %c0_89, %c0_90] : memref<16x256x128xbf16, #tpu.memory_space<vmem>>, vector<1x256x128xbf16>
      %102 = vector.shape_cast %101 : vector<1x256x128xbf16> to vector<256x128xbf16>
      %cst_91 = arith.constant dense<0.000000e+00> : vector<2x128xf32>
      %103 = tpu.matmul %100, %102, %cst_91 {dimension_numbers = #tpu.dot_dimension_numbers<[1], [0], [0], [1], [0, 0, 1, 1], [], []>} : vector<2x256xbf16>, vector<256x128xbf16>, vector<2x128xf32> -> vector<2x128xf32>
      %104 = arith.addf %96, %103 : vector<2x128xf32>
      %c3_i32_92 = arith.constant 3 : i32
      %105 = arith.addi %arg5, %c3_i32_92 : i32
      %c0_93 = arith.constant 0 : index
      %106 = arith.index_cast %105 : i32 to index
      %c1_94 = arith.constant 1 : index
      %c0_95 = arith.constant 0 : index
      %107 = vector.load %arg1[%c0_93, %106, %c1_94, %c0_95] : memref<1x5x5x256xbf16, #tpu.memory_space<vmem>>, vector<1x1x2x256xbf16>
      %108 = vector.shape_cast %107 : vector<1x1x2x256xbf16> to vector<2x256xbf16>
      %c13 = arith.constant 13 : index
      %c0_96 = arith.constant 0 : index
      %c0_97 = arith.constant 0 : index
      %109 = vector.load %arg2[%c13, %c0_96, %c0_97] : memref<16x256x128xbf16, #tpu.memory_space<vmem>>, vector<1x256x128xbf16>
      %110 = vector.shape_cast %109 : vector<1x256x128xbf16> to vector<256x128xbf16>
      %cst_98 = arith.constant dense<0.000000e+00> : vector<2x128xf32>
      %111 = tpu.matmul %108, %110, %cst_98 {dimension_numbers = #tpu.dot_dimension_numbers<[1], [0], [0], [1], [0, 0, 1, 1], [], []>} : vector<2x256xbf16>, vector<256x128xbf16>, vector<2x128xf32> -> vector<2x128xf32>
      %112 = arith.addf %104, %111 : vector<2x128xf32>
      %c3_i32_99 = arith.constant 3 : i32
      %113 = arith.addi %arg5, %c3_i32_99 : i32
      %c0_100 = arith.constant 0 : index
      %114 = arith.index_cast %113 : i32 to index
      %c2_101 = arith.constant 2 : index
      %c0_102 = arith.constant 0 : index
      %115 = vector.load %arg1[%c0_100, %114, %c2_101, %c0_102] : memref<1x5x5x256xbf16, #tpu.memory_space<vmem>>, vector<1x1x2x256xbf16>
      %116 = vector.shape_cast %115 : vector<1x1x2x256xbf16> to vector<2x256xbf16>
      %c14 = arith.constant 14 : index
      %c0_103 = arith.constant 0 : index
      %c0_104 = arith.constant 0 : index
      %117 = vector.load %arg2[%c14, %c0_103, %c0_104] : memref<16x256x128xbf16, #tpu.memory_space<vmem>>, vector<1x256x128xbf16>
      %118 = vector.shape_cast %117 : vector<1x256x128xbf16> to vector<256x128xbf16>
      %cst_105 = arith.constant dense<0.000000e+00> : vector<2x128xf32>
      %119 = tpu.matmul %116, %118, %cst_105 {dimension_numbers = #tpu.dot_dimension_numbers<[1], [0], [0], [1], [0, 0, 1, 1], [], []>} : vector<2x256xbf16>, vector<256x128xbf16>, vector<2x128xf32> -> vector<2x128xf32>
      %120 = arith.addf %112, %119 : vector<2x128xf32>
      %c3_i32_106 = arith.constant 3 : i32
      %121 = arith.addi %arg5, %c3_i32_106 : i32
      %c0_107 = arith.constant 0 : index
      %122 = arith.index_cast %121 : i32 to index
      %c3_108 = arith.constant 3 : index
      %c0_109 = arith.constant 0 : index
      %123 = vector.load %arg1[%c0_107, %122, %c3_108, %c0_109] : memref<1x5x5x256xbf16, #tpu.memory_space<vmem>>, vector<1x1x2x256xbf16>
      %124 = vector.shape_cast %123 : vector<1x1x2x256xbf16> to vector<2x256xbf16>
      %c15 = arith.constant 15 : index
      %c0_110 = arith.constant 0 : index
      %c0_111 = arith.constant 0 : index
      %125 = vector.load %arg2[%c15, %c0_110, %c0_111] : memref<16x256x128xbf16, #tpu.memory_space<vmem>>, vector<1x256x128xbf16>
      %126 = vector.shape_cast %125 : vector<1x256x128xbf16> to vector<256x128xbf16>
      %cst_112 = arith.constant dense<0.000000e+00> : vector<2x128xf32>
      %127 = tpu.matmul %124, %126, %cst_112 {dimension_numbers = #tpu.dot_dimension_numbers<[1], [0], [0], [1], [0, 0, 1, 1], [], []>} : vector<2x256xbf16>, vector<256x128xbf16>, vector<2x128xf32> -> vector<2x128xf32>
      %128 = arith.addf %120, %127 : vector<2x128xf32>
      %129 = vector.broadcast %0 : vector<1x128xf32> to vector<2x128xf32>
      %130 = arith.addf %128, %129 : vector<2x128xf32>
      %c0_113 = arith.constant 0 : index
      %131 = arith.index_cast %arg5 : i32 to index
      %c0_114 = arith.constant 0 : index
      %c0_115 = arith.constant 0 : index
      %132 = vector.load %arg4[%c0_113, %131, %c0_114, %c0_115] : memref<1x2x2x128xf32, #tpu.memory_space<vmem>>, vector<1x1x2x128xf32>
      %133 = vector.shape_cast %132 : vector<1x1x2x128xf32> to vector<2x128xf32>
      %134 = vector.shape_cast %130 : vector<2x128xf32> to vector<1x1x2x128xf32>
      tpu.vector_store %arg4[%c0_113, %131, %c0_114, %c0_115], %134 {strides = array<i32>} : memref<1x2x2x128xf32, #tpu.memory_space<vmem>>, vector<1x1x2x128xf32>,
    }
    %c2_i32_1 = arith.constant 2 : i32
    return
  }
  func.func @transform_0(%arg0: i32) -> (i32, i32, i32, i32) {
    %c0_i32 = arith.constant 0 : i32
    %c0_i32_0 = arith.constant 0 : i32
    %c0_i32_1 = arith.constant 0 : i32
    %c0_i32_2 = arith.constant 0 : i32
    return %arg0, %c0_i32, %c0_i32_0, %c0_i32_1 : i32, i32, i32, i32
  }
  func.func @transform_1(%arg0: i32) -> (i32, i32, i32) {
    %c0_i32 = arith.constant 0 : i32
    %c0_i32_0 = arith.constant 0 : i32
    %c0_i32_1 = arith.constant 0 : i32
    %c0_i32_2 = arith.constant 0 : i32
    return %c0_i32, %c0_i32_0, %c0_i32_1 : i32, i32, i32
  }
  func.func @transform_2(%arg0: i32) -> (i32, i32) {
    %c0_i32 = arith.constant 0 : i32
    %c0_i32_0 = arith.constant 0 : i32
    %c0_i32_1 = arith.constant 0 : i32
    return %c0_i32, %c0_i32_0 : i32, i32
  }
  func.func @transform_3(%arg0: i32) -> (i32, i32, i32, i32) {
    %c0_i32 = arith.constant 0 : i32
    %c0_i32_0 = arith.constant 0 : i32
    %c0_i32_1 = arith.constant 0 : i32
    %c0_i32_2 = arith.constant 0 : i32
    return %arg0, %c0_i32, %c0_i32_0, %c0_i32_1 : i32, i32, i32, i32
  }
}

</mosaic_0001>

<bundles_post_ra>
// kernel: discriminator_forward.4
= control target key start
LH: loop header
LB: loop body
LE: loop exit
PB: predicated region body
PF: predicated region fallthrough
CT: control target
= control target key end

     0   :  { %s671_s12 = smov 0   ;;  %s742_s0 = inlined_call_operand.vmem [shape: bf16[2,17,17,4], index: 0, kind: input, shape index: {}]   ;;  %s743_s1 = inlined_call_operand.vmem [shape: bf16[4,4,128], index: 1, kind: input, shape index: {}]   ;;  %s744_s2 = inlined_call_operand.vmem [shape: f32[1,128], index: 2, kind: input, shape index: {}]   ;;  %s745_s3 = inlined_call_operand.vmem [shape: bf16[2,16,16,128], index: 3, kind: output, shape index: {}]  }
   0x1 LB: > { %s534_s13 = sadd.s32 4294967295, %s643_s12   ;;  %p538_p0 = scmp.ge.s32.totalorder %s643_s12, 1  ;;  %s643_s12 = sphi %s671_s12, %s13_s12  }
   0x2   : > { %p137_p1 = scmp.lt.s32.totalorder %s643_s12, 3 }
   0x4   : > { %p138_p2 = pnand %p538_p0, %p137_p1 }
   0x5   : > { %p161_p3 = scmp.lt.s32.totalorder (!%p138_p2), %s534_s13, 1  ;;  %v682_v0 = vld [vmem:[%s744_s2] ss:$0 sm:$0xff] (!%p138_p2)  ;;  %s694_s24 = smov (!%p138_p2), 0  }
   0x6   : > { %141 = sbr.rel (%p138_p2) target bundleno = 263 (0x107), region = 32 }
   0xd   : > { %s747_s13 = smov (!%p161_p3, %s534_s13), 1 }
   0xe   : > { %s609_s16 = smul.u32 204, %s747_s13  ;;  %s567_s17 = sshll.u32 %s747_s13, 7 }
   0xf   : > { %s687_s20 = scalar_lea.vmem %s745_s3, %s567_s17 }
  0x10   : > { %s692_s23 = scalar_lea.vmem %s742_s0, %s609_s16 }
  0x11 LB: >> { %v543_v1 = vld [vmem:[%s743_s1 + $0x2] sm:$0x3]  ;;  %vm213_vm0 = vcmask 1041408   ;;  %v184_v2 = vld [vmem:[%s743_s1] sm:$0x3]  ;;  %v649_v3 = vmov 0.0   ;;  %s647_s24 = sphi %s694_s24, %s178_s24  }
  0x12   : >> { %585 = vmatprep.subr.bf16.mxu0 %v649_v3  ;;  %591 = vmatprep.subr.bf16.mxu1 %v649_v3  ;;  %v215_v4 = vsel %vm213_vm0, %v543_v1, 0  ;;  %v261_v5 = vsel %vm213_vm0, %v184_v2, 0  ;;  %s568_s29 = smul.u32 12, %s647_s24  ;;  %v556_v6 = vld [vmem:[%s743_s1 + $0x6] sm:$0x3]  ;;  %vm650_vm1 = vmmov 0  }
  0x13   : >> { %586 = vmatpush3.bf16.msra.mxu0 %v215_v4  ;;  %592 = vmatpush3.bf16.msra.mxu1 %v261_v5  ;;  %vm209_vm2 = vcmask 31744   ;;  %v395_v8 = vsel %vm213_vm0, %v556_v6, 0  ;;  %v550_v13 = vld [vmem:[%s743_s1 + $0x4] sm:$0x3]  ;;  %vm196_vm3 = vsmask.f32 7424 }
  0x14   : >> { %593 = vmatprep.mubr.msk.bf16.mxu1 %vm650_vm1, %v649_v3  ;;  %587 = vmatprep.mubr.msk.bf16.mxu0 %vm650_vm1, %v649_v3  ;;  %s714_s5 = scalar_lea.vmem %s692_s23, %s568_s29  ;;  %v321_v23 = vsel %vm213_vm0, %v550_v13, 0  ;;  %s571_s8 = sshll.u32 %s647_s24, 3 }
  0x15   : >> { %597 = vmatprep.subr.bf16.mxu0 %v649_v3  ;;  %603 = vmatprep.subr.bf16.mxu1 %v649_v3  ;;  %v628_v7 = vld [vmem:[%s714_s5] sm:$0xff]   ;;  %v629_v9 = vld [vmem:[%s714_s5 + $0x8] ss:$0 sps:$4 sm:$0x11]   ;;  %v630_v10 = vld [vmem:[%s714_s5 + $0xc] sm:$0xff]   ;;  %s464_s9 = scalar_lea.vmem %s687_s20, %s571_s8  ;;  %s178_s24 = sadd.s32 1, %s647_s24  }
  0x16   : >> { %594 = vmatmul.mubr.msk.bf16.vlgmr.msra.gmra.mrb[0].mxu1 %vm209_vm2, %v628_v7  ;;  %v198_v11 = vshrl.u32 %v628_v7, 16  ;;  %v200_v12 = vshll.u32 %v628_v7, 16  ;;  %v205_v14 = vshll.u32 %v629_v9, 16  ;;  %v631_v15 = vld [vmem:[%s714_s5 + $0x14] ss:$0 sps:$4 sm:$0x11]  }
  0x17   : >> { %604 = vmatpush3.bf16.msra.mxu1 %v395_v8  ;;  %605 = vmatprep.mubr.msk.bf16.mxu1 %vm650_vm1, %v649_v3  ;;  %v380_v17 = vshrl.u32 %v630_v10, 16  ;;  %v382_v18 = vshll.u32 %v630_v10, 16  ;;  %v387_v20 = vshll.u32 %v631_v15, 16  ;;  %v632_v28 = vld [vmem:[%s714_s5 + $0xc] sm:$0xff]   ;;  %p175_p4 = scmp.ge.s32.totalorder %s178_s24, 16  }
  0x18   : >> { %v202_v16 = vrot.slane %v200_v12, 1  ;;  %v207_v19 = vrot.slane %v205_v14, 1 }
  0x19   : >> { %v384_v22 = vrot.slane %v382_v18, 1  ;;  %v389_v24 = vrot.slane %v387_v20, 1 }
  0x1a   : >> { %v203_v21 = vor.u32 %v202_v16, %v198_v11 }
  0x1b   : >> { %v385_v26 = vor.u32 %v384_v22, %v380_v17 }
  0x1c   : >> { %v208_v25 = vsel %vm196_vm3, %v203_v21, %v207_v19 }
  0x1d   : >> { %588 = vmatmul.mubr.msk.bf16.vlgmr.msra.gmra.mrb[0].mxu0 %vm209_vm2, %v208_v25  ;;  %v390_v27 = vsel %vm196_vm3, %v385_v26, %v389_v24 }
  0x1e   : >> { %598 = vmatpush3.bf16.msra.mxu0 %v321_v23  ;;  %599 = vmatprep.mubr.msk.bf16.mxu0 %vm650_vm1, %v649_v3 }
  0x1f   : >> { %606 = vmatmul.mubr.msk.bf16.vlgmr.msra.gmra.mrb[4].mxu1 %vm209_vm2, %v390_v27 }
  0x25   : >> { %600 = vmatmul.mubr.msk.bf16.vlgmr.msra.gmra.mrb[4].mxu0 %vm209_vm2, %v632_v28 }
  0xe9   : >> { %v297_v29 = vpop.f32.mrb[0].mxu1 }
  0xea   : >> { %v595_v30 = vpop.f32.mrb[1].mxu1 }
  0xeb   : >> { %v300_v31 = vpop.f32.mrb[2].mxu1 }
  0xec   : >> { %v596_v32 = vpop.f32.mrb[3].mxu1 }
  0xf0   : >> { %v251_v33 = vpop.f32.mrb[0].mxu0 }
  0xf1   : >> { %v298_v34 = vadd.f32 %v297_v29, %v251_v33  ;;  %v589_v35 = vpop.f32.mrb[1].mxu0 }
  0xf2   : >> { %v254_v36 = vpop.f32.mrb[2].mxu0  ;;  %v431_v37 = vpop.f32.mrb[4].mxu1 }
  0xf3   : >> { %v301_v38 = vadd.f32 %v300_v31, %v254_v36  ;;  %v590_v39 = vpop.f32.mrb[3].mxu0  ;;  %v607_v40 = vpop.f32.mrb[5].mxu1 }
  0xf4   : >> { %v434_v41 = vpop.f32.mrb[6].mxu1 }
  0xf5   : >> { %v608_v42 = vpop.f32.mrb[7].mxu1 }
  0xf8   : >> { %v357_v43 = vpop.f32.mrb[4].mxu0 }
  0xf9   : >> { %v364_v44 = vadd.f32 %v357_v43, %v298_v34  ;;  %v601_v45 = vpop.f32.mrb[5].mxu0 }
  0xfa   : >> { %v360_v46 = vpop.f32.mrb[6].mxu0 }
  0xfb   : >> { %v438_v47 = vadd.f32 %v431_v37, %v364_v44  ;;  %v365_v48 = vadd.f32 %v360_v46, %v301_v38  ;;  %v602_v49 = vpop.f32.mrb[7].mxu0 }
  0xfd   : >> { %v446_v50 = vadd.f32 %v682_v0, %v438_v47  ;;  %v439_v51 = vadd.f32 %v434_v41, %v365_v48 }
  0xff   : >> { %v450_v52 = vmul.f32 0.2, %v446_v50  ;;  %v447_v53 = vadd.f32 %v682_v0, %v439_v51  ;;  %vm448_vm4 = vcmp.ge.f32.partialorder %v446_v50, 0.0 }
 0x100   : > { %177 = sbr.rel (!%p175_p4) target bundleno = 17 (0x11), region = 75 }
 0x101   : >> { %vm449_vm5 = vcmp.ge.f32.partialorder %v447_v53, 0.0  ;;  %v451_v54 = vmul.f32 0.2, %v447_v53  ;;  %v452_v55 = vsel %vm448_vm4, %v446_v50, %v450_v52 }
 0x103   : >> { %v453_v56 = vsel %vm449_vm5, %v447_v53, %v451_v54 }
 0x104   : >> { %v575_v57 = vpack.c.bf16 %v453_v56, %v452_v55 }
 0x106   : >> { %576 = vst [vmem:[%s464_s9] sm:$0xff] %v575_v57  }
 0x107 PF: > { %s13_s12 = sadd.s32 1, %s643_s12  }
 0x108   : > { %p10_p5 = scmp.ge.s32.totalorder %s13_s12, 4  }
 0x10a   :  { %12 = sbr.rel (!%p10_p5) target bundleno = 1 (0x1), region = 86 }

// kernel: discriminator_forward.5
= control target key start
LH: loop header
LB: loop body
LE: loop exit
PB: predicated region body
PF: predicated region fallthrough
CT: control target
= control target key end

     0   :  { %s1553_s15 = smov 0   ;;  %s1822_s0 = inlined_call_operand.vmem [shape: bf16[2,9,9,256], index: 0, kind: input, shape index: {}]   ;;  %s1823_s1 = inlined_call_operand.vmem [shape: bf16[4,256,128], index: 1, kind: input, shape index: {}]   ;;  %s1824_s2 = inlined_call_operand.vmem [shape: bf16[2,8,8,128], index: 2, kind: output, shape index: {0}]   ;;  %s1825_s3 = inlined_call_operand.vmem [shape: f32[2,1,128], index: 3, kind: output, shape index: {1}]   ;;  %s1826_s4 = inlined_call_operand.vmem [shape: f32[2,1,128], index: 4, kind: output, shape index: {2}]  }
   0x1 LB: > { %s1116_s16 = sadd.s32 4294967295, %s1514_s15   ;;  %p1120_p0 = scmp.ge.s32.totalorder %s1514_s15, 1  ;;  %s1514_s15 = sphi %s1553_s15, %s15_s15  }
   0x2   : > { %p167_p1 = scmp.lt.s32.totalorder %s1514_s15, 3 }
   0x4   : > { %p168_p2 = pnand %p1120_p0, %p167_p1 }
   0x5   : > { %p199_p3 = scmp.lt.s32.totalorder (!%p168_p2), %s1116_s16, 1  ;;  %v1583_v0 = vmov (!%p168_p2), 0.0   ;;  %v1585_v1 = vmov (!%p168_p2), 0.0   ;;  %s1587_s5 = smov (!%p168_p2), 0  }
   0x6   : > { %171 = sbr.rel (%p168_p2) target bundleno = 319 (0x13f), region = 28 }
   0xd   : > { %s1830_s16 = smov (!%p199_p3, %s1116_s16), 1 }
   0xe   : > { %s1391_s17 = smul.u32 144, %s1830_s16  ;;  %s1301_s18 = sshll.u32 %s1830_s16, 5 }
   0xf   : > { %s1568_s21 = scalar_lea.vmem %s1824_s2, %s1301_s18  ;;  %s211_s24 = scalar_lea.vmem %s1825_s3, %s1830_s16 }
  0x10   : > { %s1577_s27 = scalar_lea.vmem %s1822_s0, %s1391_s17  ;;  %s214_s30 = scalar_lea.vmem %s1826_s4, %s1830_s16 }
  0x11 LB: >> { %v1424_v2 = vld [vmem:[%s1823_s1 + $0xc0] sm:$0xff]   ;;  %v1428_v6 = vld [vmem:[%s1823_s1 + $0xc8] sm:$0xff]   ;;  %v1432_v10 = vld [vmem:[%s1823_s1 + $0xd0] sm:$0xff]   ;;  %s1302_s26 = sshll.u32 %s1526_s5, 4  ;;  %s1526_s5 = sphi %s1587_s5, %s221_s5   ;;  %v1522_v1 = vphi %v1585_v1, %v1828_v1   ;;  %v1518_v0 = vphi %v1583_v0, %v1827_v0  }
  0x12   : >> { %v1425_v3 = vld [vmem:[%s1823_s1 + $0x40] sm:$0xff]   ;;  %1303 = vmatprep.subr.bf16.mxu0 %v1424_v2  ;;  %v1429_v7 = vld [vmem:[%s1823_s1 + $0x48] sm:$0xff]   ;;  %v1433_v11 = vld [vmem:[%s1823_s1 + $0x50] sm:$0xff]   ;;  %s1690_s10 = scalar_lea.vmem %s1577_s27, %s1302_s26 }
  0x13   : >> { %v1426_v4 = vld [vmem:[%s1823_s1 + $0x80] sm:$0xff]   ;;  %1325 = vmatprep.subr.bf16.mxu1 %v1425_v3  ;;  %v1430_v8 = vld [vmem:[%s1823_s1 + $0x88] sm:$0xff]   ;;  %v1434_v12 = vld [vmem:[%s1823_s1 + $0x90] sm:$0xff]  }
  0x14   : >> { %v1427_v5 = vld [vmem:[%s1823_s1] sm:$0xff]   ;;  %1304 = vmatpush3.bf16.msra.mxu0 %v1426_v4  ;;  %v1431_v9 = vld [vmem:[%s1823_s1 + $0x8] sm:$0xff]   ;;  %v1435_v13 = vld [vmem:[%s1823_s1 + $0x10] sm:$0xff]  }
  0x15   : >> { %1326 = vmatpush3.bf16.msra.mxu1 %v1427_v5  ;;  %1305 = vmatprep.subr.bf16.mxu0 %v1428_v6  ;;  %v1436_v14 = vld [vmem:[%s1823_s1 + $0xd8] sm:$0xff]   ;;  %v1440_v18 = vld [vmem:[%s1823_s1 + $0xe0] sm:$0xff]   ;;  %v1444_v22 = vld [vmem:[%s1823_s1 + $0xe8] sm:$0xff]  }
  0x16   : >> { %1327 = vmatprep.subr.bf16.mxu1 %v1429_v7  ;;  %v1437_v15 = vld [vmem:[%s1823_s1 + $0x58] sm:$0xff]   ;;  %v1441_v19 = vld [vmem:[%s1823_s1 + $0x60] sm:$0xff]   ;;  %v1445_v23 = vld [vmem:[%s1823_s1 + $0x68] sm:$0xff]  }
  0x17   : >> { %v1438_v16 = vld [vmem:[%s1823_s1 + $0x98] sm:$0xff]   ;;  %v1442_v20 = vld [vmem:[%s1823_s1 + $0xa0] sm:$0xff]   ;;  %v1446_v24 = vld [vmem:[%s1823_s1 + $0xa8] sm:$0xff]  }
  0x18   : >> { %1306 = vmatpush3.bf16.msra.mxu0 %v1430_v8  ;;  %v1439_v17 = vld [vmem:[%s1823_s1 + $0x18] sm:$0xff]   ;;  %v1443_v21 = vld [vmem:[%s1823_s1 + $0x20] sm:$0xff]   ;;  %v1447_v25 = vld [vmem:[%s1823_s1 + $0x28] sm:$0xff]  }
  0x19   : >> { %1328 = vmatpush3.bf16.msra.mxu1 %v1431_v9  ;;  %1307 = vmatprep.subr.bf16.mxu0 %v1432_v10  ;;  %v1448_v26 = vld [vmem:[%s1823_s1 + $0xf0] sm:$0xff]   ;;  %v1452_v30 = vld [vmem:[%s1823_s1 + $0xf8] sm:$0xff]   ;;  %v227_v34 = vld [vmem:[%s1690_s10] sm:$0xff] }
  0x1a   : >> { %1329 = vmatprep.subr.bf16.mxu1 %v1433_v11  ;;  %v1449_v27 = vld [vmem:[%s1823_s1 + $0x70] sm:$0xff]   ;;  %v1453_v31 = vld [vmem:[%s1823_s1 + $0x78] sm:$0xff]   ;;  %v260_v35 = vld [vmem:[%s1690_s10 + $0x8] sm:$0x11]  ;;  %v1177_v38 = vcombine.high %v227_v34, %v227_v34  ;;  %v1176_v39 = vcombine.low %v227_v34, %v227_v34 }
  0x1b   : >> { %v1450_v28 = vld [vmem:[%s1823_s1 + $0xb0] sm:$0xff]   ;;  %v1454_v32 = vld [vmem:[%s1823_s1 + $0xb8] sm:$0xff]   ;;  %v1158_v36 = vcombine.low %v227_v34, %v260_v35  ;;  %v1159_v37 = vcombine.high %v227_v34, %v260_v35  ;;  %v1460_v40 = vld [vmem:[%s1823_s1 + $0x140] sm:$0xff]  }
  0x1c   : >> { %1308 = vmatpush3.bf16.msra.mxu0 %v1434_v12  ;;  %v1451_v29 = vld [vmem:[%s1823_s1 + $0x30] sm:$0xff]   ;;  %v1455_v33 = vld [vmem:[%s1823_s1 + $0x38] sm:$0xff]   ;;  %v1461_v41 = vld [vmem:[%s1823_s1 + $0x1c0] sm:$0xff]   ;;  %586 = vmatprep.mubr.bf16.mxu1 %v1177_v38 }
  0x1d   : >> { %1330 = vmatpush3.bf16.msra.mxu1 %v1435_v13  ;;  %1309 = vmatprep.subr.bf16.mxu0 %v1436_v14  ;;  %v310_v42 = vshrl.u32 %v1159_v37, 16  ;;  %v312_v43 = vshll.u32 %v1159_v37, 16  ;;  %v303_v44 = vshrl.u32 %v1158_v36, 16  ;;  %v305_v45 = vshll.u32 %v1158_v36, 16  ;;  %v1462_v48 = vld [vmem:[%s1823_s1 + $0x100] sm:$0xff]   ;;  %v1465_v52 = vld [vmem:[%s1823_s1 + $0x1c8] sm:$0xff]  }
  0x1e   : >> { %1331 = vmatprep.subr.bf16.mxu1 %v1437_v15  ;;  %v1463_v49 = vld [vmem:[%s1823_s1 + $0x180] sm:$0xff]   ;;  %v1464_v53 = vld [vmem:[%s1823_s1 + $0x148] sm:$0xff]   ;;  %v1469_v56 = vld [vmem:[%s1823_s1 + $0x1d0] sm:$0xff]  }
  0x1f   : >> { %v314_v46 = vrot.slane %v312_v43, 1  ;;  %v307_v47 = vrot.slane %v305_v45, 1  ;;  %v1467_v54 = vld [vmem:[%s1823_s1 + $0x188] sm:$0xff]   ;;  %v1468_v57 = vld [vmem:[%s1823_s1 + $0x150] sm:$0xff]   ;;  %v1473_v60 = vld [vmem:[%s1823_s1 + $0x1d8] sm:$0xff]  }
  0x20   : >> { %1310 = vmatpush3.bf16.msra.mxu0 %v1438_v16  ;;  %v1466_v55 = vld [vmem:[%s1823_s1 + $0x108] sm:$0xff]   ;;  %v1471_v58 = vld [vmem:[%s1823_s1 + $0x190] sm:$0xff]   ;;  %v1472_v61 = vld [vmem:[%s1823_s1 + $0x158] sm:$0xff]  }
  0x21   : >> { %1332 = vmatpush3.bf16.msra.mxu1 %v1439_v17  ;;  %1311 = vmatprep.subr.bf16.mxu0 %v1440_v18  ;;  %v315_v50 = vor.u32 %v314_v46, %v310_v42  ;;  %v308_v51 = vor.u32 %v307_v47, %v303_v44  ;;  %v1470_v59 = vld [vmem:[%s1823_s1 + $0x110] sm:$0xff]   ;;  %v1475_v62 = vld [vmem:[%s1823_s1 + $0x198] sm:$0xff]   ;;  %v1477_v2 = vld [vmem:[%s1823_s1 + $0x1e0] sm:$0xff]  }
  0x22   : >> { %1333 = vmatprep.subr.bf16.mxu1 %v1441_v19  ;;  %v1474_v63 = vld [vmem:[%s1823_s1 + $0x118] sm:$0xff]   ;;  %v1476_v3 = vld [vmem:[%s1823_s1 + $0x160] sm:$0xff]   ;;  %v1481_v6 = vld [vmem:[%s1823_s1 + $0x1e8] sm:$0xff]  }
  0x23   : >> { %446 = vmatprep.mubr.bf16.mxu0 %v315_v50  ;;  %v1479_v4 = vld [vmem:[%s1823_s1 + $0x1a0] sm:$0xff]   ;;  %v1480_v7 = vld [vmem:[%s1823_s1 + $0x168] sm:$0xff]   ;;  %v1485_v10 = vld [vmem:[%s1823_s1 + $0x1f0] sm:$0xff]  }
  0x24   : >> { %1312 = vmatpush3.bf16.msra.mxu0 %v1442_v20  ;;  %v1478_v5 = vld [vmem:[%s1823_s1 + $0x120] sm:$0xff]   ;;  %v1483_v8 = vld [vmem:[%s1823_s1 + $0x1a8] sm:$0xff]   ;;  %v1484_v11 = vld [vmem:[%s1823_s1 + $0x170] sm:$0xff]  }
  0x25   : >> { %1334 = vmatpush3.bf16.msra.mxu1 %v1443_v21  ;;  %1313 = vmatprep.subr.bf16.mxu0 %v1444_v22  ;;  %v1482_v9 = vld [vmem:[%s1823_s1 + $0x128] sm:$0xff]   ;;  %v1487_v12 = vld [vmem:[%s1823_s1 + $0x1b0] sm:$0xff]   ;;  %v1489_v14 = vld [vmem:[%s1823_s1 + $0x1f8] sm:$0xff]  }
  0x26   : >> { %1335 = vmatprep.subr.bf16.mxu1 %v1445_v23  ;;  %v1486_v13 = vld [vmem:[%s1823_s1 + $0x130] sm:$0xff]   ;;  %v1488_v15 = vld [vmem:[%s1823_s1 + $0x178] sm:$0xff]  }
  0x27   : >> { %v1491_v16 = vld [vmem:[%s1823_s1 + $0x1b8] sm:$0xff]   ;;  %v1195_v17 = vld [vmem:[%s1690_s10 + $0x10] sm:$0xff] }
  0x28   : >> { %1314 = vmatpush3.bf16.msra.mxu0 %v1446_v24  ;;  %v1247_v18 = vld [vmem:[%s1690_s10 + $0x18] sm:$0x11]  ;;  %v1229_v19 = vcombine.high %v1195_v17, %v1195_v17  ;;  %s1298_s10 = sshll.u32 %s1526_s5, 2  ;;  %s221_s5 = sadd.s32 1, %s1526_s5  }
  0x29   : >> { %1336 = vmatpush3.bf16.msra.mxu1 %v1447_v25  ;;  %1315 = vmatprep.subr.bf16.mxu0 %v1448_v26  ;;  %v1280_v20 = vcombine.low %v1195_v17, %v1247_v18  ;;  %v1281_v21 = vcombine.high %v1195_v17, %v1247_v18  ;;  %v1490_v22 = vld [vmem:[%s1823_s1 + $0x138] sm:$0xff]   ;;  %s974_s6 = scalar_lea.vmem %s1568_s21, %s1298_s10  ;;  %p218_p4 = scmp.ge.s32.totalorder %s221_s5, 8  }
  0x2a   : >> { %1337 = vmatprep.subr.bf16.mxu1 %v1449_v27  ;;  %v1228_v27 = vcombine.low %v1195_v17, %v1195_v17 }
  0x2b   : >> { %v827_v23 = vshrl.u32 %v1281_v21, 16  ;;  %v829_v24 = vshll.u32 %v1281_v21, 16  ;;  %v820_v25 = vshrl.u32 %v1280_v20, 16  ;;  %v822_v26 = vshll.u32 %v1280_v20, 16 }
  0x2c   : >> { %1316 = vmatpush3.bf16.msra.mxu0 %v1450_v28 }
  0x2d   : >> { %1338 = vmatpush3.bf16.msra.mxu1 %v1451_v29  ;;  %1317 = vmatprep.subr.bf16.mxu0 %v1452_v30  ;;  %v831_v28 = vrot.slane %v829_v24, 1  ;;  %v824_v29 = vrot.slane %v822_v26, 1 }
  0x2e   : >> { %1339 = vmatprep.subr.bf16.mxu1 %v1453_v31 }
  0x2f   : >> { %v832_v30 = vor.u32 %v831_v28, %v827_v23  ;;  %v825_v31 = vor.u32 %v824_v29, %v820_v25 }
  0x30   : >> { %1318 = vmatpush3.bf16.msra.mxu0 %v1454_v32 }
  0x31   : >> { %1340 = vmatpush3.bf16.msra.mxu1 %v1455_v33  ;;  %1347 = vmatprep.subr.bf16.mxu0 %v1460_v40 }
  0x32   : >> { %1369 = vmatprep.subr.bf16.mxu1 %v1461_v41 }
  0x33   : >> { %447 = vmatmul.mubr.bf16.vlgmr.msra.gmra.mrb[0].mxu0 %v308_v51 }
  0x34   : >> { %587 = vmatmul.mubr.bf16.vlgmr.msra.gmra.mrb[0].mxu1 %v1176_v39  ;;  %1348 = vmatpush3.bf16.msra.mxu0 %v1462_v48 }
  0x35   : >> { %1370 = vmatpush3.bf16.msra.mxu1 %v1463_v49  ;;  %1349 = vmatprep.subr.bf16.mxu0 %v1464_v53 }
  0x36   : >> { %1371 = vmatprep.subr.bf16.mxu1 %v1465_v52  ;;  %767 = vmatprep.mubr.bf16.mxu0 %v1229_v19 }
  0x37   : >> { %963 = vmatprep.mubr.bf16.mxu1 %v832_v30 }
  0x38   : >> { %1350 = vmatpush3.bf16.msra.mxu0 %v1466_v55 }
  0x39   : >> { %1372 = vmatpush3.bf16.msra.mxu1 %v1467_v54  ;;  %1351 = vmatprep.subr.bf16.mxu0 %v1468_v57 }
  0x3a   : >> { %1373 = vmatprep.subr.bf16.mxu1 %v1469_v56 }
  0x3c   : >> { %1352 = vmatpush3.bf16.msra.mxu0 %v1470_v59 }
  0x3d   : >> { %1374 = vmatpush3.bf16.msra.mxu1 %v1471_v58  ;;  %1353 = vmatprep.subr.bf16.mxu0 %v1472_v61 }
  0x3e   : >> { %1375 = vmatprep.subr.bf16.mxu1 %v1473_v60 }
  0x40   : >> { %1354 = vmatpush3.bf16.msra.mxu0 %v1474_v63 }
  0x41   : >> { %1376 = vmatpush3.bf16.msra.mxu1 %v1475_v62  ;;  %1355 = vmatprep.subr.bf16.mxu0 %v1476_v3 }
  0x42   : >> { %1377 = vmatprep.subr.bf16.mxu1 %v1477_v2 }
  0x44   : >> { %1356 = vmatpush3.bf16.msra.mxu0 %v1478_v5 }
  0x45   : >> { %1378 = vmatpush3.bf16.msra.mxu1 %v1479_v4  ;;  %1357 = vmatprep.subr.bf16.mxu0 %v1480_v7 }
  0x46   : >> { %1379 = vmatprep.subr.bf16.mxu1 %v1481_v6 }
  0x48   : >> { %1358 = vmatpush3.bf16.msra.mxu0 %v1482_v9 }
  0x49   : >> { %1380 = vmatpush3.bf16.msra.mxu1 %v1483_v8  ;;  %1359 = vmatprep.subr.bf16.mxu0 %v1484_v11 }
  0x4a   : >> { %1381 = vmatprep.subr.bf16.mxu1 %v1485_v10 }
  0x4c   : >> { %1360 = vmatpush3.bf16.msra.mxu0 %v1486_v13 }
  0x4d   : >> { %1382 = vmatpush3.bf16.msra.mxu1 %v1487_v12  ;;  %1361 = vmatprep.subr.bf16.mxu0 %v1488_v15 }
  0x4e   : >> { %1383 = vmatprep.subr.bf16.mxu1 %v1489_v14 }
  0x50   : >> { %1362 = vmatpush3.bf16.msra.mxu0 %v1490_v22 }
  0x51   : >> { %1384 = vmatpush3.bf16.msra.mxu1 %v1491_v16 }
  0x53   : >> { %768 = vmatmul.mubr.bf16.vlgmr.msra.gmra.mrb[4].mxu0 %v1228_v27 }
  0x54   : >> { %964 = vmatmul.mubr.bf16.vlgmr.msra.gmra.mrb[4].mxu1 %v825_v31 }
 0x106   : >> { %v1319_v37 = vpop.f32.mrb[0].mxu0 }
 0x107   : >> { %v1341_v32 = vpop.f32.mrb[0].mxu1  ;;  %v1320_v38 = vpop.f32.mrb[1].mxu0 }
 0x108   : >> { %v1342_v33 = vpop.f32.mrb[1].mxu1  ;;  %v1321_v39 = vadd.f32 %v1320_v38, %v1319_v37  ;;  %v1322_v40 = vpop.f32.mrb[2].mxu0 }
 0x109   : >> { %v1343_v34 = vadd.f32 %v1342_v33, %v1341_v32  ;;  %v1344_v35 = vpop.f32.mrb[2].mxu1  ;;  %v1323_v41 = vpop.f32.mrb[3].mxu0 }
 0x10a   : >> { %v1345_v36 = vpop.f32.mrb[3].mxu1 }
 0x10b   : >> { %v589_v42 = vadd.f32 %v1343_v34, %v1321_v39 }
 0x126   : >> { %v1363_v43 = vpop.f32.mrb[4].mxu0 }
 0x127   : >> { %v1385_v44 = vpop.f32.mrb[4].mxu1  ;;  %v1364_v45 = vpop.f32.mrb[5].mxu0 }
 0x128   : >> { %v1365_v46 = vadd.f32 %v1364_v45, %v1363_v43  ;;  %v1386_v47 = vpop.f32.mrb[5].mxu1  ;;  %v1366_v48 = vpop.f32.mrb[6].mxu0 }
 0x129   : >> { %v1387_v49 = vadd.f32 %v1386_v47, %v1385_v44  ;;  %v1388_v50 = vpop.f32.mrb[6].mxu1  ;;  %v1367_v51 = vpop.f32.mrb[7].mxu0 }
 0x12a   : >> { %v775_v52 = vadd.f32 %v1365_v46, %v589_v42  ;;  %v1389_v53 = vpop.f32.mrb[7].mxu1 }
 0x12c   : >> { %v971_v54 = vadd.f32 %v1387_v49, %v775_v52 }
 0x12e   : >> { %v972_v55 = vpack.c.bf16 %v971_v54, %v971_v54  ;;  %v976_v56 = vrot.slane %v971_v54, 4  ;;  %v983_v57 = vmul.f32 %v971_v54, %v971_v54 }
 0x130   : >> { %975 = vst [vmem:[%s974_s6] sm:$0xf] %v972_v55  ;;  %v977_v58 = vadd.f32 %v976_v56, %v971_v54  ;;  %v984_v59 = vrot.slane %v983_v57, 4 }
 0x132   : >> { %v978_v60 = vrot.slane %v977_v58, 2  ;;  %v985_v61 = vadd.f32 %v984_v59, %v983_v57 }
 0x134   : >> { %v979_v62 = vadd.f32 %v978_v60, %v977_v58  ;;  %v986_v63 = vrot.slane %v985_v61, 2 }
 0x136   : >> { %v980_v2 = vrot.slane %v979_v62, 1  ;;  %v987_v3 = vadd.f32 %v986_v63, %v985_v61 }
 0x138   : >> { %v981_v4 = vadd.f32 %v980_v2, %v979_v62  ;;  %v988_v5 = vrot.slane %v987_v3, 1  ;;  %220 = sbr.rel (!%p218_p4) target bundleno = 17 (0x11), region = 95 }
 0x13a   : >> { %v982_v6 = vadd.f32 %v1522_v1, %v981_v4   ;;  %v989_v7 = vadd.f32 %v988_v5, %v987_v3 }
 0x13c   : >> { %v990_v8 = vadd.f32 %v1518_v0, %v989_v7   ;;  %v1828_v1 = vmov %v982_v6  ;;  %991 = vst [vmem:[%s211_s24] sm:$0x1] (%p218_p4), %v982_v6 }
 0x13e   : >> { %v1827_v0 = vmov %v990_v8  ;;  %992 = vst [vmem:[%s214_s30] sm:$0x1] (%p218_p4), %v990_v8 }
 0x13f PF: > { %s15_s15 = sadd.s32 1, %s1514_s15  }
 0x140   : > { %p12_p5 = scmp.ge.s32.totalorder %s15_s15, 4  }
 0x142   :  { %14 = sbr.rel (!%p12_p5) target bundleno = 1 (0x1), region = 106 }

// kernel: discriminator_forward.6
= control target key start
LH: loop header
LB: loop body
LE: loop exit
PB: predicated region body
PF: predicated region fallthrough
CT: control target
= control target key end

     0   :  { %s3502_s15 = smov 0   ;;  %s4397_s0 = inlined_call_operand.vmem [shape: bf16[2,5,5,512], index: 0, kind: input, shape index: {}]   ;;  %s4398_s1 = inlined_call_operand.vmem [shape: bf16[4,512,256], index: 1, kind: input, shape index: {}]   ;;  %s4399_s2 = inlined_call_operand.vmem [shape: bf16[2,4,4,256], index: 2, kind: output, shape index: {0}]   ;;  %s4400_s3 = inlined_call_operand.vmem [shape: f32[2,1,256], index: 3, kind: output, shape index: {1}]   ;;  %s4401_s4 = inlined_call_operand.vmem [shape: f32[2,1,256], index: 4, kind: output, shape index: {2}]  }
   0x1 LB: > { %s2462_s16 = sadd.s32 4294967295, %s3454_s15   ;;  %p2466_p0 = scmp.ge.s32.totalorder %s3454_s15, 1  ;;  %s3454_s15 = sphi %s3502_s15, %s15_s15  }
   0x2   : > { %p167_p1 = scmp.lt.s32.totalorder %s3454_s15, 3 }
   0x4   : > { %p168_p2 = pnand %p2466_p0, %p167_p1 }
   0x5   : > { %p201_p3 = scmp.lt.s32.totalorder (!%p168_p2), %s2462_s16, 1  ;;  %v3530_v0 = vmov (!%p168_p2), 0.0   ;;  %v3532_v1 = vmov (!%p168_p2), 0.0   ;;  %v3534_v2 = vmov (!%p168_p2), 0.0   ;;  %v3536_v3 = vmov (!%p168_p2), 0.0   ;;  %s3538_s6 = smov (!%p168_p2), 0  }
   0x6   : > { %171 = sbr.rel (%p168_p2) target bundleno = 517 (0x205), region = 28 }
   0xd   : > { %s4407_s16 = smov (!%p201_p3, %s2462_s16), 1 }
   0xe   : > { %s2978_s17 = smul.u32 80, %s4407_s16  ;;  %s2949_s18 = sshll.u32 %s4407_s16, 4 }
   0xf   : > { %s3513_s21 = scalar_lea.vmem %s4399_s2, %s2949_s18  ;;  %s2470_s22 = sshll.u32 %s4407_s16, 1 }
  0x10   : > { %s3518_s25 = scalar_lea.vmem %s4397_s0, %s2978_s17  ;;  %s3523_s28 = scalar_lea.vmem %s4400_s3, %s2470_s22 }
  0x11   : > { %s3528_s5 = scalar_lea.vmem %s4401_s4, %s2470_s22 }
  0x12 LB: >> { %v3028_v4 = vld [vmem:[%s4398_s1 + $0x204] ss:$8 sps:$4 sm:$0xff]   ;;  %v3032_v6 = vld [vmem:[%s4398_s1 + $0x200] ss:$8 sps:$4 sm:$0xff]   ;;  %v3034_v8 = vld [vmem:[%s4398_s1 + $0x214] ss:$8 sps:$4 sm:$0xff]   ;;  %s3474_s6 = sphi %s3538_s6, %s224_s6   ;;  %v3470_v3 = vphi %v3536_v3, %v4405_v3   ;;  %v3466_v2 = vphi %v3534_v2, %v4404_v2   ;;  %v3462_v1 = vphi %v3532_v1, %v4403_v1   ;;  %v3458_v0 = vphi %v3530_v0, %v4402_v0  }
  0x13   : >> { %v3030_v5 = vld [vmem:[%s4398_s1 + $0x404] ss:$8 sps:$4 sm:$0xff]   ;;  %727 = vmatprep.subr.bf16.mxu1 %v3028_v4  ;;  %v3033_v7 = vld [vmem:[%s4398_s1 + $0x400] ss:$8 sps:$4 sm:$0xff]   ;;  %v3036_v9 = vld [vmem:[%s4398_s1 + $0x414] ss:$8 sps:$4 sm:$0xff]  }
  0x14   : >> { %1630 = vmatprep.subr.bf16.mxu0 %v3030_v5  ;;  %728 = vmatpush1.bf16.msra.mxu1 %v3032_v6  ;;  %v3038_v10 = vld [vmem:[%s4398_s1 + $0x210] ss:$8 sps:$4 sm:$0xff]   ;;  %v3040_v12 = vld [vmem:[%s4398_s1 + $0x224] ss:$8 sps:$4 sm:$0xff]   ;;  %v3044_v14 = vld [vmem:[%s4398_s1 + $0x220] ss:$8 sps:$4 sm:$0xff]  }
  0x15   : >> { %1631 = vmatpush1.bf16.msra.mxu0 %v3033_v7  ;;  %729 = vmatprep.subr.bf16.mxu1 %v3034_v8  ;;  %v3039_v11 = vld [vmem:[%s4398_s1 + $0x410] ss:$8 sps:$4 sm:$0xff]   ;;  %v3042_v13 = vld [vmem:[%s4398_s1 + $0x424] ss:$8 sps:$4 sm:$0xff]   ;;  %v3045_v15 = vld [vmem:[%s4398_s1 + $0x420] ss:$8 sps:$4 sm:$0xff]  }
  0x16   : >> { %1632 = vmatprep.subr.bf16.mxu0 %v3036_v9  ;;  %v3046_v16 = vld [vmem:[%s4398_s1 + $0x234] ss:$8 sps:$4 sm:$0xff]   ;;  %v3050_v18 = vld [vmem:[%s4398_s1 + $0x230] ss:$8 sps:$4 sm:$0xff]   ;;  %v3052_v20 = vld [vmem:[%s4398_s1 + $0x244] ss:$8 sps:$4 sm:$0xff]  }
  0x17   : >> { %v3048_v17 = vld [vmem:[%s4398_s1 + $0x434] ss:$8 sps:$4 sm:$0xff]   ;;  %v3051_v19 = vld [vmem:[%s4398_s1 + $0x430] ss:$8 sps:$4 sm:$0xff]   ;;  %v3054_v21 = vld [vmem:[%s4398_s1 + $0x444] ss:$8 sps:$4 sm:$0xff]  }
  0x18   : >> { %730 = vmatpush1.bf16.msra.mxu1 %v3038_v10  ;;  %v3056_v22 = vld [vmem:[%s4398_s1 + $0x240] ss:$8 sps:$4 sm:$0xff]   ;;  %v3058_v24 = vld [vmem:[%s4398_s1 + $0x254] ss:$8 sps:$4 sm:$0xff]   ;;  %v3062_v26 = vld [vmem:[%s4398_s1 + $0x250] ss:$8 sps:$4 sm:$0xff]  }
  0x19   : >> { %1633 = vmatpush1.bf16.msra.mxu0 %v3039_v11  ;;  %731 = vmatprep.subr.bf16.mxu1 %v3040_v12  ;;  %v3057_v23 = vld [vmem:[%s4398_s1 + $0x440] ss:$8 sps:$4 sm:$0xff]   ;;  %v3060_v25 = vld [vmem:[%s4398_s1 + $0x454] ss:$8 sps:$4 sm:$0xff]   ;;  %v3063_v27 = vld [vmem:[%s4398_s1 + $0x450] ss:$8 sps:$4 sm:$0xff]  }
  0x1a   : >> { %1634 = vmatprep.subr.bf16.mxu0 %v3042_v13  ;;  %v3064_v28 = vld [vmem:[%s4398_s1 + $0x264] ss:$8 sps:$4 sm:$0xff]   ;;  %v3068_v30 = vld [vmem:[%s4398_s1 + $0x260] ss:$8 sps:$4 sm:$0xff]   ;;  %v3070_v32 = vld [vmem:[%s4398_s1 + $0x274] ss:$8 sps:$4 sm:$0xff]  }
  0x1b   : >> { %v3066_v29 = vld [vmem:[%s4398_s1 + $0x464] ss:$8 sps:$4 sm:$0xff]   ;;  %v3069_v31 = vld [vmem:[%s4398_s1 + $0x460] ss:$8 sps:$4 sm:$0xff]   ;;  %v3072_v33 = vld [vmem:[%s4398_s1 + $0x474] ss:$8 sps:$4 sm:$0xff]  }
  0x1c   : >> { %732 = vmatpush1.bf16.msra.mxu1 %v3044_v14  ;;  %v3074_v34 = vld [vmem:[%s4398_s1 + $0x270] ss:$8 sps:$4 sm:$0xff]   ;;  %v3076_v36 = vld [vmem:[%s4398_s1 + $0x284] ss:$8 sps:$4 sm:$0xff]   ;;  %v3080_v38 = vld [vmem:[%s4398_s1 + $0x280] ss:$8 sps:$4 sm:$0xff]  }
  0x1d   : >> { %1635 = vmatpush1.bf16.msra.mxu0 %v3045_v15  ;;  %733 = vmatprep.subr.bf16.mxu1 %v3046_v16  ;;  %v3075_v35 = vld [vmem:[%s4398_s1 + $0x470] ss:$8 sps:$4 sm:$0xff]   ;;  %v3078_v37 = vld [vmem:[%s4398_s1 + $0x484] ss:$8 sps:$4 sm:$0xff]   ;;  %v3081_v39 = vld [vmem:[%s4398_s1 + $0x480] ss:$8 sps:$4 sm:$0xff]  }
  0x1e   : >> { %1636 = vmatprep.subr.bf16.mxu0 %v3048_v17  ;;  %v3082_v40 = vld [vmem:[%s4398_s1 + $0x294] ss:$8 sps:$4 sm:$0xff]   ;;  %v3086_v42 = vld [vmem:[%s4398_s1 + $0x290] ss:$8 sps:$4 sm:$0xff]   ;;  %v3088_v44 = vld [vmem:[%s4398_s1 + $0x2a4] ss:$8 sps:$4 sm:$0xff]  }
  0x1f   : >> { %v3084_v41 = vld [vmem:[%s4398_s1 + $0x494] ss:$8 sps:$4 sm:$0xff]   ;;  %v3087_v43 = vld [vmem:[%s4398_s1 + $0x490] ss:$8 sps:$4 sm:$0xff]   ;;  %s2950_s9 = sshll.u32 %s3474_s6, 4  ;;  %vm2244_vm0 = vcmask 1043456  }
  0x20   : >> { %734 = vmatpush1.bf16.msra.mxu1 %v3050_v18  ;;  %v3090_v45 = vld [vmem:[%s4398_s1 + $0x4a4] ss:$8 sps:$4 sm:$0xff]   ;;  %v3092_v46 = vld [vmem:[%s4398_s1 + $0x2a0] ss:$8 sps:$4 sm:$0xff]   ;;  %s3689_s17 = scalar_lea.vmem %s3518_s25, %s2950_s9  ;;  %v3094_v48 = vld [vmem:[%s4398_s1 + $0x2b4] ss:$8 sps:$4 sm:$0xff]  }
  0x21   : >> { %1637 = vmatpush1.bf16.msra.mxu0 %v3051_v19  ;;  %735 = vmatprep.subr.bf16.mxu1 %v3052_v20  ;;  %v3093_v47 = vld [vmem:[%s4398_s1 + $0x4a0] ss:$8 sps:$4 sm:$0xff]   ;;  %v3096_v49 = vld [vmem:[%s4398_s1 + $0x4b4] ss:$8 sps:$4 sm:$0xff]   ;;  %v3098_v50 = vld [vmem:[%s4398_s1 + $0x2b0] ss:$8 sps:$4 sm:$0xff]  }
  0x22   : >> { %1638 = vmatprep.subr.bf16.mxu0 %v3054_v21  ;;  %v298_v51 = vld [vmem:[%s3689_s17] sm:$0x77]  ;;  %v3099_v52 = vld [vmem:[%s4398_s1 + $0x4b0] ss:$8 sps:$4 sm:$0xff]   ;;  %v3106_v63 = vld [vmem:[%s4398_s1 + $0x2d4] ss:$8 sps:$4 sm:$0xff]  }
  0x23   : >> { %v2539_v53 = vcombine.high %v298_v51, %v298_v51  ;;  %v3100_v54 = vld [vmem:[%s4398_s1 + $0x2c4] ss:$8 sps:$4 sm:$0xff]   ;;  %v2675_v55 = vld [vmem:[%s3689_s17 + $0x10] sm:$0x33]  ;;  %v3104_v61 = vld [vmem:[%s4398_s1 + $0x2c0] ss:$8 sps:$4 sm:$0xff]   ;;  %v2538_v6 = vcombine.low %v298_v51, %v298_v51 }
  0x24   : >> { %736 = vmatpush1.bf16.msra.mxu1 %v3056_v22  ;;  %v3102_v56 = vld [vmem:[%s4398_s1 + $0x4c4] ss:$8 sps:$4 sm:$0xff]   ;;  %v2742_v59 = vcombine.high %v2675_v55, %v2675_v55  ;;  %v3105_v62 = vld [vmem:[%s4398_s1 + $0x4c0] ss:$8 sps:$4 sm:$0xff]   ;;  %v3108_v4 = vld [vmem:[%s4398_s1 + $0x4d4] ss:$8 sps:$4 sm:$0xff]   ;;  %v2741_v22 = vcombine.low %v2675_v55, %v2675_v55 }
  0x25   : >> { %1639 = vmatpush1.bf16.msra.mxu0 %v3057_v23  ;;  %737 = vmatprep.subr.bf16.mxu1 %v3058_v24  ;;  %v383_v57 = vshrl.u32 %v2539_v53, 16  ;;  %v385_v58 = vshll.u32 %v2539_v53, 16  ;;  %v3110_v7 = vld [vmem:[%s4398_s1 + $0x2d0] ss:$8 sps:$4 sm:$0xff]   ;;  %v3112_v9 = vld [vmem:[%s4398_s1 + $0x2e4] ss:$8 sps:$4 sm:$0xff]  }
  0x26   : >> { %1640 = vmatprep.subr.bf16.mxu0 %v3060_v25  ;;  %1662 = vmatprep.mubr.bf16.mxu0 %v2742_v59  ;;  %v3111_v8 = vld [vmem:[%s4398_s1 + $0x4d0] ss:$8 sps:$4 sm:$0xff]   ;;  %v3114_v10 = vld [vmem:[%s4398_s1 + $0x4e4] ss:$8 sps:$4 sm:$0xff]   ;;  %v378_v11 = vshll.u32 %v2538_v6, 16  ;;  %v376_v16 = vshrl.u32 %v2538_v6, 16 }
  0x27   : >> { %v387_v60 = vrot.slane %v385_v58, 1  ;;  %v3116_v12 = vld [vmem:[%s4398_s1 + $0x2e0] ss:$8 sps:$4 sm:$0xff]   ;;  %v3118_v14 = vld [vmem:[%s4398_s1 + $0x2f4] ss:$8 sps:$4 sm:$0xff]   ;;  %s2951_s18 = sshll.u32 %s3474_s6, 2 }
  0x28   : >> { %738 = vmatpush1.bf16.msra.mxu1 %v3062_v26  ;;  %v3117_v13 = vld [vmem:[%s4398_s1 + $0x4e0] ss:$8 sps:$4 sm:$0xff]   ;;  %v3120_v15 = vld [vmem:[%s4398_s1 + $0x4f4] ss:$8 sps:$4 sm:$0xff]   ;;  %v380_v17 = vrot.slane %v378_v11, 1  ;;  %s2242_s19 = scalar_lea.vmem %s3513_s21, %s2951_s18  ;;  %s224_s6 = sadd.s32 1, %s3474_s6  }
  0x29   : >> { %1641 = vmatpush1.bf16.msra.mxu0 %v3063_v27  ;;  %739 = vmatprep.subr.bf16.mxu1 %v3064_v28  ;;  %v388_v5 = vor.u32 %v387_v60, %v383_v57  ;;  %v3122_v18 = vld [vmem:[%s4398_s1 + $0x2f0] ss:$8 sps:$4 sm:$0xff]   ;;  %v3128_v20 = vld [vmem:[%s4398_s1 + $0x304] ss:$8 sps:$4 sm:$0xff]   ;;  %v3126_v24 = vld [vmem:[%s4398_s1 + $0x300] ss:$8 sps:$4 sm:$0xff]  }
  0x2a   : >> { %1642 = vmatprep.subr.bf16.mxu0 %v3066_v29  ;;  %v3123_v19 = vld [vmem:[%s4398_s1 + $0x4f0] ss:$8 sps:$4 sm:$0xff]   ;;  %v3133_v21 = vld [vmem:[%s4398_s1 + $0x504] ss:$8 sps:$4 sm:$0xff]   ;;  %v381_v23 = vor.u32 %v380_v17, %v376_v16  ;;  %v3131_v25 = vld [vmem:[%s4398_s1 + $0x500] ss:$8 sps:$4 sm:$0xff]  }
  0x2b   : >> { %759 = vmatprep.mubr.bf16.mxu1 %v388_v5  ;;  %v3136_v26 = vld [vmem:[%s4398_s1 + $0x314] ss:$8 sps:$4 sm:$0xff]   ;;  %v3134_v28 = vld [vmem:[%s4398_s1 + $0x310] ss:$8 sps:$4 sm:$0xff]   ;;  %v3179_v5 = vld [vmem:[%s4398_s1 + $0x580] ss:$8 sps:$4 sm:$0xff]  }
  0x2c   : >> { %740 = vmatpush1.bf16.msra.mxu1 %v3068_v30  ;;  %v3139_v27 = vld [vmem:[%s4398_s1 + $0x514] ss:$8 sps:$4 sm:$0xff]   ;;  %v3137_v29 = vld [vmem:[%s4398_s1 + $0x510] ss:$8 sps:$4 sm:$0xff]   ;;  %v3142_v30 = vld [vmem:[%s4398_s1 + $0x324] ss:$8 sps:$4 sm:$0xff]  }
  0x2d   : >> { %1643 = vmatpush1.bf16.msra.mxu0 %v3069_v31  ;;  %741 = vmatprep.subr.bf16.mxu1 %v3070_v32  ;;  %v3145_v31 = vld [vmem:[%s4398_s1 + $0x524] ss:$8 sps:$4 sm:$0xff]   ;;  %v3140_v32 = vld [vmem:[%s4398_s1 + $0x320] ss:$8 sps:$4 sm:$0xff]   ;;  %v3840_v51 = vld [vmem:[%s3689_s17 + $0x18] sm:$0x33] }
  0x2e   : >> { %1644 = vmatprep.subr.bf16.mxu0 %v3072_v33  ;;  %v3143_v33 = vld [vmem:[%s4398_s1 + $0x520] ss:$8 sps:$4 sm:$0xff]   ;;  %v2744_v53 = vcombine.high %v3840_v51, %v3840_v51  ;;  %v3175_v55 = vld [vmem:[%s4398_s1 + $0x574] ss:$8 sps:$4 sm:$0xff]   ;;  %v3170_v59 = vld [vmem:[%s4398_s1 + $0x370] ss:$8 sps:$4 sm:$0xff]  }
  0x2f   : >> { %v3173_v60 = vld [vmem:[%s4398_s1 + $0x570] ss:$8 sps:$4 sm:$0xff]   ;;  %v3184_v6 = vld [vmem:[%s4398_s1 + $0x394] ss:$8 sps:$4 sm:$0xff]   ;;  %v3193_v11 = vld [vmem:[%s4398_s1 + $0x5a4] ss:$8 sps:$4 sm:$0xff]  }
  0x30   : >> { %742 = vmatpush1.bf16.msra.mxu1 %v3074_v34  ;;  %v3148_v34 = vld [vmem:[%s4398_s1 + $0x334] ss:$8 sps:$4 sm:$0xff]   ;;  %v3194_v16 = vld [vmem:[%s4398_s1 + $0x3b0] ss:$8 sps:$4 sm:$0xff]   ;;  %p221_p4 = scmp.ge.s32.totalorder %s224_s6, 4  }
  0x31   : >> { %1645 = vmatpush1.bf16.msra.mxu0 %v3075_v35  ;;  %743 = vmatprep.subr.bf16.mxu1 %v3076_v36  ;;  %v3151_v35 = vld [vmem:[%s4398_s1 + $0x534] ss:$8 sps:$4 sm:$0xff]   ;;  %v3146_v36 = vld [vmem:[%s4398_s1 + $0x330] ss:$8 sps:$4 sm:$0xff]  }
  0x32   : >> { %1646 = vmatprep.subr.bf16.mxu0 %v3078_v37  ;;  %v3149_v37 = vld [vmem:[%s4398_s1 + $0x530] ss:$8 sps:$4 sm:$0xff]  }
  0x33   : >> { %v3197_v17 = vld [vmem:[%s4398_s1 + $0x5b0] ss:$8 sps:$4 sm:$0xff]  }
  0x34   : >> { %744 = vmatpush1.bf16.msra.mxu1 %v3080_v38  ;;  %v3154_v38 = vld [vmem:[%s4398_s1 + $0x344] ss:$8 sps:$4 sm:$0xff]  }
  0x35   : >> { %1647 = vmatpush1.bf16.msra.mxu0 %v3081_v39  ;;  %745 = vmatprep.subr.bf16.mxu1 %v3082_v40  ;;  %v3157_v39 = vld [vmem:[%s4398_s1 + $0x544] ss:$8 sps:$4 sm:$0xff]   ;;  %v3152_v40 = vld [vmem:[%s4398_s1 + $0x340] ss:$8 sps:$4 sm:$0xff]  }
  0x36   : >> { %1648 = vmatprep.subr.bf16.mxu0 %v3084_v41  ;;  %v3155_v41 = vld [vmem:[%s4398_s1 + $0x540] ss:$8 sps:$4 sm:$0xff]  }
  0x38   : >> { %746 = vmatpush1.bf16.msra.mxu1 %v3086_v42  ;;  %v3160_v42 = vld [vmem:[%s4398_s1 + $0x354] ss:$8 sps:$4 sm:$0xff]  }
  0x39   : >> { %1649 = vmatpush1.bf16.msra.mxu0 %v3087_v43  ;;  %747 = vmatprep.subr.bf16.mxu1 %v3088_v44  ;;  %v3163_v43 = vld [vmem:[%s4398_s1 + $0x554] ss:$8 sps:$4 sm:$0xff]   ;;  %v3158_v44 = vld [vmem:[%s4398_s1 + $0x350] ss:$8 sps:$4 sm:$0xff]  }
  0x3a   : >> { %1650 = vmatprep.subr.bf16.mxu0 %v3090_v45  ;;  %v3161_v45 = vld [vmem:[%s4398_s1 + $0x550] ss:$8 sps:$4 sm:$0xff]  }
  0x3c   : >> { %748 = vmatpush1.bf16.msra.mxu1 %v3092_v46  ;;  %v3166_v46 = vld [vmem:[%s4398_s1 + $0x364] ss:$8 sps:$4 sm:$0xff]  }
  0x3d   : >> { %1651 = vmatpush1.bf16.msra.mxu0 %v3093_v47  ;;  %749 = vmatprep.subr.bf16.mxu1 %v3094_v48  ;;  %v3169_v47 = vld [vmem:[%s4398_s1 + $0x564] ss:$8 sps:$4 sm:$0xff]  }
  0x3e   : >> { %1652 = vmatprep.subr.bf16.mxu0 %v3096_v49  ;;  %v3832_v48 = vld [vmem:[%s3689_s17 + $0x8] sm:$0x77] }
  0x3f   : >> { %v3164_v49 = vld [vmem:[%s4398_s1 + $0x360] ss:$8 sps:$4 sm:$0xff]  }
  0x40   : >> { %750 = vmatpush1.bf16.msra.mxu1 %v3098_v50  ;;  %v2541_v50 = vcombine.high %v3832_v48, %v3832_v48 }
  0x41   : >> { %1653 = vmatpush1.bf16.msra.mxu0 %v3099_v52  ;;  %751 = vmatprep.subr.bf16.mxu1 %v3100_v54  ;;  %v3167_v52 = vld [vmem:[%s4398_s1 + $0x560] ss:$8 sps:$4 sm:$0xff]   ;;  %v3172_v54 = vld [vmem:[%s4398_s1 + $0x374] ss:$8 sps:$4 sm:$0xff]  }
  0x42   : >> { %1654 = vmatprep.subr.bf16.mxu0 %v3102_v56  ;;  %v397_v56 = vshrl.u32 %v2541_v50, 16  ;;  %v399_v57 = vshll.u32 %v2541_v50, 16  ;;  %v3989_v50 = vld [vmem:[%s3689_s17 + $0x10] sm:$0x77] }
  0x44   : >> { %752 = vmatpush1.bf16.msra.mxu1 %v3104_v61  ;;  %v401_v58 = vrot.slane %v399_v57, 1  ;;  %v3178_v61 = vld [vmem:[%s4398_s1 + $0x384] ss:$8 sps:$4 sm:$0xff]   ;;  %v3243_v57 = vld [vmem:[%s4398_s1 + $0x620] ss:$8 sps:$4 sm:$0xff]  }
  0x45   : >> { %1655 = vmatpush1.bf16.msra.mxu0 %v3105_v62  ;;  %753 = vmatprep.subr.bf16.mxu1 %v3106_v63  ;;  %v3181_v62 = vld [vmem:[%s4398_s1 + $0x584] ss:$8 sps:$4 sm:$0xff]  }
  0x46   : >> { %1656 = vmatprep.subr.bf16.mxu0 %v3108_v4  ;;  %v402_v63 = vor.u32 %v401_v58, %v397_v56  ;;  %v3176_v4 = vld [vmem:[%s4398_s1 + $0x380] ss:$8 sps:$4 sm:$0xff]   ;;  %v3248_v58 = vld [vmem:[%s4398_s1 + $0x34] ss:$8 sps:$4 sm:$0xff]  }
  0x47   : >> { %v3240_v56 = vld [vmem:[%s4398_s1 + $0x20] ss:$8 sps:$4 sm:$0xff]  }
  0x48   : >> { %754 = vmatpush1.bf16.msra.mxu1 %v3110_v7  ;;  %v3187_v7 = vld [vmem:[%s4398_s1 + $0x594] ss:$8 sps:$4 sm:$0xff]  }
  0x49   : >> { %1657 = vmatpush1.bf16.msra.mxu0 %v3111_v8  ;;  %755 = vmatprep.subr.bf16.mxu1 %v3112_v9  ;;  %v3182_v8 = vld [vmem:[%s4398_s1 + $0x390] ss:$8 sps:$4 sm:$0xff]  }
  0x4a   : >> { %1658 = vmatprep.subr.bf16.mxu0 %v3114_v10  ;;  %v3185_v9 = vld [vmem:[%s4398_s1 + $0x590] ss:$8 sps:$4 sm:$0xff]   ;;  %v3190_v10 = vld [vmem:[%s4398_s1 + $0x3a4] ss:$8 sps:$4 sm:$0xff]  }
  0x4c   : >> { %756 = vmatpush1.bf16.msra.mxu1 %v3116_v12  ;;  %v3188_v12 = vld [vmem:[%s4398_s1 + $0x3a0] ss:$8 sps:$4 sm:$0xff]  }
  0x4d   : >> { %1659 = vmatpush1.bf16.msra.mxu0 %v3117_v13  ;;  %757 = vmatprep.subr.bf16.mxu1 %v3118_v14  ;;  %v3191_v13 = vld [vmem:[%s4398_s1 + $0x5a0] ss:$8 sps:$4 sm:$0xff]   ;;  %v3196_v14 = vld [vmem:[%s4398_s1 + $0x3b4] ss:$8 sps:$4 sm:$0xff]  }
  0x4e   : >> { %1660 = vmatprep.subr.bf16.mxu0 %v3120_v15  ;;  %v3199_v15 = vld [vmem:[%s4398_s1 + $0x5b4] ss:$8 sps:$4 sm:$0xff]  }
  0x50   : >> { %758 = vmatpush1.bf16.msra.mxu1 %v3122_v18  ;;  %v3202_v18 = vld [vmem:[%s4398_s1 + $0x3c4] ss:$8 sps:$4 sm:$0xff]  }
  0x51   : >> { %1661 = vmatpush1.bf16.msra.mxu0 %v3123_v19  ;;  %768 = vmatprep.subr.bf16.mxu1 %v3128_v20  ;;  %v3205_v19 = vld [vmem:[%s4398_s1 + $0x5c4] ss:$8 sps:$4 sm:$0xff]   ;;  %v3200_v20 = vld [vmem:[%s4398_s1 + $0x3c0] ss:$8 sps:$4 sm:$0xff]  }
  0x52   : >> { %1671 = vmatprep.subr.bf16.mxu0 %v3133_v21  ;;  %v3203_v21 = vld [vmem:[%s4398_s1 + $0x5c0] ss:$8 sps:$4 sm:$0xff]  }
  0x53   : >> { %760 = vmatmul.mubr.bf16.vlgmr.msra.gmra.mrb[0].mxu1 %v381_v23  ;;  %v3211_v23 = vld [vmem:[%s4398_s1 + $0x5d4] ss:$8 sps:$4 sm:$0xff]  }
  0x54   : >> { %1663 = vmatmul.mubr.bf16.vlgmr.msra.gmra.mrb[0].mxu0 %v2741_v22  ;;  %769 = vmatpush1.bf16.msra.mxu1 %v3126_v24  ;;  %v3208_v22 = vld [vmem:[%s4398_s1 + $0x3d4] ss:$8 sps:$4 sm:$0xff]   ;;  %v2540_v24 = vcombine.low %v3832_v48, %v3832_v48  ;;  %v3237_v48 = vld [vmem:[%s4398_s1 + $0x610] ss:$8 sps:$4 sm:$0xff]  }
  0x55   : >> { %1672 = vmatpush1.bf16.msra.mxu0 %v3131_v25  ;;  %770 = vmatprep.subr.bf16.mxu1 %v3136_v26  ;;  %v3206_v25 = vld [vmem:[%s4398_s1 + $0x3d0] ss:$8 sps:$4 sm:$0xff]  }
  0x56   : >> { %1673 = vmatprep.subr.bf16.mxu0 %v3139_v27  ;;  %1703 = vmatprep.mubr.bf16.mxu0 %v2744_v53  ;;  %v3209_v26 = vld [vmem:[%s4398_s1 + $0x5d0] ss:$8 sps:$4 sm:$0xff]   ;;  %v3214_v27 = vld [vmem:[%s4398_s1 + $0x3e4] ss:$8 sps:$4 sm:$0xff]  }
  0x57   : >> { %800 = vmatprep.mubr.bf16.mxu1 %v402_v63  ;;  %v3245_v53 = vld [vmem:[%s4398_s1 + $0x624] ss:$8 sps:$4 sm:$0xff]   ;;  %v3249_v63 = vld [vmem:[%s4398_s1 + $0x630] ss:$8 sps:$4 sm:$0xff]  }
  0x58   : >> { %771 = vmatpush1.bf16.msra.mxu1 %v3134_v28  ;;  %v3217_v28 = vld [vmem:[%s4398_s1 + $0x5e4] ss:$8 sps:$4 sm:$0xff]  }
  0x59   : >> { %1674 = vmatpush1.bf16.msra.mxu0 %v3137_v29  ;;  %772 = vmatprep.subr.bf16.mxu1 %v3142_v30  ;;  %v392_v29 = vshll.u32 %v2540_v24, 16  ;;  %v3212_v30 = vld [vmem:[%s4398_s1 + $0x3e0] ss:$8 sps:$4 sm:$0xff]  }
  0x5a   : >> { %1675 = vmatprep.subr.bf16.mxu0 %v3145_v31  ;;  %v3215_v31 = vld [vmem:[%s4398_s1 + $0x5e0] ss:$8 sps:$4 sm:$0xff]  }
  0x5c   : >> { %773 = vmatpush1.bf16.msra.mxu1 %v3140_v32  ;;  %v3220_v32 = vld [vmem:[%s4398_s1 + $0x3f4] ss:$8 sps:$4 sm:$0xff]  }
  0x5d   : >> { %1676 = vmatpush1.bf16.msra.mxu0 %v3143_v33  ;;  %774 = vmatprep.subr.bf16.mxu1 %v3148_v34  ;;  %v3223_v33 = vld [vmem:[%s4398_s1 + $0x5f4] ss:$8 sps:$4 sm:$0xff]   ;;  %v390_v34 = vshrl.u32 %v2540_v24, 16 }
  0x5e   : >> { %1677 = vmatprep.subr.bf16.mxu0 %v3151_v35  ;;  %v394_v35 = vrot.slane %v392_v29, 1  ;;  %v3284_v24 = vld [vmem:[%s4398_s1 + $0x94] ss:$8 sps:$4 sm:$0xff]   ;;  %v3293_v29 = vld [vmem:[%s4398_s1 + $0x6a4] ss:$8 sps:$4 sm:$0xff]  }
  0x60   : >> { %775 = vmatpush1.bf16.msra.mxu1 %v3146_v36  ;;  %v3218_v36 = vld [vmem:[%s4398_s1 + $0x3f0] ss:$8 sps:$4 sm:$0xff]  }
  0x61   : >> { %1678 = vmatpush1.bf16.msra.mxu0 %v3149_v37  ;;  %776 = vmatprep.subr.bf16.mxu1 %v3154_v38  ;;  %v3221_v37 = vld [vmem:[%s4398_s1 + $0x5f0] ss:$8 sps:$4 sm:$0xff]   ;;  %v3228_v38 = vld [vmem:[%s4398_s1 + $0x4] ss:$8 sps:$4 sm:$0xff]  }
  0x62   : >> { %1679 = vmatprep.subr.bf16.mxu0 %v3157_v39  ;;  %v3233_v39 = vld [vmem:[%s4398_s1 + $0x604] ss:$8 sps:$4 sm:$0xff]  }
  0x64   : >> { %777 = vmatpush1.bf16.msra.mxu1 %v3152_v40  ;;  %v2743_v40 = vcombine.low %v3840_v51, %v3840_v51  ;;  %v3242_v51 = vld [vmem:[%s4398_s1 + $0x24] ss:$8 sps:$4 sm:$0xff]  }
  0x65   : >> { %1680 = vmatpush1.bf16.msra.mxu0 %v3155_v41  ;;  %778 = vmatprep.subr.bf16.mxu1 %v3160_v42  ;;  %v395_v41 = vor.u32 %v394_v35, %v390_v34  ;;  %v3226_v42 = vld [vmem:[%s4398_s1] ss:$8 sps:$4 sm:$0xff]   ;;  %v3294_v34 = vld [vmem:[%s4398_s1 + $0xb0] ss:$8 sps:$4 sm:$0xff]  }
  0x66   : >> { %1681 = vmatprep.subr.bf16.mxu0 %v3163_v43  ;;  %v3231_v43 = vld [vmem:[%s4398_s1 + $0x600] ss:$8 sps:$4 sm:$0xff]   ;;  %v3297_v35 = vld [vmem:[%s4398_s1 + $0x6b0] ss:$8 sps:$4 sm:$0xff]  }
  0x68   : >> { %779 = vmatpush1.bf16.msra.mxu1 %v3158_v44  ;;  %v3236_v44 = vld [vmem:[%s4398_s1 + $0x14] ss:$8 sps:$4 sm:$0xff]  }
  0x69   : >> { %1682 = vmatpush1.bf16.msra.mxu0 %v3161_v45  ;;  %780 = vmatprep.subr.bf16.mxu1 %v3166_v46  ;;  %v3239_v45 = vld [vmem:[%s4398_s1 + $0x614] ss:$8 sps:$4 sm:$0xff]   ;;  %v3978_v46 = vld [vmem:[%s3689_s17] sm:$0x33] }
  0x6a   : >> { %1683 = vmatprep.subr.bf16.mxu0 %v3169_v47  ;;  %v3234_v47 = vld [vmem:[%s4398_s1 + $0x10] ss:$8 sps:$4 sm:$0xff]  }
  0x6c   : >> { %781 = vmatpush1.bf16.msra.mxu1 %v3164_v49  ;;  %v2607_v49 = vcombine.high %v3978_v46, %v3978_v46 }
  0x6d   : >> { %1684 = vmatpush1.bf16.msra.mxu0 %v3167_v52  ;;  %782 = vmatprep.subr.bf16.mxu1 %v3172_v54  ;;  %v2876_v52 = vcombine.high %v3989_v50, %v3989_v50 }
  0x6e   : >> { %1685 = vmatprep.subr.bf16.mxu0 %v3175_v55 }
  0x6f   : >> { %v1799_v54 = vshrl.u32 %v2876_v52, 16  ;;  %v1801_v55 = vshll.u32 %v2876_v52, 16  ;;  %v3315_v52 = vld [vmem:[%s4398_s1 + $0x6e0] ss:$8 sps:$4 sm:$0xff]  }
  0x70   : >> { %783 = vmatpush1.bf16.msra.mxu1 %v3170_v59 }
  0x71   : >> { %1686 = vmatpush1.bf16.msra.mxu0 %v3173_v60  ;;  %784 = vmatprep.subr.bf16.mxu1 %v3178_v61  ;;  %v1803_v59 = vrot.slane %v1801_v55, 1  ;;  %v3251_v60 = vld [vmem:[%s4398_s1 + $0x634] ss:$8 sps:$4 sm:$0xff]  }
  0x72   : >> { %1687 = vmatprep.subr.bf16.mxu0 %v3181_v62  ;;  %v3246_v62 = vld [vmem:[%s4398_s1 + $0x30] ss:$8 sps:$4 sm:$0xff]  }
  0x73   : >> { %v1804_v61 = vor.u32 %v1803_v59, %v1799_v54  ;;  %v3323_v54 = vld [vmem:[%s4398_s1 + $0x6f4] ss:$8 sps:$4 sm:$0xff]   ;;  %v3321_v59 = vld [vmem:[%s4398_s1 + $0x6f0] ss:$8 sps:$4 sm:$0xff]  }
  0x74   : >> { %785 = vmatpush1.bf16.msra.mxu1 %v3176_v4  ;;  %v3254_v4 = vld [vmem:[%s4398_s1 + $0x44] ss:$8 sps:$4 sm:$0xff]  }
  0x75   : >> { %1688 = vmatpush1.bf16.msra.mxu0 %v3179_v5  ;;  %786 = vmatprep.subr.bf16.mxu1 %v3184_v6  ;;  %v3257_v5 = vld [vmem:[%s4398_s1 + $0x644] ss:$8 sps:$4 sm:$0xff]   ;;  %v3252_v6 = vld [vmem:[%s4398_s1 + $0x40] ss:$8 sps:$4 sm:$0xff]  }
  0x76   : >> { %1689 = vmatprep.subr.bf16.mxu0 %v3187_v7  ;;  %v3255_v7 = vld [vmem:[%s4398_s1 + $0x640] ss:$8 sps:$4 sm:$0xff]  }
  0x78   : >> { %787 = vmatpush1.bf16.msra.mxu1 %v3182_v8  ;;  %v3260_v8 = vld [vmem:[%s4398_s1 + $0x54] ss:$8 sps:$4 sm:$0xff]  }
  0x79   : >> { %1690 = vmatpush1.bf16.msra.mxu0 %v3185_v9  ;;  %788 = vmatprep.subr.bf16.mxu1 %v3190_v10  ;;  %v3263_v9 = vld [vmem:[%s4398_s1 + $0x654] ss:$8 sps:$4 sm:$0xff]   ;;  %v3258_v10 = vld [vmem:[%s4398_s1 + $0x50] ss:$8 sps:$4 sm:$0xff]  }
  0x7a   : >> { %1691 = vmatprep.subr.bf16.mxu0 %v3193_v11  ;;  %v3261_v11 = vld [vmem:[%s4398_s1 + $0x650] ss:$8 sps:$4 sm:$0xff]  }
  0x7c   : >> { %789 = vmatpush1.bf16.msra.mxu1 %v3188_v12  ;;  %v3266_v12 = vld [vmem:[%s4398_s1 + $0x64] ss:$8 sps:$4 sm:$0xff]  }
  0x7d   : >> { %1692 = vmatpush1.bf16.msra.mxu0 %v3191_v13  ;;  %790 = vmatprep.subr.bf16.mxu1 %v3196_v14  ;;  %v3269_v13 = vld [vmem:[%s4398_s1 + $0x664] ss:$8 sps:$4 sm:$0xff]   ;;  %v3264_v14 = vld [vmem:[%s4398_s1 + $0x60] ss:$8 sps:$4 sm:$0xff]  }
  0x7e   : >> { %1693 = vmatprep.subr.bf16.mxu0 %v3199_v15  ;;  %v3267_v15 = vld [vmem:[%s4398_s1 + $0x660] ss:$8 sps:$4 sm:$0xff]  }
  0x80   : >> { %791 = vmatpush1.bf16.msra.mxu1 %v3194_v16  ;;  %v3272_v16 = vld [vmem:[%s4398_s1 + $0x74] ss:$8 sps:$4 sm:$0xff]  }
  0x81   : >> { %1694 = vmatpush1.bf16.msra.mxu0 %v3197_v17  ;;  %792 = vmatprep.subr.bf16.mxu1 %v3202_v18  ;;  %v3275_v17 = vld [vmem:[%s4398_s1 + $0x674] ss:$8 sps:$4 sm:$0xff]   ;;  %v3270_v18 = vld [vmem:[%s4398_s1 + $0x70] ss:$8 sps:$4 sm:$0xff]  }
  0x82   : >> { %1695 = vmatprep.subr.bf16.mxu0 %v3205_v19  ;;  %v3273_v19 = vld [vmem:[%s4398_s1 + $0x670] ss:$8 sps:$4 sm:$0xff]  }
  0x84   : >> { %793 = vmatpush1.bf16.msra.mxu1 %v3200_v20  ;;  %v3278_v20 = vld [vmem:[%s4398_s1 + $0x84] ss:$8 sps:$4 sm:$0xff]  }
  0x85   : >> { %1696 = vmatpush1.bf16.msra.mxu0 %v3203_v21  ;;  %794 = vmatprep.subr.bf16.mxu1 %v3208_v22  ;;  %v3281_v21 = vld [vmem:[%s4398_s1 + $0x684] ss:$8 sps:$4 sm:$0xff]   ;;  %v3276_v22 = vld [vmem:[%s4398_s1 + $0x80] ss:$8 sps:$4 sm:$0xff]  }
  0x86   : >> { %1697 = vmatprep.subr.bf16.mxu0 %v3211_v23  ;;  %v3279_v23 = vld [vmem:[%s4398_s1 + $0x680] ss:$8 sps:$4 sm:$0xff]  }
  0x88   : >> { %795 = vmatpush1.bf16.msra.mxu1 %v3206_v25  ;;  %v3287_v25 = vld [vmem:[%s4398_s1 + $0x694] ss:$8 sps:$4 sm:$0xff]  }
  0x89   : >> { %1698 = vmatpush1.bf16.msra.mxu0 %v3209_v26  ;;  %796 = vmatprep.subr.bf16.mxu1 %v3214_v27  ;;  %v3282_v26 = vld [vmem:[%s4398_s1 + $0x90] ss:$8 sps:$4 sm:$0xff]  }
  0x8a   : >> { %1699 = vmatprep.subr.bf16.mxu0 %v3217_v28  ;;  %v3285_v27 = vld [vmem:[%s4398_s1 + $0x690] ss:$8 sps:$4 sm:$0xff]   ;;  %v3290_v28 = vld [vmem:[%s4398_s1 + $0xa4] ss:$8 sps:$4 sm:$0xff]  }
  0x8c   : >> { %797 = vmatpush1.bf16.msra.mxu1 %v3212_v30  ;;  %v3288_v30 = vld [vmem:[%s4398_s1 + $0xa0] ss:$8 sps:$4 sm:$0xff]  }
  0x8d   : >> { %1700 = vmatpush1.bf16.msra.mxu0 %v3215_v31  ;;  %798 = vmatprep.subr.bf16.mxu1 %v3220_v32  ;;  %v3291_v31 = vld [vmem:[%s4398_s1 + $0x6a0] ss:$8 sps:$4 sm:$0xff]   ;;  %v3296_v32 = vld [vmem:[%s4398_s1 + $0xb4] ss:$8 sps:$4 sm:$0xff]  }
  0x8e   : >> { %1701 = vmatprep.subr.bf16.mxu0 %v3223_v33  ;;  %v3299_v33 = vld [vmem:[%s4398_s1 + $0x6b4] ss:$8 sps:$4 sm:$0xff]  }
  0x90   : >> { %799 = vmatpush1.bf16.msra.mxu1 %v3218_v36  ;;  %v3302_v36 = vld [vmem:[%s4398_s1 + $0xc4] ss:$8 sps:$4 sm:$0xff]  }
  0x91   : >> { %1702 = vmatpush1.bf16.msra.mxu0 %v3221_v37  ;;  %1143 = vmatprep.subr.bf16.mxu1 %v3228_v38  ;;  %v3305_v37 = vld [vmem:[%s4398_s1 + $0x6c4] ss:$8 sps:$4 sm:$0xff]   ;;  %v3300_v38 = vld [vmem:[%s4398_s1 + $0xc0] ss:$8 sps:$4 sm:$0xff]  }
  0x92   : >> { %2143 = vmatprep.subr.bf16.mxu0 %v3233_v39  ;;  %v3303_v39 = vld [vmem:[%s4398_s1 + $0x6c0] ss:$8 sps:$4 sm:$0xff]  }
  0x93   : >> { %801 = vmatmul.mubr.bf16.vlgmr.msra.gmra.mrb[0].mxu1 %v395_v41  ;;  %v3311_v41 = vld [vmem:[%s4398_s1 + $0x6d4] ss:$8 sps:$4 sm:$0xff]  }
  0x94   : >> { %1704 = vmatmul.mubr.bf16.vlgmr.msra.gmra.mrb[0].mxu0 %v2743_v40  ;;  %1144 = vmatpush1.bf16.msra.mxu1 %v3226_v42  ;;  %v3308_v40 = vld [vmem:[%s4398_s1 + $0xd4] ss:$8 sps:$4 sm:$0xff]   ;;  %v2875_v42 = vcombine.low %v3989_v50, %v3989_v50 }
  0x95   : >> { %2144 = vmatpush1.bf16.msra.mxu0 %v3231_v43  ;;  %1145 = vmatprep.subr.bf16.mxu1 %v3236_v44  ;;  %v4134_v43 = vld [vmem:[%s3689_s17 + $0x18] sm:$0x77] }
  0x96   : >> { %2145 = vmatprep.subr.bf16.mxu0 %v3239_v45  ;;  %1175 = vmatprep.mubr.bf16.mxu1 %v2607_v49  ;;  %v3306_v44 = vld [vmem:[%s4398_s1 + $0xd0] ss:$8 sps:$4 sm:$0xff]   ;;  %v2878_v49 = vcombine.high %v4134_v43, %v4134_v43  ;;  %v1794_v50 = vshll.u32 %v2875_v42, 16 }
  0x97   : >> { %2175 = vmatprep.mubr.bf16.mxu0 %v1804_v61  ;;  %v3309_v45 = vld [vmem:[%s4398_s1 + $0x6d0] ss:$8 sps:$4 sm:$0xff]   ;;  %v3333_v61 = vld [vmem:[%s4398_s1 + $0x704] ss:$8 sps:$4 sm:$0xff]  }
  0x98   : >> { %1146 = vmatpush1.bf16.msra.mxu1 %v3234_v47  ;;  %v3314_v47 = vld [vmem:[%s4398_s1 + $0xe4] ss:$8 sps:$4 sm:$0xff]   ;;  %v1815_v55 = vshll.u32 %v2878_v49, 16 }
  0x99   : >> { %2146 = vmatpush1.bf16.msra.mxu0 %v3237_v48  ;;  %1147 = vmatprep.subr.bf16.mxu1 %v3242_v51  ;;  %v3317_v48 = vld [vmem:[%s4398_s1 + $0x6e4] ss:$8 sps:$4 sm:$0xff]   ;;  %v3312_v51 = vld [vmem:[%s4398_s1 + $0xe0] ss:$8 sps:$4 sm:$0xff]  }
  0x9a   : >> { %2147 = vmatprep.subr.bf16.mxu0 %v3245_v53  ;;  %v3320_v53 = vld [vmem:[%s4398_s1 + $0xf4] ss:$8 sps:$4 sm:$0xff]  }
  0x9c   : >> { %1148 = vmatpush1.bf16.msra.mxu1 %v3240_v56  ;;  %v1792_v56 = vshrl.u32 %v2875_v42, 16  ;;  %v3384_v42 = vld [vmem:[%s4398_s1 + $0x194] ss:$8 sps:$4 sm:$0xff]  }
  0x9d   : >> { %2148 = vmatpush1.bf16.msra.mxu0 %v3243_v57  ;;  %1149 = vmatprep.subr.bf16.mxu1 %v3248_v58  ;;  %v1796_v57 = vrot.slane %v1794_v50, 1  ;;  %v3318_v58 = vld [vmem:[%s4398_s1 + $0xf0] ss:$8 sps:$4 sm:$0xff]   ;;  %v3388_v50 = vld [vmem:[%s4398_s1 + $0x1a0] ss:$8 sps:$4 sm:$0xff]  }
  0x9e   : >> { %2149 = vmatprep.subr.bf16.mxu0 %v3251_v60  ;;  %v3328_v60 = vld [vmem:[%s4398_s1 + $0x104] ss:$8 sps:$4 sm:$0xff]  }
  0xa0   : >> { %1150 = vmatpush1.bf16.msra.mxu1 %v3246_v62  ;;  %v1813_v62 = vshrl.u32 %v2878_v49, 16  ;;  %v3393_v49 = vld [vmem:[%s4398_s1 + $0x7a4] ss:$8 sps:$4 sm:$0xff]  }
  0xa1   : >> { %2150 = vmatpush1.bf16.msra.mxu0 %v3249_v63  ;;  %1151 = vmatprep.subr.bf16.mxu1 %v3254_v4  ;;  %v1817_v63 = vrot.slane %v1815_v55, 1  ;;  %v2606_v4 = vcombine.low %v3978_v46, %v3978_v46  ;;  %v3339_v46 = vld [vmem:[%s4398_s1 + $0x714] ss:$8 sps:$4 sm:$0xff]   ;;  %v3397_v55 = vld [vmem:[%s4398_s1 + $0x7b0] ss:$8 sps:$4 sm:$0xff]  }
  0xa2   : >> { %2151 = vmatprep.subr.bf16.mxu0 %v3257_v5  ;;  %v1797_v5 = vor.u32 %v1796_v57, %v1792_v56  ;;  %v3402_v56 = vld [vmem:[%s4398_s1 + $0x1c4] ss:$8 sps:$4 sm:$0xff]  }
  0xa3   : >> { %v3405_v57 = vld [vmem:[%s4398_s1 + $0x7c4] ss:$8 sps:$4 sm:$0xff]  }
  0xa4   : >> { %1152 = vmatpush1.bf16.msra.mxu1 %v3252_v6  ;;  %v4177_v6 = vld [vmem:[%s3689_s17 + $0x8] sm:$0x33] }
  0xa5   : >> { %2152 = vmatpush1.bf16.msra.mxu0 %v3255_v7  ;;  %1153 = vmatprep.subr.bf16.mxu1 %v3260_v8  ;;  %v3326_v7 = vld [vmem:[%s4398_s1 + $0x100] ss:$8 sps:$4 sm:$0xff]  }
  0xa6   : >> { %2153 = vmatprep.subr.bf16.mxu0 %v3263_v9  ;;  %v3331_v8 = vld [vmem:[%s4398_s1 + $0x700] ss:$8 sps:$4 sm:$0xff]   ;;  %v3336_v9 = vld [vmem:[%s4398_s1 + $0x114] ss:$8 sps:$4 sm:$0xff]  }
  0xa8   : >> { %1154 = vmatpush1.bf16.msra.mxu1 %v3258_v10  ;;  %v2609_v10 = vcombine.high %v4177_v6, %v4177_v6 }
  0xa9   : >> { %2154 = vmatpush1.bf16.msra.mxu0 %v3261_v11  ;;  %1155 = vmatprep.subr.bf16.mxu1 %v3266_v12  ;;  %v1818_v11 = vor.u32 %v1817_v63, %v1813_v62  ;;  %v3334_v12 = vld [vmem:[%s4398_s1 + $0x110] ss:$8 sps:$4 sm:$0xff]   ;;  %v2877_v62 = vcombine.low %v4134_v43, %v4134_v43  ;;  %v3417_v43 = vld [vmem:[%s4398_s1 + $0x7e4] ss:$8 sps:$4 sm:$0xff]  }
  0xaa   : >> { %2155 = vmatprep.subr.bf16.mxu0 %v3269_v13  ;;  %v3337_v13 = vld [vmem:[%s4398_s1 + $0x710] ss:$8 sps:$4 sm:$0xff]  }
  0xab   : >> { %v3406_v63 = vld [vmem:[%s4398_s1 + $0x1d0] ss:$8 sps:$4 sm:$0xff]  }
  0xac   : >> { %1156 = vmatpush1.bf16.msra.mxu1 %v3264_v14  ;;  %v3342_v14 = vld [vmem:[%s4398_s1 + $0x124] ss:$8 sps:$4 sm:$0xff]  }
  0xad   : >> { %2156 = vmatpush1.bf16.msra.mxu0 %v3267_v15  ;;  %1157 = vmatprep.subr.bf16.mxu1 %v3272_v16  ;;  %v3345_v15 = vld [vmem:[%s4398_s1 + $0x724] ss:$8 sps:$4 sm:$0xff]   ;;  %v3340_v16 = vld [vmem:[%s4398_s1 + $0x120] ss:$8 sps:$4 sm:$0xff]  }
  0xae   : >> { %2157 = vmatprep.subr.bf16.mxu0 %v3275_v17  ;;  %v3343_v17 = vld [vmem:[%s4398_s1 + $0x720] ss:$8 sps:$4 sm:$0xff]  }
  0xb0   : >> { %1158 = vmatpush1.bf16.msra.mxu1 %v3270_v18  ;;  %v3348_v18 = vld [vmem:[%s4398_s1 + $0x134] ss:$8 sps:$4 sm:$0xff]  }
  0xb1   : >> { %2158 = vmatpush1.bf16.msra.mxu0 %v3273_v19  ;;  %1159 = vmatprep.subr.bf16.mxu1 %v3278_v20  ;;  %v3351_v19 = vld [vmem:[%s4398_s1 + $0x734] ss:$8 sps:$4 sm:$0xff]   ;;  %v3346_v20 = vld [vmem:[%s4398_s1 + $0x130] ss:$8 sps:$4 sm:$0xff]  }
  0xb2   : >> { %2159 = vmatprep.subr.bf16.mxu0 %v3281_v21  ;;  %v3349_v21 = vld [vmem:[%s4398_s1 + $0x730] ss:$8 sps:$4 sm:$0xff]  }
  0xb4   : >> { %1160 = vmatpush1.bf16.msra.mxu1 %v3276_v22  ;;  %v3354_v22 = vld [vmem:[%s4398_s1 + $0x144] ss:$8 sps:$4 sm:$0xff]  }
  0xb5   : >> { %2160 = vmatpush1.bf16.msra.mxu0 %v3279_v23  ;;  %1161 = vmatprep.subr.bf16.mxu1 %v3284_v24  ;;  %v3357_v23 = vld [vmem:[%s4398_s1 + $0x744] ss:$8 sps:$4 sm:$0xff]   ;;  %v3352_v24 = vld [vmem:[%s4398_s1 + $0x140] ss:$8 sps:$4 sm:$0xff]  }
  0xb6   : >> { %2161 = vmatprep.subr.bf16.mxu0 %v3287_v25  ;;  %v3355_v25 = vld [vmem:[%s4398_s1 + $0x740] ss:$8 sps:$4 sm:$0xff]  }
  0xb8   : >> { %1162 = vmatpush1.bf16.msra.mxu1 %v3282_v26  ;;  %v3360_v26 = vld [vmem:[%s4398_s1 + $0x154] ss:$8 sps:$4 sm:$0xff]  }
  0xb9   : >> { %2162 = vmatpush1.bf16.msra.mxu0 %v3285_v27  ;;  %1163 = vmatprep.subr.bf16.mxu1 %v3290_v28  ;;  %v3363_v27 = vld [vmem:[%s4398_s1 + $0x754] ss:$8 sps:$4 sm:$0xff]   ;;  %v3358_v28 = vld [vmem:[%s4398_s1 + $0x150] ss:$8 sps:$4 sm:$0xff]  }
  0xba   : >> { %2163 = vmatprep.subr.bf16.mxu0 %v3293_v29  ;;  %v3361_v29 = vld [vmem:[%s4398_s1 + $0x750] ss:$8 sps:$4 sm:$0xff]  }
  0xbc   : >> { %1164 = vmatpush1.bf16.msra.mxu1 %v3288_v30  ;;  %v3366_v30 = vld [vmem:[%s4398_s1 + $0x164] ss:$8 sps:$4 sm:$0xff]  }
  0xbd   : >> { %2164 = vmatpush1.bf16.msra.mxu0 %v3291_v31  ;;  %1165 = vmatprep.subr.bf16.mxu1 %v3296_v32  ;;  %v3369_v31 = vld [vmem:[%s4398_s1 + $0x764] ss:$8 sps:$4 sm:$0xff]   ;;  %v3364_v32 = vld [vmem:[%s4398_s1 + $0x160] ss:$8 sps:$4 sm:$0xff]  }
  0xbe   : >> { %2165 = vmatprep.subr.bf16.mxu0 %v3299_v33  ;;  %v3367_v33 = vld [vmem:[%s4398_s1 + $0x760] ss:$8 sps:$4 sm:$0xff]  }
  0xc0   : >> { %1166 = vmatpush1.bf16.msra.mxu1 %v3294_v34  ;;  %v3372_v34 = vld [vmem:[%s4398_s1 + $0x174] ss:$8 sps:$4 sm:$0xff]  }
  0xc1   : >> { %2166 = vmatpush1.bf16.msra.mxu0 %v3297_v35  ;;  %1167 = vmatprep.subr.bf16.mxu1 %v3302_v36  ;;  %v3375_v35 = vld [vmem:[%s4398_s1 + $0x774] ss:$8 sps:$4 sm:$0xff]   ;;  %v3370_v36 = vld [vmem:[%s4398_s1 + $0x170] ss:$8 sps:$4 sm:$0xff]  }
  0xc2   : >> { %2167 = vmatprep.subr.bf16.mxu0 %v3305_v37  ;;  %v3373_v37 = vld [vmem:[%s4398_s1 + $0x770] ss:$8 sps:$4 sm:$0xff]  }
  0xc4   : >> { %1168 = vmatpush1.bf16.msra.mxu1 %v3300_v38  ;;  %v3378_v38 = vld [vmem:[%s4398_s1 + $0x184] ss:$8 sps:$4 sm:$0xff]  }
  0xc5   : >> { %2168 = vmatpush1.bf16.msra.mxu0 %v3303_v39  ;;  %1169 = vmatprep.subr.bf16.mxu1 %v3308_v40  ;;  %v3381_v39 = vld [vmem:[%s4398_s1 + $0x784] ss:$8 sps:$4 sm:$0xff]   ;;  %v3376_v40 = vld [vmem:[%s4398_s1 + $0x180] ss:$8 sps:$4 sm:$0xff]  }
  0xc6   : >> { %2169 = vmatprep.subr.bf16.mxu0 %v3311_v41  ;;  %v3379_v41 = vld [vmem:[%s4398_s1 + $0x780] ss:$8 sps:$4 sm:$0xff]  }
  0xc8   : >> { %1170 = vmatpush1.bf16.msra.mxu1 %v3306_v44  ;;  %v3387_v44 = vld [vmem:[%s4398_s1 + $0x794] ss:$8 sps:$4 sm:$0xff]  }
  0xc9   : >> { %2170 = vmatpush1.bf16.msra.mxu0 %v3309_v45  ;;  %1171 = vmatprep.subr.bf16.mxu1 %v3314_v47  ;;  %v3382_v45 = vld [vmem:[%s4398_s1 + $0x190] ss:$8 sps:$4 sm:$0xff]  }
  0xca   : >> { %2171 = vmatprep.subr.bf16.mxu0 %v3317_v48  ;;  %v3385_v47 = vld [vmem:[%s4398_s1 + $0x790] ss:$8 sps:$4 sm:$0xff]   ;;  %v3390_v48 = vld [vmem:[%s4398_s1 + $0x1a4] ss:$8 sps:$4 sm:$0xff]  }
  0xcc   : >> { %1172 = vmatpush1.bf16.msra.mxu1 %v3312_v51  ;;  %v3391_v51 = vld [vmem:[%s4398_s1 + $0x7a0] ss:$8 sps:$4 sm:$0xff]  }
  0xcd   : >> { %2172 = vmatpush1.bf16.msra.mxu0 %v3315_v52  ;;  %1173 = vmatprep.subr.bf16.mxu1 %v3320_v53  ;;  %v3396_v52 = vld [vmem:[%s4398_s1 + $0x1b4] ss:$8 sps:$4 sm:$0xff]  }
  0xce   : >> { %2173 = vmatprep.subr.bf16.mxu0 %v3323_v54  ;;  %v3399_v53 = vld [vmem:[%s4398_s1 + $0x7b4] ss:$8 sps:$4 sm:$0xff]   ;;  %v3394_v54 = vld [vmem:[%s4398_s1 + $0x1b0] ss:$8 sps:$4 sm:$0xff]  }
  0xd0   : >> { %1174 = vmatpush1.bf16.msra.mxu1 %v3318_v58  ;;  %v3400_v58 = vld [vmem:[%s4398_s1 + $0x1c0] ss:$8 sps:$4 sm:$0xff]  }
  0xd1   : >> { %2174 = vmatpush1.bf16.msra.mxu0 %v3321_v59  ;;  %1184 = vmatprep.subr.bf16.mxu1 %v3328_v60  ;;  %v3403_v59 = vld [vmem:[%s4398_s1 + $0x7c0] ss:$8 sps:$4 sm:$0xff]   ;;  %v3408_v60 = vld [vmem:[%s4398_s1 + $0x1d4] ss:$8 sps:$4 sm:$0xff]  }
  0xd2   : >> { %2184 = vmatprep.subr.bf16.mxu0 %v3333_v61  ;;  %v3411_v61 = vld [vmem:[%s4398_s1 + $0x7d4] ss:$8 sps:$4 sm:$0xff]  }
  0xd3   : >> { %1176 = vmatmul.mubr.bf16.vlgmr.msra.gmra.mrb[0].mxu1 %v2606_v4  ;;  %v3409_v4 = vld [vmem:[%s4398_s1 + $0x7d0] ss:$8 sps:$4 sm:$0xff]  }
  0xd4   : >> { %2176 = vmatmul.mubr.bf16.vlgmr.msra.gmra.mrb[0].mxu0 %v1797_v5  ;;  %1185 = vmatpush1.bf16.msra.mxu1 %v3326_v7  ;;  %v3414_v5 = vld [vmem:[%s4398_s1 + $0x1e4] ss:$8 sps:$4 sm:$0xff]   ;;  %v1808_v7 = vshll.u32 %v2877_v62, 16 }
  0xd5   : >> { %2185 = vmatpush1.bf16.msra.mxu0 %v3331_v8  ;;  %1186 = vmatprep.subr.bf16.mxu1 %v3336_v9  ;;  %v3412_v8 = vld [vmem:[%s4398_s1 + $0x1e0] ss:$8 sps:$4 sm:$0xff]  }
  0xd6   : >> { %2186 = vmatprep.subr.bf16.mxu0 %v3339_v46  ;;  %1216 = vmatprep.mubr.bf16.mxu1 %v2609_v10  ;;  %v3415_v9 = vld [vmem:[%s4398_s1 + $0x7e0] ss:$8 sps:$4 sm:$0xff]   ;;  %v3420_v46 = vld [vmem:[%s4398_s1 + $0x1f4] ss:$8 sps:$4 sm:$0xff]  }
  0xd7   : >> { %2216 = vmatprep.mubr.bf16.mxu0 %v1818_v11  ;;  %v3423_v10 = vld [vmem:[%s4398_s1 + $0x7f4] ss:$8 sps:$4 sm:$0xff]   ;;  %v1806_v11 = vshrl.u32 %v2877_v62, 16 }
  0xd8   : >> { %1187 = vmatpush1.bf16.msra.mxu1 %v3334_v12  ;;  %v1810_v12 = vrot.slane %v1808_v7, 1 }
  0xd9   : >> { %2187 = vmatpush1.bf16.msra.mxu0 %v3337_v13  ;;  %1188 = vmatprep.subr.bf16.mxu1 %v3342_v14  ;;  %v3418_v13 = vld [vmem:[%s4398_s1 + $0x1f0] ss:$8 sps:$4 sm:$0xff]  }
  0xda   : >> { %2188 = vmatprep.subr.bf16.mxu0 %v3345_v15  ;;  %v3421_v14 = vld [vmem:[%s4398_s1 + $0x7f0] ss:$8 sps:$4 sm:$0xff]   ;;  %v2608_v15 = vcombine.low %v4177_v6, %v4177_v6 }
  0xdc   : >> { %1189 = vmatpush1.bf16.msra.mxu1 %v3340_v16  ;;  %v1811_v16 = vor.u32 %v1810_v12, %v1806_v11 }
  0xdd   : >> { %2189 = vmatpush1.bf16.msra.mxu0 %v3343_v17  ;;  %1190 = vmatprep.subr.bf16.mxu1 %v3348_v18 }
  0xde   : >> { %2190 = vmatprep.subr.bf16.mxu0 %v3351_v19 }
  0xe0   : >> { %1191 = vmatpush1.bf16.msra.mxu1 %v3346_v20 }
  0xe1   : >> { %2191 = vmatpush1.bf16.msra.mxu0 %v3349_v21  ;;  %1192 = vmatprep.subr.bf16.mxu1 %v3354_v22 }
  0xe2   : >> { %2192 = vmatprep.subr.bf16.mxu0 %v3357_v23 }
  0xe4   : >> { %1193 = vmatpush1.bf16.msra.mxu1 %v3352_v24 }
  0xe5   : >> { %2193 = vmatpush1.bf16.msra.mxu0 %v3355_v25  ;;  %1194 = vmatprep.subr.bf16.mxu1 %v3360_v26 }
  0xe6   : >> { %2194 = vmatprep.subr.bf16.mxu0 %v3363_v27 }
  0xe8   : >> { %1195 = vmatpush1.bf16.msra.mxu1 %v3358_v28 }
  0xe9   : >> { %2195 = vmatpush1.bf16.msra.mxu0 %v3361_v29  ;;  %1196 = vmatprep.subr.bf16.mxu1 %v3366_v30 }
  0xea   : >> { %2196 = vmatprep.subr.bf16.mxu0 %v3369_v31 }
  0xec   : >> { %1197 = vmatpush1.bf16.msra.mxu1 %v3364_v32 }
  0xed   : >> { %2197 = vmatpush1.bf16.msra.mxu0 %v3367_v33  ;;  %1198 = vmatprep.subr.bf16.mxu1 %v3372_v34 }
  0xee   : >> { %2198 = vmatprep.subr.bf16.mxu0 %v3375_v35 }
  0xf0   : >> { %1199 = vmatpush1.bf16.msra.mxu1 %v3370_v36 }
  0xf1   : >> { %2199 = vmatpush1.bf16.msra.mxu0 %v3373_v37  ;;  %1200 = vmatprep.subr.bf16.mxu1 %v3378_v38 }
  0xf2   : >> { %2200 = vmatprep.subr.bf16.mxu0 %v3381_v39 }
  0xf4   : >> { %1201 = vmatpush1.bf16.msra.mxu1 %v3376_v40 }
  0xf5   : >> { %2201 = vmatpush1.bf16.msra.mxu0 %v3379_v41  ;;  %1202 = vmatprep.subr.bf16.mxu1 %v3384_v42 }
  0xf6   : >> { %2202 = vmatprep.subr.bf16.mxu0 %v3387_v44 }
  0xf8   : >> { %1203 = vmatpush1.bf16.msra.mxu1 %v3382_v45 }
  0xf9   : >> { %2203 = vmatpush1.bf16.msra.mxu0 %v3385_v47  ;;  %1204 = vmatprep.subr.bf16.mxu1 %v3390_v48 }
  0xfa   : >> { %2204 = vmatprep.subr.bf16.mxu0 %v3393_v49 }
  0xfc   : >> { %1205 = vmatpush1.bf16.msra.mxu1 %v3388_v50 }
  0xfd   : >> { %2205 = vmatpush1.bf16.msra.mxu0 %v3391_v51  ;;  %1206 = vmatprep.subr.bf16.mxu1 %v3396_v52 }
  0xfe   : >> { %2206 = vmatprep.subr.bf16.mxu0 %v3399_v53 }
 0x100   : >> { %1207 = vmatpush1.bf16.msra.mxu1 %v3394_v54 }
 0x101   : >> { %2207 = vmatpush1.bf16.msra.mxu0 %v3397_v55  ;;  %1208 = vmatprep.subr.bf16.mxu1 %v3402_v56 }
 0x102   : >> { %2208 = vmatprep.subr.bf16.mxu0 %v3405_v57 }
 0x104   : >> { %1209 = vmatpush1.bf16.msra.mxu1 %v3400_v58 }
 0x105   : >> { %2209 = vmatpush1.bf16.msra.mxu0 %v3403_v59  ;;  %1210 = vmatprep.subr.bf16.mxu1 %v3408_v60 }
 0x106   : >> { %2210 = vmatprep.subr.bf16.mxu0 %v3411_v61 }
 0x108   : >> { %1211 = vmatpush1.bf16.msra.mxu1 %v3406_v63  ;;  %v3476_v63 = vmov (%p221_p4), 1966171168  }
 0x109   : >> { %2211 = vmatpush1.bf16.msra.mxu0 %v3409_v4  ;;  %1212 = vmatprep.subr.bf16.mxu1 %v3414_v5  ;;  %v2283_v4 = vunpack.c.l.s4 (%p221_p4), %v3476_v63 }
 0x10a   : >> { %2212 = vmatprep.subr.bf16.mxu0 %v3417_v43 }
 0x10b   : > { %v2284_v7 = vunpack.c.0.s8 (%p221_p4), %v2283_v4 }
 0x10c   : >> { %1213 = vmatpush1.bf16.msra.mxu1 %v3412_v8 }
 0x10d   : >> { %2213 = vmatpush1.bf16.msra.mxu0 %v3415_v9  ;;  %1214 = vmatprep.subr.bf16.mxu1 %v3420_v46 }
 0x10e   : >> { %2214 = vmatprep.subr.bf16.mxu0 %v3423_v10 }
 0x110   : >> { %1215 = vmatpush1.bf16.msra.mxu1 %v3418_v13 }
 0x111   : >> { %2215 = vmatpush1.bf16.msra.mxu0 %v3421_v14 }
 0x113   : >> { %1217 = vmatmul.mubr.bf16.vlgmr.msra.gmra.mrb[0].mxu1 %v2608_v15 }
 0x114   : >> { %2217 = vmatmul.mubr.bf16.vlgmr.msra.gmra.mrb[0].mxu0 %v1811_v16 }
 0x1e6   : >> { %v1218_v17 = vpop.f32.mrb[0].mxu1 }
 0x1e7   : >> { %v2218_v18 = vpop.f32.mrb[0].mxu0  ;;  %v1220_v20 = vpop.f32.mrb[1].mxu1 }
 0x1e8   : >> { %v2952_v19 = vadd.f32 %v2218_v18, %v1218_v17  ;;  %v2220_v21 = vpop.f32.mrb[1].mxu0  ;;  %v1222_v23 = vpop.f32.mrb[2].mxu1 }
 0x1e9   : >> { %v2953_v22 = vadd.f32 %v2220_v21, %v1220_v20  ;;  %v2222_v24 = vpop.f32.mrb[2].mxu0  ;;  %v1223_v6 = vpop.f32.mrb[3].mxu1 }
 0x1ea   : >> { %v2245_v25 = vsel %vm2244_vm0, %v2952_v19, 0.0  ;;  %v2261_v26 = vmul.f32 %v2952_v19, %v2952_v19  ;;  %v2223_v27 = vpop.f32.mrb[3].mxu0 }
 0x1eb   : >> { %v2246_v28 = vrot.slane %v2245_v25, 4  ;;  %v2943_v29 = vpack.c.bf16 %v2953_v22, %v2952_v19  ;;  %v2252_v30 = vsel %vm2244_vm0, %v2953_v22, 0.0  ;;  %v2262_v31 = vmul.f32 %v2953_v22, %v2953_v22 }
 0x1ec   : >> { %v2263_v32 = vsel %vm2244_vm0, %v2261_v26, 0.0  ;;  %v2253_v33 = vrot.slane %v2252_v30, 4 }
 0x1ed   : >> { %v2247_v34 = vadd.f32 %v2246_v28, %v2245_v25  ;;  %v2264_v35 = vrot.slane %v2263_v32, 4  ;;  %2946 = vst.sshfl [vmem:[%s2242_s19] sm:$0x33 pattern:$0x76325410] %v2943_v29  ;;  %v2270_v36 = vsel %vm2244_vm0, %v2262_v31, 0.0 }
 0x1ee   : >> { %v2254_v37 = vadd.f32 %v2253_v33, %v2252_v30  ;;  %v2271_v38 = vrot.slane %v2270_v36, 4 }
 0x1ef   : >> { %v2248_v39 = vrot.slane %v2247_v34, 2  ;;  %v2265_v40 = vadd.f32 %v2264_v35, %v2263_v32 }
 0x1f0   : >> { %v2255_v41 = vrot.slane %v2254_v37, 2  ;;  %v2272_v42 = vadd.f32 %v2271_v38, %v2270_v36 }
 0x1f1   : >> { %v2249_v44 = vadd.f32 %v2248_v39, %v2247_v34  ;;  %v2266_v45 = vrot.slane %v2265_v40, 2 }
 0x1f2   : >> { %v2256_v47 = vadd.f32 %v2255_v41, %v2254_v37  ;;  %v2273_v48 = vrot.slane %v2272_v42, 2 }
 0x1f3   : >> { %v2250_v49 = vrot.slane %v2249_v44, 1  ;;  %v2267_v50 = vadd.f32 %v2266_v45, %v2265_v40 }
 0x1f4   : >> { %v2257_v51 = vrot.slane %v2256_v47, 1  ;;  %v2274_v52 = vadd.f32 %v2273_v48, %v2272_v42 }
 0x1f5   : >> { %v2251_v53 = vadd.f32 %v2250_v49, %v2249_v44  ;;  %v2268_v54 = vrot.slane %v2267_v50, 1 }
 0x1f6   : >> { %v2258_v55 = vadd.f32 %v2257_v51, %v2256_v47  ;;  %v2275_v56 = vrot.slane %v2274_v52, 1  ;;  %223 = sbr.rel (!%p221_p4) target bundleno = 18 (0x12), region = 95 }
 0x1f7   : >> { %v2259_v57 = vadd.f32 %v3470_v3, %v2251_v53   ;;  %v2269_v58 = vadd.f32 %v2268_v54, %v2267_v50 }
 0x1f8   : >> { %v2260_v59 = vadd.f32 %v3466_v2, %v2258_v55   ;;  %v2276_v60 = vadd.f32 %v2275_v56, %v2274_v52 }
 0x1f9   : >> { %v2277_v61 = vadd.f32 %v3462_v1, %v2269_v58   ;;  %v4405_v3 = vmov %v2259_v57 }
 0x1fa   : >> { %v2278_v62 = vadd.f32 %v3458_v0, %v2276_v60   ;;  %v4404_v2 = vmov %v2260_v59  ;;  %v2285_v3 = vlaneseq (%p221_p4)  ;;  %v2281_v43 = vcombine.low (%p221_p4), %v2259_v57, %v2260_v59 }
 0x1fb   : >> { %v4403_v1 = vmov %v2277_v61 }
 0x1fc   : >> { %v4402_v0 = vmov %v2278_v62  ;;  %v2286_v5 = vshrl.u32 (%p221_p4), %v2285_v3, 7  ;;  %v2304_v8 = vcombine.low (%p221_p4), %v2277_v61, %v2278_v62  ;;  %vm2299_vm1 = vcmp.lt.s32.totalorder (%p221_p4), %v2285_v3, 256 }
 0x1fe   : > { %v2287_v9 = vsub.s32 %v2284_v7, %v2286_v5 }
 0x200   : > { %v2288_v46 = vrot.slane %v2281_v43, %v2287_v9  ;;  %v2311_v10 = vrot.slane %v2304_v8, %v2287_v9 }
 0x202   : > { %v2295_v11 = vrot.slane %v2288_v46, %v2287_v9  ;;  %v2318_v12 = vrot.slane %v2311_v10, %v2287_v9 }
 0x204   : > { %2301 = vst.msk [vmem:[%s3523_s28] sm:$0x3] %vm2299_vm1, %v2295_v11  ;;  %2320 = vst.msk [vmem:[%s3528_s5] sm:$0x3] %vm2299_vm1, %v2318_v12 }
 0x205 PF: > { %s15_s15 = sadd.s32 1, %s3454_s15  }
 0x206   : > { %p12_p5 = scmp.ge.s32.totalorder %s15_s15, 4  }
 0x208   :  { %14 = sbr.rel (!%p12_p5) target bundleno = 1 (0x1), region = 106 }

// kernel: discriminator_forward.7
= control target key start
LH: loop header
LB: loop body
LE: loop exit
PB: predicated region body
PF: predicated region fallthrough
CT: control target
= control target key end

     0   :  { %s4740_s12 = smov 0   ;;  %s5565_s0 = inlined_call_operand.vmem [shape: bf16[2,5,5,256], index: 0, kind: input, shape index: {}]   ;;  %s5566_s1 = inlined_call_operand.vmem [shape: bf16[16,256,128], index: 1, kind: input, shape index: {}]   ;;  %s5567_s2 = inlined_call_operand.vmem [shape: f32[1,128], index: 2, kind: input, shape index: {}]   ;;  %s5568_s3 = inlined_call_operand.vmem [shape: f32[2,2,2,128], index: 3, kind: output, shape index: {}]  }
   0x1 LB: > { %s3249_s13 = sadd.s32 4294967295, %s4714_s12   ;;  %p3253_p0 = scmp.ge.s32.totalorder %s4714_s12, 1  ;;  %s4714_s12 = sphi %s4740_s12, %s13_s12  }
   0x2   : > { %p137_p1 = scmp.lt.s32.totalorder %s4714_s12, 3 }
   0x4   : > { %p138_p2 = pnand %p3253_p0, %p137_p1 }
   0x5   : > { %p161_p3 = scmp.lt.s32.totalorder (!%p138_p2), %s3249_s13, 1  ;;  %v4751_v0 = vld [vmem:[%s5567_s2] ss:$0 sm:$0xff] (!%p138_p2)  ;;  %s4763_s24 = smov (!%p138_p2), 0  }
   0x6   : > { %141 = sbr.rel (%p138_p2) target bundleno = 497 (0x1f1), region = 32 }
   0xd   : > { %s5570_s13 = smov (!%p161_p3, %s3249_s13), 1 }
   0xe   : > { %s4399_s16 = smul.u32 40, %s5570_s13  ;;  %s4045_s17 = sshll.u32 %s5570_s13, 2 }
   0xf   : > { %s4756_s20 = scalar_lea.vmem %s5568_s3, %s4045_s17 }
  0x10   : > { %s4761_s23 = scalar_lea.vmem %s5565_s0, %s4399_s16 }
  0x11 LB: >> { %v4416_v1 = vld [vmem:[%s5566_s1 + $0xc0] sm:$0xff]   ;;  %v4420_v5 = vld [vmem:[%s5566_s1 + $0xc8] sm:$0xff]   ;;  %v4424_v9 = vld [vmem:[%s5566_s1 + $0xd0] sm:$0xff]   ;;  %s4046_s6 = sshll.u32 %s4718_s24, 3  ;;  %s4718_s24 = sphi %s4763_s24, %s178_s24  }
  0x12   : >> { %v4417_v2 = vld [vmem:[%s5566_s1 + $0x40] sm:$0xff]   ;;  %4047 = vmatprep.subr.bf16.mxu0 %v4416_v1  ;;  %v4421_v6 = vld [vmem:[%s5566_s1 + $0x48] sm:$0xff]   ;;  %v4425_v10 = vld [vmem:[%s5566_s1 + $0x50] sm:$0xff]   ;;  %s4860_s14 = scalar_lea.vmem %s4761_s23, %s4046_s6 }
  0x13   : >> { %v4418_v3 = vld [vmem:[%s5566_s1 + $0x80] sm:$0xff]   ;;  %4069 = vmatprep.subr.bf16.mxu1 %v4417_v2  ;;  %v4422_v7 = vld [vmem:[%s5566_s1 + $0x88] sm:$0xff]   ;;  %v4426_v11 = vld [vmem:[%s5566_s1 + $0x90] sm:$0xff]  }
  0x14   : >> { %v4419_v4 = vld [vmem:[%s5566_s1] sm:$0xff]   ;;  %4048 = vmatpush3.bf16.msra.mxu0 %v4418_v3  ;;  %v4423_v8 = vld [vmem:[%s5566_s1 + $0x8] sm:$0xff]   ;;  %v4427_v12 = vld [vmem:[%s5566_s1 + $0x10] sm:$0xff]  }
  0x15   : >> { %4070 = vmatpush3.bf16.msra.mxu1 %v4419_v4  ;;  %4049 = vmatprep.subr.bf16.mxu0 %v4420_v5  ;;  %v4428_v13 = vld [vmem:[%s5566_s1 + $0xd8] sm:$0xff]   ;;  %v4432_v17 = vld [vmem:[%s5566_s1 + $0xe0] sm:$0xff]   ;;  %v4436_v21 = vld [vmem:[%s5566_s1 + $0xe8] sm:$0xff]  }
  0x16   : >> { %4071 = vmatprep.subr.bf16.mxu1 %v4421_v6  ;;  %v4429_v14 = vld [vmem:[%s5566_s1 + $0x58] sm:$0xff]   ;;  %v4433_v18 = vld [vmem:[%s5566_s1 + $0x60] sm:$0xff]   ;;  %v4437_v22 = vld [vmem:[%s5566_s1 + $0x68] sm:$0xff]  }
  0x17   : >> { %v4430_v15 = vld [vmem:[%s5566_s1 + $0x98] sm:$0xff]   ;;  %v4434_v19 = vld [vmem:[%s5566_s1 + $0xa0] sm:$0xff]   ;;  %v4438_v23 = vld [vmem:[%s5566_s1 + $0xa8] sm:$0xff]  }
  0x18   : >> { %4050 = vmatpush3.bf16.msra.mxu0 %v4422_v7  ;;  %v4431_v16 = vld [vmem:[%s5566_s1 + $0x18] sm:$0xff]   ;;  %v4435_v20 = vld [vmem:[%s5566_s1 + $0x20] sm:$0xff]   ;;  %v4439_v24 = vld [vmem:[%s5566_s1 + $0x28] sm:$0xff]  }
  0x19   : >> { %4072 = vmatpush3.bf16.msra.mxu1 %v4423_v8  ;;  %4051 = vmatprep.subr.bf16.mxu0 %v4424_v9  ;;  %v4440_v25 = vld [vmem:[%s5566_s1 + $0xf0] sm:$0xff]   ;;  %v4444_v29 = vld [vmem:[%s5566_s1 + $0xf8] sm:$0xff]   ;;  %v215_v33 = vld [vmem:[%s4860_s14] sm:$0x33] }
  0x1a   : >> { %4073 = vmatprep.subr.bf16.mxu1 %v4425_v10  ;;  %v4441_v26 = vld [vmem:[%s5566_s1 + $0x70] sm:$0xff]   ;;  %v4445_v30 = vld [vmem:[%s5566_s1 + $0x78] sm:$0xff]   ;;  %v182_v34 = vld [vmem:[%s4860_s14] sm:$0x11]  ;;  %v3291_v35 = vcombine.low %v215_v33, %v215_v33  ;;  %v3292_v36 = vcombine.high %v215_v33, %v215_v33 }
  0x1b   : >> { %v4442_v27 = vld [vmem:[%s5566_s1 + $0xb0] sm:$0xff]   ;;  %v4446_v31 = vld [vmem:[%s5566_s1 + $0xb8] sm:$0xff]   ;;  %v3309_v37 = vcombine.low %v182_v34, %v182_v34  ;;  %v3310_v38 = vcombine.high %v182_v34, %v182_v34  ;;  %v4452_v39 = vld [vmem:[%s5566_s1 + $0x140] sm:$0xff]  }
  0x1c   : >> { %4052 = vmatpush3.bf16.msra.mxu0 %v4426_v11  ;;  %v4443_v28 = vld [vmem:[%s5566_s1 + $0x30] sm:$0xff]   ;;  %v4447_v32 = vld [vmem:[%s5566_s1 + $0x38] sm:$0xff]   ;;  %v4453_v40 = vld [vmem:[%s5566_s1 + $0x1c0] sm:$0xff]   ;;  %v262_v41 = vshrl.u32 %v3292_v36, 16  ;;  %v264_v42 = vshll.u32 %v3292_v36, 16  ;;  %v255_v43 = vshrl.u32 %v3291_v35, 16 }
  0x1d   : >> { %4074 = vmatpush3.bf16.msra.mxu1 %v4427_v12  ;;  %4053 = vmatprep.subr.bf16.mxu0 %v4428_v13  ;;  %v257_v44 = vshll.u32 %v3291_v35, 16  ;;  %v4454_v47 = vld [vmem:[%s5566_s1 + $0x100] sm:$0xff]   ;;  %v4457_v51 = vld [vmem:[%s5566_s1 + $0x1c8] sm:$0xff]   ;;  %v4461_v55 = vld [vmem:[%s5566_s1 + $0x1d0] sm:$0xff]  }
  0x1e   : >> { %4075 = vmatprep.subr.bf16.mxu1 %v4429_v14  ;;  %541 = vmatprep.mubr.bf16.mxu1 %v3310_v38  ;;  %v266_v45 = vrot.slane %v264_v42, 1  ;;  %v4455_v48 = vld [vmem:[%s5566_s1 + $0x180] sm:$0xff]   ;;  %v4456_v52 = vld [vmem:[%s5566_s1 + $0x148] sm:$0xff]   ;;  %v4460_v56 = vld [vmem:[%s5566_s1 + $0x150] sm:$0xff]  }
  0x1f   : >> { %v259_v46 = vrot.slane %v257_v44, 1  ;;  %v4459_v53 = vld [vmem:[%s5566_s1 + $0x188] sm:$0xff]   ;;  %v4463_v57 = vld [vmem:[%s5566_s1 + $0x190] sm:$0xff]   ;;  %v4465_v59 = vld [vmem:[%s5566_s1 + $0x1d8] sm:$0xff]  }
  0x20   : >> { %4054 = vmatpush3.bf16.msra.mxu0 %v4430_v15  ;;  %v267_v49 = vor.u32 %v266_v45, %v262_v41  ;;  %v4458_v54 = vld [vmem:[%s5566_s1 + $0x108] sm:$0xff]   ;;  %v4462_v58 = vld [vmem:[%s5566_s1 + $0x110] sm:$0xff]   ;;  %v4464_v60 = vld [vmem:[%s5566_s1 + $0x158] sm:$0xff]  }
  0x21   : >> { %4076 = vmatpush3.bf16.msra.mxu1 %v4431_v16  ;;  %4055 = vmatprep.subr.bf16.mxu0 %v4432_v17  ;;  %v260_v50 = vor.u32 %v259_v46, %v255_v43  ;;  %v4467_v61 = vld [vmem:[%s5566_s1 + $0x198] sm:$0xff]   ;;  %v4469_v63 = vld [vmem:[%s5566_s1 + $0x1e0] sm:$0xff]   ;;  %v4473_v4 = vld [vmem:[%s5566_s1 + $0x1e8] sm:$0xff]  }
  0x22   : >> { %4077 = vmatprep.subr.bf16.mxu1 %v4433_v18  ;;  %398 = vmatprep.mubr.bf16.mxu0 %v267_v49  ;;  %v4466_v62 = vld [vmem:[%s5566_s1 + $0x118] sm:$0xff]   ;;  %v4468_v1 = vld [vmem:[%s5566_s1 + $0x160] sm:$0xff]   ;;  %v4472_v5 = vld [vmem:[%s5566_s1 + $0x168] sm:$0xff]  }
  0x23   : >> { %v4471_v2 = vld [vmem:[%s5566_s1 + $0x1a0] sm:$0xff]   ;;  %v4475_v6 = vld [vmem:[%s5566_s1 + $0x1a8] sm:$0xff]   ;;  %v4477_v8 = vld [vmem:[%s5566_s1 + $0x1f0] sm:$0xff]  }
  0x24   : >> { %4056 = vmatpush3.bf16.msra.mxu0 %v4434_v19  ;;  %v4470_v3 = vld [vmem:[%s5566_s1 + $0x120] sm:$0xff]   ;;  %v4474_v7 = vld [vmem:[%s5566_s1 + $0x128] sm:$0xff]   ;;  %v4476_v9 = vld [vmem:[%s5566_s1 + $0x170] sm:$0xff]  }
  0x25   : >> { %4078 = vmatpush3.bf16.msra.mxu1 %v4435_v20  ;;  %4057 = vmatprep.subr.bf16.mxu0 %v4436_v21  ;;  %v4479_v10 = vld [vmem:[%s5566_s1 + $0x1b0] sm:$0xff]   ;;  %v4481_v12 = vld [vmem:[%s5566_s1 + $0x1f8] sm:$0xff]   ;;  %v549_v15 = vld [vmem:[%s4860_s14] sm:$0x22] }
  0x26   : >> { %4079 = vmatprep.subr.bf16.mxu1 %v4437_v22  ;;  %v4478_v11 = vld [vmem:[%s5566_s1 + $0x130] sm:$0xff]   ;;  %v4480_v13 = vld [vmem:[%s5566_s1 + $0x178] sm:$0xff]   ;;  %v729_v16 = vld [vmem:[%s4860_s14] sm:$0x66]  ;;  %v3359_v18 = vcombine.low %v549_v15, %v549_v15  ;;  %v3360_v19 = vcombine.high %v549_v15, %v549_v15 }
  0x27   : >> { %v4483_v14 = vld [vmem:[%s5566_s1 + $0x1b8] sm:$0xff]   ;;  %v3409_v20 = vcombine.low %v729_v16, %v729_v16  ;;  %v3410_v21 = vcombine.high %v729_v16, %v729_v16  ;;  %v4489_v22 = vld [vmem:[%s5566_s1 + $0x2c0] sm:$0xff]   ;;  %v4495_v41 = vld [vmem:[%s5566_s1 + $0x288] sm:$0xff]  }
  0x28   : >> { %4058 = vmatpush3.bf16.msra.mxu0 %v4438_v23  ;;  %v4482_v17 = vld [vmem:[%s5566_s1 + $0x138] sm:$0xff]   ;;  %v589_v23 = vrot.slane %v3360_v19, 1  ;;  %v4491_v33 = vld [vmem:[%s5566_s1 + $0x280] sm:$0xff]   ;;  %v4496_v42 = vld [vmem:[%s5566_s1 + $0x250] sm:$0xff]  }
  0x29   : >> { %4080 = vmatpush3.bf16.msra.mxu1 %v4439_v24  ;;  %4059 = vmatprep.subr.bf16.mxu0 %v4440_v25  ;;  %v777_v24 = vshrl.u32 %v3410_v21, 16  ;;  %v780_v25 = vshll.u32 %v3410_v21, 16  ;;  %v4497_v43 = vld [vmem:[%s5566_s1 + $0x2d0] sm:$0xff]   ;;  %v4500_v46 = vld [vmem:[%s5566_s1 + $0x258] sm:$0xff]   ;;  %v4526_v15 = vld [vmem:[%s5566_s1 + $0x300] sm:$0xff]  }
  0x2a   : >> { %4081 = vmatprep.subr.bf16.mxu1 %v4441_v26  ;;  %v4488_v26 = vld [vmem:[%s5566_s1 + $0x240] sm:$0xff]   ;;  %v4498_v44 = vld [vmem:[%s5566_s1 + $0x210] sm:$0xff]   ;;  %v4503_v49 = vld [vmem:[%s5566_s1 + $0x298] sm:$0xff]  }
  0x2b   : >> { %v4499_v45 = vld [vmem:[%s5566_s1 + $0x290] sm:$0xff]   ;;  %v4527_v19 = vld [vmem:[%s5566_s1 + $0x380] sm:$0xff]  }
  0x2c   : >> { %4060 = vmatpush3.bf16.msra.mxu0 %v4442_v27  ;;  %v588_v27 = vrot.slane %v3359_v18, 1 }
  0x2d   : >> { %4082 = vmatpush3.bf16.msra.mxu1 %v4443_v28  ;;  %4061 = vmatprep.subr.bf16.mxu0 %v4444_v29  ;;  %v769_v28 = vshrl.u32 %v3409_v20, 16  ;;  %v772_v29 = vshll.u32 %v3409_v20, 16 }
  0x2e   : >> { %4083 = vmatprep.subr.bf16.mxu1 %v4445_v30  ;;  %v4490_v30 = vld [vmem:[%s5566_s1 + $0x200] sm:$0xff]  }
  0x2f   : >> { %v771_v34 = vrot.slane %v769_v28, 1  ;;  %v774_v35 = vrot.slane %v772_v29, 2  ;;  %v4536_v28 = vld [vmem:[%s5566_s1 + $0x358] sm:$0xff]   ;;  %v4535_v29 = vld [vmem:[%s5566_s1 + $0x390] sm:$0xff]  }
  0x30   : >> { %4062 = vmatpush3.bf16.msra.mxu0 %v4446_v31  ;;  %v779_v31 = vrot.slane %v777_v24, 1  ;;  %v4532_v24 = vld [vmem:[%s5566_s1 + $0x350] sm:$0xff]  }
  0x31   : >> { %4084 = vmatpush3.bf16.msra.mxu1 %v4447_v32  ;;  %4091 = vmatprep.subr.bf16.mxu0 %v4452_v39  ;;  %v782_v32 = vrot.slane %v780_v25, 2  ;;  %v775_v38 = vor.u32 %v774_v35, %v771_v34  ;;  %v4493_v39 = vld [vmem:[%s5566_s1 + $0x2c8] sm:$0xff]   ;;  %v4542_v34 = vld [vmem:[%s5566_s1 + $0x320] sm:$0xff]  }
  0x32   : >> { %4113 = vmatprep.subr.bf16.mxu1 %v4453_v40  ;;  %v4494_v40 = vld [vmem:[%s5566_s1 + $0x208] sm:$0xff]   ;;  %v4541_v35 = vld [vmem:[%s5566_s1 + $0x3e0] sm:$0xff]  }
  0x33   : >> { %399 = vmatmul.mubr.bf16.vlgmr.msra.gmra.mrb[0].mxu0 %v260_v50  ;;  %v783_v36 = vor.u32 %v782_v32, %v779_v31  ;;  %v4504_v50 = vld [vmem:[%s5566_s1 + $0x260] sm:$0xff]   ;;  %v4531_v25 = vld [vmem:[%s5566_s1 + $0x388] sm:$0xff]   ;;  %v4537_v31 = vld [vmem:[%s5566_s1 + $0x3d8] sm:$0xff]  }
  0x34   : >> { %542 = vmatmul.mubr.bf16.vlgmr.msra.gmra.mrb[0].mxu1 %v3309_v37  ;;  %4092 = vmatpush3.bf16.msra.mxu0 %v4454_v47  ;;  %v4492_v37 = vld [vmem:[%s5566_s1 + $0x248] sm:$0xff]   ;;  %v4501_v47 = vld [vmem:[%s5566_s1 + $0x2d8] sm:$0xff]   ;;  %v4540_v32 = vld [vmem:[%s5566_s1 + $0x360] sm:$0xff]  }
  0x35   : >> { %4114 = vmatpush3.bf16.msra.mxu1 %v4455_v48  ;;  %4093 = vmatprep.subr.bf16.mxu0 %v4456_v52  ;;  %v4502_v48 = vld [vmem:[%s5566_s1 + $0x218] sm:$0xff]   ;;  %v4506_v52 = vld [vmem:[%s5566_s1 + $0x220] sm:$0xff]  }
  0x36   : >> { %4115 = vmatprep.subr.bf16.mxu1 %v4457_v51  ;;  %720 = vmatprep.mubr.bf16.mxu0 %v589_v23  ;;  %v4505_v51 = vld [vmem:[%s5566_s1 + $0x2e0] sm:$0xff]   ;;  %v4529_v23 = vld [vmem:[%s5566_s1 + $0x3c8] sm:$0xff]  }
  0x37   : >> { %914 = vmatprep.mubr.bf16.mxu1 %v783_v36  ;;  %v4544_v36 = vld [vmem:[%s5566_s1 + $0x368] sm:$0xff]  }
  0x38   : >> { %4094 = vmatpush3.bf16.msra.mxu0 %v4458_v54  ;;  %v4508_v54 = vld [vmem:[%s5566_s1 + $0x268] sm:$0xff]  }
  0x39   : >> { %4116 = vmatpush3.bf16.msra.mxu1 %v4459_v53  ;;  %4095 = vmatprep.subr.bf16.mxu0 %v4460_v56  ;;  %v4507_v53 = vld [vmem:[%s5566_s1 + $0x2a0] sm:$0xff]   ;;  %v4510_v56 = vld [vmem:[%s5566_s1 + $0x228] sm:$0xff]  }
  0x3a   : >> { %4117 = vmatprep.subr.bf16.mxu1 %v4461_v55  ;;  %v4509_v55 = vld [vmem:[%s5566_s1 + $0x2e8] sm:$0xff]  }
  0x3c   : >> { %4096 = vmatpush3.bf16.msra.mxu0 %v4462_v58  ;;  %v4512_v58 = vld [vmem:[%s5566_s1 + $0x270] sm:$0xff]  }
  0x3d   : >> { %4118 = vmatpush3.bf16.msra.mxu1 %v4463_v57  ;;  %4097 = vmatprep.subr.bf16.mxu0 %v4464_v60  ;;  %v4511_v57 = vld [vmem:[%s5566_s1 + $0x2a8] sm:$0xff]   ;;  %v4514_v60 = vld [vmem:[%s5566_s1 + $0x230] sm:$0xff]  }
  0x3e   : >> { %4119 = vmatprep.subr.bf16.mxu1 %v4465_v59  ;;  %v4513_v59 = vld [vmem:[%s5566_s1 + $0x2f0] sm:$0xff]  }
  0x40   : >> { %4098 = vmatpush3.bf16.msra.mxu0 %v4466_v62  ;;  %v4516_v62 = vld [vmem:[%s5566_s1 + $0x278] sm:$0xff]  }
  0x41   : >> { %4120 = vmatpush3.bf16.msra.mxu1 %v4467_v61  ;;  %4099 = vmatprep.subr.bf16.mxu0 %v4468_v1  ;;  %v4515_v61 = vld [vmem:[%s5566_s1 + $0x2b0] sm:$0xff]   ;;  %v4518_v1 = vld [vmem:[%s5566_s1 + $0x238] sm:$0xff]  }
  0x42   : >> { %4121 = vmatprep.subr.bf16.mxu1 %v4469_v63  ;;  %v4517_v63 = vld [vmem:[%s5566_s1 + $0x2f8] sm:$0xff]  }
  0x44   : >> { %4100 = vmatpush3.bf16.msra.mxu0 %v4470_v3  ;;  %v3428_v3 = vld [vmem:[%s4860_s14 + $0x8] sm:$0x11] }
  0x45   : >> { %4122 = vmatpush3.bf16.msra.mxu1 %v4471_v2  ;;  %4101 = vmatprep.subr.bf16.mxu0 %v4472_v5  ;;  %v4519_v2 = vld [vmem:[%s5566_s1 + $0x2b8] sm:$0xff]   ;;  %v3462_v5 = vcombine.high %v3428_v3, %v3428_v3 }
  0x46   : >> { %4123 = vmatprep.subr.bf16.mxu1 %v4473_v4  ;;  %v3479_v4 = vld [vmem:[%s4860_s14 + $0x8] sm:$0x33] }
  0x48   : >> { %4102 = vmatpush3.bf16.msra.mxu0 %v4474_v7  ;;  %v4524_v7 = vld [vmem:[%s5566_s1 + $0x340] sm:$0xff]  }
  0x49   : >> { %4124 = vmatpush3.bf16.msra.mxu1 %v4475_v6  ;;  %4103 = vmatprep.subr.bf16.mxu0 %v4476_v9  ;;  %v3512_v6 = vcombine.low %v3479_v4, %v3479_v4  ;;  %v4525_v9 = vld [vmem:[%s5566_s1 + $0x3c0] sm:$0xff]  }
  0x4a   : >> { %4125 = vmatprep.subr.bf16.mxu1 %v4477_v8  ;;  %v3513_v8 = vcombine.high %v3479_v4, %v3479_v4 }
  0x4c   : >> { %4104 = vmatpush3.bf16.msra.mxu0 %v4478_v11  ;;  %v1145_v11 = vshrl.u32 %v3512_v6, 16 }
  0x4d   : >> { %4126 = vmatpush3.bf16.msra.mxu1 %v4479_v10  ;;  %4105 = vmatprep.subr.bf16.mxu0 %v4480_v13  ;;  %v3461_v10 = vcombine.low %v3428_v3, %v3428_v3  ;;  %v1152_v13 = vshrl.u32 %v3513_v8, 16  ;;  %v4563_v3 = vld [vmem:[%s5566_s1 + $0x480] sm:$0xff]  }
  0x4e   : >> { %4127 = vmatprep.subr.bf16.mxu1 %v4481_v12  ;;  %v1147_v12 = vshll.u32 %v3512_v6, 16 }
  0x50   : >> { %4106 = vmatpush3.bf16.msra.mxu0 %v4482_v17  ;;  %v1149_v16 = vrot.slane %v1147_v12, 1  ;;  %v4528_v17 = vld [vmem:[%s5566_s1 + $0x348] sm:$0xff]   ;;  %v4568_v12 = vld [vmem:[%s5566_s1 + $0x450] sm:$0xff]  }
  0x51   : >> { %4128 = vmatpush3.bf16.msra.mxu1 %v4483_v14  ;;  %4135 = vmatprep.subr.bf16.mxu0 %v4488_v26  ;;  %v1154_v14 = vshll.u32 %v3513_v8, 16  ;;  %v4534_v26 = vld [vmem:[%s5566_s1 + $0x310] sm:$0xff]  }
  0x52   : >> { %4157 = vmatprep.subr.bf16.mxu1 %v4489_v22  ;;  %v1150_v20 = vor.u32 %v1149_v16, %v1145_v11  ;;  %v4530_v22 = vld [vmem:[%s5566_s1 + $0x308] sm:$0xff]   ;;  %v4572_v16 = vld [vmem:[%s5566_s1 + $0x458] sm:$0xff]  }
  0x53   : >> { %721 = vmatmul.mubr.bf16.vlgmr.msra.gmra.mrb[4].mxu0 %v588_v27  ;;  %v1156_v18 = vrot.slane %v1154_v14, 1  ;;  %v4533_v27 = vld [vmem:[%s5566_s1 + $0x3d0] sm:$0xff]   ;;  %v4567_v11 = vld [vmem:[%s5566_s1 + $0x488] sm:$0xff]  }
  0x54   : >> { %915 = vmatmul.mubr.bf16.vlgmr.msra.gmra.mrb[4].mxu1 %v775_v38  ;;  %4136 = vmatpush3.bf16.msra.mxu0 %v4490_v30  ;;  %v4538_v30 = vld [vmem:[%s5566_s1 + $0x318] sm:$0xff]   ;;  %v4546_v38 = vld [vmem:[%s5566_s1 + $0x328] sm:$0xff]   ;;  %v4570_v14 = vld [vmem:[%s5566_s1 + $0x410] sm:$0xff]  }
  0x55   : >> { %4158 = vmatpush3.bf16.msra.mxu1 %v4491_v33  ;;  %4137 = vmatprep.subr.bf16.mxu0 %v4492_v37  ;;  %v1157_v21 = vor.u32 %v1156_v18, %v1152_v13  ;;  %v4539_v33 = vld [vmem:[%s5566_s1 + $0x398] sm:$0xff]   ;;  %v4543_v37 = vld [vmem:[%s5566_s1 + $0x3a0] sm:$0xff]   ;;  %v4569_v13 = vld [vmem:[%s5566_s1 + $0x4d0] sm:$0xff]  }
  0x56   : >> { %4159 = vmatprep.subr.bf16.mxu1 %v4493_v39  ;;  %1096 = vmatprep.mubr.bf16.mxu0 %v3462_v5  ;;  %v4545_v39 = vld [vmem:[%s5566_s1 + $0x3e8] sm:$0xff]   ;;  %v4574_v18 = vld [vmem:[%s5566_s1 + $0x418] sm:$0xff]  }
  0x57   : >> { %1288 = vmatprep.mubr.bf16.mxu1 %v1157_v21  ;;  %v4577_v21 = vld [vmem:[%s5566_s1 + $0x4e0] sm:$0xff]  }
  0x58   : >> { %4138 = vmatpush3.bf16.msra.mxu0 %v4494_v40  ;;  %v4548_v40 = vld [vmem:[%s5566_s1 + $0x370] sm:$0xff]  }
  0x59   : >> { %4160 = vmatpush3.bf16.msra.mxu1 %v4495_v41  ;;  %4139 = vmatprep.subr.bf16.mxu0 %v4496_v42  ;;  %v4547_v41 = vld [vmem:[%s5566_s1 + $0x3a8] sm:$0xff]   ;;  %v4550_v42 = vld [vmem:[%s5566_s1 + $0x330] sm:$0xff]  }
  0x5a   : >> { %4161 = vmatprep.subr.bf16.mxu1 %v4497_v43  ;;  %v4549_v43 = vld [vmem:[%s5566_s1 + $0x3f0] sm:$0xff]  }
  0x5c   : >> { %4140 = vmatpush3.bf16.msra.mxu0 %v4498_v44  ;;  %v4552_v44 = vld [vmem:[%s5566_s1 + $0x378] sm:$0xff]  }
  0x5d   : >> { %4162 = vmatpush3.bf16.msra.mxu1 %v4499_v45  ;;  %4141 = vmatprep.subr.bf16.mxu0 %v4500_v46  ;;  %v4551_v45 = vld [vmem:[%s5566_s1 + $0x3b0] sm:$0xff]   ;;  %v4554_v46 = vld [vmem:[%s5566_s1 + $0x338] sm:$0xff]  }
  0x5e   : >> { %4163 = vmatprep.subr.bf16.mxu1 %v4501_v47  ;;  %v4553_v47 = vld [vmem:[%s5566_s1 + $0x3f8] sm:$0xff]  }
  0x60   : >> { %4142 = vmatpush3.bf16.msra.mxu0 %v4502_v48  ;;  %v3530_v48 = vld [vmem:[%s4860_s14 + $0x8] sm:$0x22] }
  0x61   : >> { %4164 = vmatpush3.bf16.msra.mxu1 %v4503_v49  ;;  %4143 = vmatprep.subr.bf16.mxu0 %v4504_v50  ;;  %v3581_v49 = vld [vmem:[%s4860_s14 + $0x8] sm:$0x66]  ;;  %v3563_v50 = vcombine.low %v3530_v48, %v3530_v48 }
  0x62   : >> { %4165 = vmatprep.subr.bf16.mxu1 %v4505_v51  ;;  %v3564_v51 = vcombine.high %v3530_v48, %v3530_v48  ;;  %v4598_v48 = vld [vmem:[%s5566_s1 + $0x500] sm:$0xff]  }
  0x64   : >> { %4144 = vmatpush3.bf16.msra.mxu0 %v4506_v52  ;;  %v3614_v52 = vcombine.low %v3581_v49, %v3581_v49 }
  0x65   : >> { %4166 = vmatpush3.bf16.msra.mxu1 %v4507_v53  ;;  %4145 = vmatprep.subr.bf16.mxu0 %v4508_v54  ;;  %v3615_v53 = vcombine.high %v3581_v49, %v3581_v49  ;;  %v4560_v54 = vld [vmem:[%s5566_s1 + $0x440] sm:$0xff]  }
  0x66   : >> { %4167 = vmatprep.subr.bf16.mxu1 %v4509_v55  ;;  %v4555_v55 = vld [vmem:[%s5566_s1 + $0x3b8] sm:$0xff]  }
  0x68   : >> { %4146 = vmatpush3.bf16.msra.mxu0 %v4510_v56  ;;  %v1336_v56 = vrot.slane %v3563_v50, 1  ;;  %v4600_v50 = vld [vmem:[%s5566_s1 + $0x548] sm:$0xff]  }
  0x69   : >> { %4168 = vmatpush3.bf16.msra.mxu1 %v4511_v57  ;;  %4147 = vmatprep.subr.bf16.mxu0 %v4512_v58  ;;  %v1337_v57 = vrot.slane %v3564_v51, 1  ;;  %v1525_v58 = vshrl.u32 %v3615_v53, 16 }
  0x6a   : >> { %4169 = vmatprep.subr.bf16.mxu1 %v4513_v59  ;;  %v1528_v59 = vshll.u32 %v3615_v53, 16 }
  0x6c   : >> { %4148 = vmatpush3.bf16.msra.mxu0 %v4514_v60  ;;  %v1517_v60 = vshrl.u32 %v3614_v52, 16 }
  0x6d   : >> { %4170 = vmatpush3.bf16.msra.mxu1 %v4515_v61  ;;  %4149 = vmatprep.subr.bf16.mxu0 %v4516_v62  ;;  %v1520_v61 = vshll.u32 %v3614_v52, 16  ;;  %v4561_v62 = vld [vmem:[%s5566_s1 + $0x4c0] sm:$0xff]  }
  0x6e   : >> { %4171 = vmatprep.subr.bf16.mxu1 %v4517_v63  ;;  %v4562_v63 = vld [vmem:[%s5566_s1 + $0x400] sm:$0xff]   ;;  %v1519_v4 = vrot.slane %v1517_v60, 1  ;;  %v4605_v60 = vld [vmem:[%s5566_s1 + $0x5d0] sm:$0xff]  }
  0x6f   : >> { %v1522_v5 = vrot.slane %v1520_v61, 2  ;;  %v4599_v52 = vld [vmem:[%s5566_s1 + $0x580] sm:$0xff]   ;;  %v4608_v61 = vld [vmem:[%s5566_s1 + $0x558] sm:$0xff]  }
  0x70   : >> { %4150 = vmatpush3.bf16.msra.mxu0 %v4518_v1  ;;  %v1527_v1 = vrot.slane %v1525_v58, 1  ;;  %v4603_v58 = vld [vmem:[%s5566_s1 + $0x588] sm:$0xff]  }
  0x71   : >> { %4172 = vmatpush3.bf16.msra.mxu1 %v4519_v2  ;;  %4179 = vmatprep.subr.bf16.mxu0 %v4524_v7  ;;  %v1530_v2 = vrot.slane %v1528_v59, 2  ;;  %v4564_v7 = vld [vmem:[%s5566_s1 + $0x448] sm:$0xff]   ;;  %v1523_v8 = vor.u32 %v1522_v5, %v1519_v4  ;;  %v4606_v59 = vld [vmem:[%s5566_s1 + $0x510] sm:$0xff]   ;;  %v4614_v4 = vld [vmem:[%s5566_s1 + $0x520] sm:$0xff]  }
  0x72   : >> { %4201 = vmatprep.subr.bf16.mxu1 %v4525_v9  ;;  %v4565_v9 = vld [vmem:[%s5566_s1 + $0x4c8] sm:$0xff]   ;;  %v4613_v5 = vld [vmem:[%s5566_s1 + $0x5e0] sm:$0xff]  }
  0x73   : >> { %1097 = vmatmul.mubr.bf16.vlgmr.msra.gmra.mrb[8].mxu0 %v3461_v10  ;;  %v1531_v6 = vor.u32 %v1530_v2, %v1527_v1  ;;  %v4566_v10 = vld [vmem:[%s5566_s1 + $0x408] sm:$0xff]   ;;  %v4609_v1 = vld [vmem:[%s5566_s1 + $0x5d8] sm:$0xff]   ;;  %v4612_v2 = vld [vmem:[%s5566_s1 + $0x560] sm:$0xff]  }
  0x74   : >> { %4180 = vmatpush3.bf16.msra.mxu0 %v4526_v15  ;;  %1289 = vmatmul.mubr.bf16.vlgmr.msra.gmra.mrb[8].mxu1 %v1150_v20  ;;  %v4571_v15 = vld [vmem:[%s5566_s1 + $0x490] sm:$0xff]   ;;  %v4576_v20 = vld [vmem:[%s5566_s1 + $0x460] sm:$0xff]  }
  0x75   : >> { %4181 = vmatprep.subr.bf16.mxu0 %v4528_v17  ;;  %4202 = vmatpush3.bf16.msra.mxu1 %v4527_v19  ;;  %v4573_v17 = vld [vmem:[%s5566_s1 + $0x4d8] sm:$0xff]  }
  0x76   : >> { %4203 = vmatprep.subr.bf16.mxu1 %v4529_v23  ;;  %1468 = vmatprep.mubr.bf16.mxu0 %v1337_v57  ;;  %v4575_v19 = vld [vmem:[%s5566_s1 + $0x498] sm:$0xff]   ;;  %v4579_v23 = vld [vmem:[%s5566_s1 + $0x4a0] sm:$0xff]   ;;  %v4604_v57 = vld [vmem:[%s5566_s1 + $0x550] sm:$0xff]  }
  0x77   : >> { %1662 = vmatprep.mubr.bf16.mxu1 %v1531_v6  ;;  %v4616_v6 = vld [vmem:[%s5566_s1 + $0x568] sm:$0xff]  }
  0x78   : >> { %4182 = vmatpush3.bf16.msra.mxu0 %v4530_v22  ;;  %v4578_v22 = vld [vmem:[%s5566_s1 + $0x420] sm:$0xff]  }
  0x79   : >> { %4183 = vmatprep.subr.bf16.mxu0 %v4532_v24  ;;  %4204 = vmatpush3.bf16.msra.mxu1 %v4531_v25  ;;  %v4580_v24 = vld [vmem:[%s5566_s1 + $0x468] sm:$0xff]  }
  0x7a   : >> { %4205 = vmatprep.subr.bf16.mxu1 %v4533_v27  ;;  %v4581_v25 = vld [vmem:[%s5566_s1 + $0x4e8] sm:$0xff]  }
  0x7b   : >> { %v4583_v27 = vld [vmem:[%s5566_s1 + $0x4a8] sm:$0xff]  }
  0x7c   : >> { %4184 = vmatpush3.bf16.msra.mxu0 %v4534_v26  ;;  %v4582_v26 = vld [vmem:[%s5566_s1 + $0x428] sm:$0xff]  }
  0x7d   : >> { %4185 = vmatprep.subr.bf16.mxu0 %v4536_v28  ;;  %4206 = vmatpush3.bf16.msra.mxu1 %v4535_v29  ;;  %v4584_v28 = vld [vmem:[%s5566_s1 + $0x470] sm:$0xff]  }
  0x7e   : >> { %4207 = vmatprep.subr.bf16.mxu1 %v4537_v31  ;;  %v4585_v29 = vld [vmem:[%s5566_s1 + $0x4f0] sm:$0xff]  }
  0x7f   : >> { %v4587_v31 = vld [vmem:[%s5566_s1 + $0x4b0] sm:$0xff]  }
  0x80   : >> { %4186 = vmatpush3.bf16.msra.mxu0 %v4538_v30  ;;  %v4586_v30 = vld [vmem:[%s5566_s1 + $0x430] sm:$0xff]  }
  0x81   : >> { %4187 = vmatprep.subr.bf16.mxu0 %v4540_v32  ;;  %4208 = vmatpush3.bf16.msra.mxu1 %v4539_v33  ;;  %v4588_v32 = vld [vmem:[%s5566_s1 + $0x478] sm:$0xff]  }
  0x82   : >> { %4209 = vmatprep.subr.bf16.mxu1 %v4541_v35  ;;  %v4589_v33 = vld [vmem:[%s5566_s1 + $0x4f8] sm:$0xff]  }
  0x83   : >> { %v4591_v35 = vld [vmem:[%s5566_s1 + $0x4b8] sm:$0xff]  }
  0x84   : >> { %4188 = vmatpush3.bf16.msra.mxu0 %v4542_v34  ;;  %v4590_v34 = vld [vmem:[%s5566_s1 + $0x438] sm:$0xff]  }
  0x85   : >> { %4189 = vmatprep.subr.bf16.mxu0 %v4544_v36  ;;  %4210 = vmatpush3.bf16.msra.mxu1 %v4543_v37  ;;  %v3633_v36 = vld [vmem:[%s4860_s14 + $0x10] sm:$0x11] }
  0x86   : >> { %4211 = vmatprep.subr.bf16.mxu1 %v4545_v39  ;;  %v3684_v37 = vld [vmem:[%s4860_s14 + $0x10] sm:$0x33]  ;;  %v3667_v39 = vcombine.high %v3633_v36, %v3633_v36 }
  0x88   : >> { %4190 = vmatpush3.bf16.msra.mxu0 %v4546_v38  ;;  %v3666_v38 = vcombine.low %v3633_v36, %v3633_v36  ;;  %v4635_v36 = vld [vmem:[%s5566_s1 + $0x680] sm:$0xff]  }
  0x89   : >> { %4191 = vmatprep.subr.bf16.mxu0 %v4548_v40  ;;  %4212 = vmatpush3.bf16.msra.mxu1 %v4547_v41  ;;  %v3717_v40 = vcombine.low %v3684_v37, %v3684_v37  ;;  %v4596_v41 = vld [vmem:[%s5566_s1 + $0x540] sm:$0xff]  }
  0x8a   : >> { %4213 = vmatprep.subr.bf16.mxu1 %v4549_v43  ;;  %v4597_v43 = vld [vmem:[%s5566_s1 + $0x5c0] sm:$0xff]  }
  0x8c   : >> { %4192 = vmatpush3.bf16.msra.mxu0 %v4550_v42  ;;  %v3718_v42 = vcombine.high %v3684_v37, %v3684_v37 }
  0x8d   : >> { %4193 = vmatprep.subr.bf16.mxu0 %v4552_v44  ;;  %4214 = vmatpush3.bf16.msra.mxu1 %v4551_v45  ;;  %v1893_v44 = vshrl.u32 %v3717_v40, 16  ;;  %v1895_v45 = vshll.u32 %v3717_v40, 16  ;;  %v4636_v40 = vld [vmem:[%s5566_s1 + $0x648] sm:$0xff]  }
  0x8e   : >> { %4215 = vmatprep.subr.bf16.mxu1 %v4553_v47  ;;  %v1902_v47 = vshll.u32 %v3718_v42, 16 }
  0x8f   : >> { %v1897_v49 = vrot.slane %v1895_v45, 1  ;;  %v4640_v45 = vld [vmem:[%s5566_s1 + $0x650] sm:$0xff]  }
  0x90   : >> { %4194 = vmatpush3.bf16.msra.mxu0 %v4554_v46  ;;  %v1900_v46 = vshrl.u32 %v3718_v42, 16  ;;  %v1904_v51 = vrot.slane %v1902_v47, 1  ;;  %v4637_v42 = vld [vmem:[%s5566_s1 + $0x6c8] sm:$0xff]   ;;  %v4642_v47 = vld [vmem:[%s5566_s1 + $0x610] sm:$0xff]  }
  0x91   : >> { %4223 = vmatprep.subr.bf16.mxu0 %v4560_v54  ;;  %4216 = vmatpush3.bf16.msra.mxu1 %v4555_v55  ;;  %v1898_v53 = vor.u32 %v1897_v49, %v1893_v44  ;;  %v4602_v55 = vld [vmem:[%s5566_s1 + $0x508] sm:$0xff]   ;;  %v4644_v49 = vld [vmem:[%s5566_s1 + $0x658] sm:$0xff]  }
  0x92   : >> { %4245 = vmatprep.subr.bf16.mxu1 %v4561_v62  ;;  %v1905_v54 = vor.u32 %v1904_v51, %v1900_v46  ;;  %v4607_v62 = vld [vmem:[%s5566_s1 + $0x590] sm:$0xff]   ;;  %v4639_v44 = vld [vmem:[%s5566_s1 + $0x688] sm:$0xff]   ;;  %v4646_v51 = vld [vmem:[%s5566_s1 + $0x618] sm:$0xff]  }
  0x93   : >> { %1469 = vmatmul.mubr.bf16.vlgmr.msra.gmra.mrb[12].mxu0 %v1336_v56  ;;  %v4601_v56 = vld [vmem:[%s5566_s1 + $0x5c8] sm:$0xff]   ;;  %v4641_v46 = vld [vmem:[%s5566_s1 + $0x6d0] sm:$0xff]  }
  0x94   : >> { %4224 = vmatpush3.bf16.msra.mxu0 %v4562_v63  ;;  %1663 = vmatmul.mubr.bf16.vlgmr.msra.gmra.mrb[12].mxu1 %v1523_v8  ;;  %v4610_v63 = vld [vmem:[%s5566_s1 + $0x518] sm:$0xff]   ;;  %v4618_v8 = vld [vmem:[%s5566_s1 + $0x528] sm:$0xff]  }
  0x95   : >> { %4225 = vmatprep.subr.bf16.mxu0 %v4564_v7  ;;  %4246 = vmatpush3.bf16.msra.mxu1 %v4563_v3  ;;  %v4611_v3 = vld [vmem:[%s5566_s1 + $0x598] sm:$0xff]   ;;  %v4615_v7 = vld [vmem:[%s5566_s1 + $0x5a0] sm:$0xff]  }
  0x96   : >> { %4247 = vmatprep.subr.bf16.mxu1 %v4565_v9  ;;  %1844 = vmatprep.mubr.bf16.mxu0 %v3667_v39  ;;  %v4617_v9 = vld [vmem:[%s5566_s1 + $0x5e8] sm:$0xff]  }
  0x97   : >> { %2036 = vmatprep.mubr.bf16.mxu1 %v1905_v54  ;;  %v4649_v54 = vld [vmem:[%s5566_s1 + $0x6e0] sm:$0xff]  }
  0x98   : >> { %4226 = vmatpush3.bf16.msra.mxu0 %v4566_v10  ;;  %v4620_v10 = vld [vmem:[%s5566_s1 + $0x570] sm:$0xff]  }
  0x99   : >> { %4227 = vmatprep.subr.bf16.mxu0 %v4568_v12  ;;  %4248 = vmatpush3.bf16.msra.mxu1 %v4567_v11  ;;  %v4619_v11 = vld [vmem:[%s5566_s1 + $0x5a8] sm:$0xff]   ;;  %v4622_v12 = vld [vmem:[%s5566_s1 + $0x530] sm:$0xff]  }
  0x9a   : >> { %4249 = vmatprep.subr.bf16.mxu1 %v4569_v13  ;;  %v4621_v13 = vld [vmem:[%s5566_s1 + $0x5f0] sm:$0xff]  }
  0x9c   : >> { %4228 = vmatpush3.bf16.msra.mxu0 %v4570_v14  ;;  %v4624_v14 = vld [vmem:[%s5566_s1 + $0x578] sm:$0xff]  }
  0x9d   : >> { %4229 = vmatprep.subr.bf16.mxu0 %v4572_v16  ;;  %4250 = vmatpush3.bf16.msra.mxu1 %v4571_v15  ;;  %v4623_v15 = vld [vmem:[%s5566_s1 + $0x5b0] sm:$0xff]   ;;  %v4626_v16 = vld [vmem:[%s5566_s1 + $0x538] sm:$0xff]  }
  0x9e   : >> { %4251 = vmatprep.subr.bf16.mxu1 %v4573_v17  ;;  %v4625_v17 = vld [vmem:[%s5566_s1 + $0x5f8] sm:$0xff]  }
  0xa0   : >> { %4230 = vmatpush3.bf16.msra.mxu0 %v4574_v18  ;;  %v3735_v18 = vld [vmem:[%s4860_s14 + $0x10] sm:$0x22] }
  0xa1   : >> { %4231 = vmatprep.subr.bf16.mxu0 %v4576_v20  ;;  %4252 = vmatpush3.bf16.msra.mxu1 %v4575_v19  ;;  %v3786_v19 = vld [vmem:[%s4860_s14 + $0x10] sm:$0x66]  ;;  %v3768_v20 = vcombine.low %v3735_v18, %v3735_v18 }
  0xa2   : >> { %4253 = vmatprep.subr.bf16.mxu1 %v4577_v21  ;;  %v3769_v21 = vcombine.high %v3735_v18, %v3735_v18  ;;  %v4670_v18 = vld [vmem:[%s5566_s1 + $0x700] sm:$0xff]  }
  0xa4   : >> { %4232 = vmatpush3.bf16.msra.mxu0 %v4578_v22  ;;  %v3819_v22 = vcombine.low %v3786_v19, %v3786_v19 }
  0xa5   : >> { %4233 = vmatprep.subr.bf16.mxu0 %v4580_v24  ;;  %4254 = vmatpush3.bf16.msra.mxu1 %v4579_v23  ;;  %v3820_v23 = vcombine.high %v3786_v19, %v3786_v19  ;;  %v4632_v24 = vld [vmem:[%s5566_s1 + $0x640] sm:$0xff]  }
  0xa6   : >> { %4255 = vmatprep.subr.bf16.mxu1 %v4581_v25  ;;  %v4627_v25 = vld [vmem:[%s5566_s1 + $0x5b8] sm:$0xff]  }
  0xa8   : >> { %4234 = vmatpush3.bf16.msra.mxu0 %v4582_v26  ;;  %v2084_v26 = vrot.slane %v3768_v20, 1  ;;  %v4672_v20 = vld [vmem:[%s5566_s1 + $0x748] sm:$0xff]  }
  0xa9   : >> { %4235 = vmatprep.subr.bf16.mxu0 %v4584_v28  ;;  %4256 = vmatpush3.bf16.msra.mxu1 %v4583_v27  ;;  %v2085_v27 = vrot.slane %v3769_v21, 1  ;;  %v2273_v28 = vshrl.u32 %v3820_v23, 16 }
  0xaa   : >> { %4257 = vmatprep.subr.bf16.mxu1 %v4585_v29  ;;  %v2276_v29 = vshll.u32 %v3820_v23, 16 }
  0xac   : >> { %4236 = vmatpush3.bf16.msra.mxu0 %v4586_v30  ;;  %v2265_v30 = vshrl.u32 %v3819_v22, 16 }
  0xad   : >> { %4237 = vmatprep.subr.bf16.mxu0 %v4588_v32  ;;  %4258 = vmatpush3.bf16.msra.mxu1 %v4587_v31  ;;  %v2268_v31 = vshll.u32 %v3819_v22, 16  ;;  %v4633_v32 = vld [vmem:[%s5566_s1 + $0x6c0] sm:$0xff]  }
  0xae   : >> { %4259 = vmatprep.subr.bf16.mxu1 %v4589_v33  ;;  %v4634_v33 = vld [vmem:[%s5566_s1 + $0x600] sm:$0xff]   ;;  %v2267_v37 = vrot.slane %v2265_v30, 1  ;;  %v4677_v30 = vld [vmem:[%s5566_s1 + $0x7d0] sm:$0xff]  }
  0xaf   : >> { %v4671_v22 = vld [vmem:[%s5566_s1 + $0x780] sm:$0xff]  }
  0xb0   : >> { %4238 = vmatpush3.bf16.msra.mxu0 %v4590_v34  ;;  %v2275_v34 = vrot.slane %v2273_v28, 1  ;;  %v4675_v28 = vld [vmem:[%s5566_s1 + $0x788] sm:$0xff]  }
  0xb1   : >> { %4267 = vmatprep.subr.bf16.mxu0 %v4596_v41  ;;  %4260 = vmatpush3.bf16.msra.mxu1 %v4591_v35  ;;  %v2278_v35 = vrot.slane %v2276_v29, 2  ;;  %v4678_v29 = vld [vmem:[%s5566_s1 + $0x710] sm:$0xff]  }
  0xb2   : >> { %4289 = vmatprep.subr.bf16.mxu1 %v4597_v43  ;;  %v4638_v43 = vld [vmem:[%s5566_s1 + $0x608] sm:$0xff]  }
  0xb3   : >> { %1845 = vmatmul.mubr.bf16.vlgmr.msra.gmra.mrb[16].mxu0 %v3666_v38  ;;  %v2270_v38 = vrot.slane %v2268_v31, 2  ;;  %v2279_v39 = vor.u32 %v2278_v35, %v2275_v34  ;;  %v4680_v31 = vld [vmem:[%s5566_s1 + $0x758] sm:$0xff]  }
  0xb4   : >> { %4268 = vmatpush3.bf16.msra.mxu0 %v4598_v48  ;;  %2037 = vmatmul.mubr.bf16.vlgmr.msra.gmra.mrb[16].mxu1 %v1898_v53  ;;  %v4643_v48 = vld [vmem:[%s5566_s1 + $0x690] sm:$0xff]   ;;  %v4648_v53 = vld [vmem:[%s5566_s1 + $0x660] sm:$0xff]   ;;  %v4682_v35 = vld [vmem:[%s5566_s1 + $0x718] sm:$0xff]  }
  0xb5   : >> { %4269 = vmatprep.subr.bf16.mxu0 %v4600_v50  ;;  %4290 = vmatpush3.bf16.msra.mxu1 %v4599_v52  ;;  %v2271_v41 = vor.u32 %v2270_v38, %v2267_v37  ;;  %v4645_v50 = vld [vmem:[%s5566_s1 + $0x6d8] sm:$0xff]  }
  0xb6   : >> { %4291 = vmatprep.subr.bf16.mxu1 %v4601_v56  ;;  %2216 = vmatprep.mubr.bf16.mxu0 %v2085_v27  ;;  %v4647_v52 = vld [vmem:[%s5566_s1 + $0x698] sm:$0xff]   ;;  %v4651_v56 = vld [vmem:[%s5566_s1 + $0x6a0] sm:$0xff]   ;;  %v4676_v27 = vld [vmem:[%s5566_s1 + $0x750] sm:$0xff]  }
  0xb7   : >> { %2410 = vmatprep.mubr.bf16.mxu1 %v2279_v39  ;;  %v4681_v38 = vld [vmem:[%s5566_s1 + $0x7d8] sm:$0xff]  }
  0xb8   : >> { %4270 = vmatpush3.bf16.msra.mxu0 %v4602_v55  ;;  %v4650_v55 = vld [vmem:[%s5566_s1 + $0x620] sm:$0xff]  }
  0xb9   : >> { %4271 = vmatprep.subr.bf16.mxu0 %v4604_v57  ;;  %4292 = vmatpush3.bf16.msra.mxu1 %v4603_v58  ;;  %v4652_v57 = vld [vmem:[%s5566_s1 + $0x668] sm:$0xff]  }
  0xba   : >> { %4293 = vmatprep.subr.bf16.mxu1 %v4605_v60  ;;  %v4653_v58 = vld [vmem:[%s5566_s1 + $0x6e8] sm:$0xff]  }
  0xbb   : >> { %v4655_v60 = vld [vmem:[%s5566_s1 + $0x6a8] sm:$0xff]  }
  0xbc   : >> { %4272 = vmatpush3.bf16.msra.mxu0 %v4606_v59  ;;  %v4654_v59 = vld [vmem:[%s5566_s1 + $0x628] sm:$0xff]  }
  0xbd   : >> { %4273 = vmatprep.subr.bf16.mxu0 %v4608_v61  ;;  %4294 = vmatpush3.bf16.msra.mxu1 %v4607_v62  ;;  %v4656_v61 = vld [vmem:[%s5566_s1 + $0x670] sm:$0xff]  }
  0xbe   : >> { %4295 = vmatprep.subr.bf16.mxu1 %v4609_v1  ;;  %v4657_v62 = vld [vmem:[%s5566_s1 + $0x6f0] sm:$0xff]  }
  0xbf   : >> { %v4659_v1 = vld [vmem:[%s5566_s1 + $0x6b0] sm:$0xff]  }
  0xc0   : >> { %4274 = vmatpush3.bf16.msra.mxu0 %v4610_v63  ;;  %v4658_v63 = vld [vmem:[%s5566_s1 + $0x630] sm:$0xff]  }
  0xc1   : >> { %4275 = vmatprep.subr.bf16.mxu0 %v4612_v2  ;;  %4296 = vmatpush3.bf16.msra.mxu1 %v4611_v3  ;;  %v4660_v2 = vld [vmem:[%s5566_s1 + $0x678] sm:$0xff]  }
  0xc2   : >> { %4297 = vmatprep.subr.bf16.mxu1 %v4613_v5  ;;  %v4661_v3 = vld [vmem:[%s5566_s1 + $0x6f8] sm:$0xff]  }
  0xc3   : >> { %v4663_v5 = vld [vmem:[%s5566_s1 + $0x6b8] sm:$0xff]  }
  0xc4   : >> { %4276 = vmatpush3.bf16.msra.mxu0 %v4614_v4  ;;  %v4662_v4 = vld [vmem:[%s5566_s1 + $0x638] sm:$0xff]  }
  0xc5   : >> { %4277 = vmatprep.subr.bf16.mxu0 %v4616_v6  ;;  %4298 = vmatpush3.bf16.msra.mxu1 %v4615_v7  ;;  %v3838_v6 = vld [vmem:[%s4860_s14 + $0x18] sm:$0x11] }
  0xc6   : >> { %4299 = vmatprep.subr.bf16.mxu1 %v4617_v9  ;;  %v3889_v7 = vld [vmem:[%s4860_s14 + $0x18] sm:$0x33]  ;;  %v3872_v9 = vcombine.high %v3838_v6, %v3838_v6 }
  0xc8   : >> { %4278 = vmatpush3.bf16.msra.mxu0 %v4618_v8  ;;  %v3871_v8 = vcombine.low %v3838_v6, %v3838_v6 }
  0xc9   : >> { %4279 = vmatprep.subr.bf16.mxu0 %v4620_v10  ;;  %4300 = vmatpush3.bf16.msra.mxu1 %v4619_v11  ;;  %v3922_v10 = vcombine.low %v3889_v7, %v3889_v7  ;;  %v4668_v11 = vld [vmem:[%s5566_s1 + $0x740] sm:$0xff]  }
  0xca   : >> { %4301 = vmatprep.subr.bf16.mxu1 %v4621_v13  ;;  %v4669_v13 = vld [vmem:[%s5566_s1 + $0x7c0] sm:$0xff]  }
  0xcc   : >> { %4280 = vmatpush3.bf16.msra.mxu0 %v4622_v12  ;;  %v3923_v12 = vcombine.high %v3889_v7, %v3889_v7 }
  0xcd   : >> { %4281 = vmatprep.subr.bf16.mxu0 %v4624_v14  ;;  %4302 = vmatpush3.bf16.msra.mxu1 %v4623_v15  ;;  %v2641_v14 = vshrl.u32 %v3922_v10, 16  ;;  %v2643_v15 = vshll.u32 %v3922_v10, 16 }
  0xce   : >> { %4303 = vmatprep.subr.bf16.mxu1 %v4625_v17  ;;  %v2650_v17 = vshll.u32 %v3923_v12, 16 }
  0xcf   : >> { %v2645_v19 = vrot.slane %v2643_v15, 1 }
  0xd0   : >> { %4282 = vmatpush3.bf16.msra.mxu0 %v4626_v16  ;;  %v2648_v16 = vshrl.u32 %v3923_v12, 16  ;;  %v2652_v21 = vrot.slane %v2650_v17, 1 }
  0xd1   : >> { %4311 = vmatprep.subr.bf16.mxu0 %v4632_v24  ;;  %4304 = vmatpush3.bf16.msra.mxu1 %v4627_v25  ;;  %v2646_v23 = vor.u32 %v2645_v19, %v2641_v14  ;;  %v4674_v25 = vld [vmem:[%s5566_s1 + $0x708] sm:$0xff]  }
  0xd2   : >> { %4333 = vmatprep.subr.bf16.mxu1 %v4633_v32  ;;  %v2653_v24 = vor.u32 %v2652_v21, %v2648_v16 }
  0xd3   : >> { %2217 = vmatmul.mubr.bf16.vlgmr.msra.gmra.mrb[20].mxu0 %v2084_v26  ;;  %v4673_v26 = vld [vmem:[%s5566_s1 + $0x7c8] sm:$0xff]  }
  0xd4   : >> { %4312 = vmatpush3.bf16.msra.mxu0 %v4634_v33  ;;  %2411 = vmatmul.mubr.bf16.vlgmr.msra.gmra.mrb[20].mxu1 %v2271_v41  ;;  %v4679_v33 = vld [vmem:[%s5566_s1 + $0x790] sm:$0xff]   ;;  %v4683_v41 = vld [vmem:[%s5566_s1 + $0x798] sm:$0xff]  }
  0xd5   : >> { %4313 = vmatprep.subr.bf16.mxu0 %v4636_v40  ;;  %4334 = vmatpush3.bf16.msra.mxu1 %v4635_v36  ;;  %v4684_v40 = vld [vmem:[%s5566_s1 + $0x760] sm:$0xff]  }
  0xd6   : >> { %4335 = vmatprep.subr.bf16.mxu1 %v4637_v42  ;;  %2592 = vmatprep.mubr.bf16.mxu0 %v3872_v9  ;;  %v4686_v42 = vld [vmem:[%s5566_s1 + $0x720] sm:$0xff]  }
  0xd7   : >> { %2784 = vmatprep.mubr.bf16.mxu1 %v2653_v24 }
  0xd8   : >> { %4314 = vmatpush3.bf16.msra.mxu0 %v4638_v43 }
  0xd9   : >> { %4315 = vmatprep.subr.bf16.mxu0 %v4640_v45  ;;  %4336 = vmatpush3.bf16.msra.mxu1 %v4639_v44  ;;  %v4685_v44 = vld [vmem:[%s5566_s1 + $0x7e0] sm:$0xff]  }
  0xda   : >> { %4337 = vmatprep.subr.bf16.mxu1 %v4641_v46 }
  0xdc   : >> { %4316 = vmatpush3.bf16.msra.mxu0 %v4642_v47  ;;  %v4688_v47 = vld [vmem:[%s5566_s1 + $0x768] sm:$0xff]  }
  0xdd   : >> { %4317 = vmatprep.subr.bf16.mxu0 %v4644_v49  ;;  %4338 = vmatpush3.bf16.msra.mxu1 %v4643_v48  ;;  %v4687_v49 = vld [vmem:[%s5566_s1 + $0x7a0] sm:$0xff]  }
  0xde   : >> { %4339 = vmatprep.subr.bf16.mxu1 %v4645_v50 }
  0xe0   : >> { %4318 = vmatpush3.bf16.msra.mxu0 %v4646_v51 }
  0xe1   : >> { %4319 = vmatprep.subr.bf16.mxu0 %v4648_v53  ;;  %4340 = vmatpush3.bf16.msra.mxu1 %v4647_v52  ;;  %v4690_v52 = vld [vmem:[%s5566_s1 + $0x728] sm:$0xff]  }
  0xe2   : >> { %4341 = vmatprep.subr.bf16.mxu1 %v4649_v54  ;;  %v4689_v53 = vld [vmem:[%s5566_s1 + $0x7e8] sm:$0xff]   ;;  %v4692_v54 = vld [vmem:[%s5566_s1 + $0x770] sm:$0xff]  }
  0xe4   : >> { %4320 = vmatpush3.bf16.msra.mxu0 %v4650_v55  ;;  %v4691_v55 = vld [vmem:[%s5566_s1 + $0x7a8] sm:$0xff]  }
  0xe5   : >> { %4321 = vmatprep.subr.bf16.mxu0 %v4652_v57  ;;  %4342 = vmatpush3.bf16.msra.mxu1 %v4651_v56  ;;  %v4694_v56 = vld [vmem:[%s5566_s1 + $0x730] sm:$0xff]  }
  0xe6   : >> { %4343 = vmatprep.subr.bf16.mxu1 %v4653_v58  ;;  %v4693_v57 = vld [vmem:[%s5566_s1 + $0x7f0] sm:$0xff]   ;;  %v4696_v58 = vld [vmem:[%s5566_s1 + $0x778] sm:$0xff]  }
  0xe8   : >> { %4322 = vmatpush3.bf16.msra.mxu0 %v4654_v59  ;;  %v4695_v59 = vld [vmem:[%s5566_s1 + $0x7b0] sm:$0xff]  }
  0xe9   : >> { %4323 = vmatprep.subr.bf16.mxu0 %v4656_v61  ;;  %4344 = vmatpush3.bf16.msra.mxu1 %v4655_v60  ;;  %v4698_v60 = vld [vmem:[%s5566_s1 + $0x738] sm:$0xff]  }
  0xea   : >> { %4345 = vmatprep.subr.bf16.mxu1 %v4657_v62  ;;  %v4697_v61 = vld [vmem:[%s5566_s1 + $0x7f8] sm:$0xff]  }
  0xeb   : >> { %v3940_v62 = vld [vmem:[%s4860_s14 + $0x18] sm:$0x22] }
  0xec   : >> { %4324 = vmatpush3.bf16.msra.mxu0 %v4658_v63  ;;  %v3991_v63 = vld [vmem:[%s4860_s14 + $0x18] sm:$0x66]  ;;  %s3257_s14 = sshll.u32 %s4718_s24, 1  ;;  %s178_s24 = sadd.s32 1, %s4718_s24  }
  0xed   : >> { %4325 = vmatprep.subr.bf16.mxu0 %v4660_v2  ;;  %4346 = vmatpush3.bf16.msra.mxu1 %v4659_v1  ;;  %v3973_v1 = vcombine.low %v3940_v62, %v3940_v62  ;;  %v3974_v2 = vcombine.high %v3940_v62, %v3940_v62  ;;  %s3174_s30 = scalar_lea.vmem %s4756_s20, %s3257_s14  ;;  %p175_p4 = scmp.ge.s32.totalorder %s178_s24, 2  }
  0xee   : >> { %4347 = vmatprep.subr.bf16.mxu1 %v4661_v3  ;;  %v4024_v3 = vcombine.low %v3991_v63, %v3991_v63 }
  0xef   : >> { %v2832_v6 = vrot.slane %v3973_v1, 1  ;;  %v2833_v7 = vrot.slane %v3974_v2, 1 }
  0xf0   : >> { %4326 = vmatpush3.bf16.msra.mxu0 %v4662_v4  ;;  %v4025_v4 = vcombine.high %v3991_v63, %v3991_v63  ;;  %v3013_v10 = vshrl.u32 %v4024_v3, 16 }
  0xf1   : >> { %4355 = vmatprep.subr.bf16.mxu0 %v4668_v11  ;;  %4348 = vmatpush3.bf16.msra.mxu1 %v4663_v5  ;;  %v4699_v5 = vld [vmem:[%s5566_s1 + $0x7b8] sm:$0xff]   ;;  %v3016_v11 = vshll.u32 %v4024_v3, 16 }
  0xf2   : >> { %4377 = vmatprep.subr.bf16.mxu1 %v4669_v13  ;;  %v3024_v9 = vshll.u32 %v4025_v4, 16  ;;  %v3015_v14 = vrot.slane %v3013_v10, 1 }
  0xf3   : >> { %2593 = vmatmul.mubr.bf16.vlgmr.msra.gmra.mrb[24].mxu0 %v3871_v8  ;;  %v3021_v8 = vshrl.u32 %v4025_v4, 16  ;;  %v3018_v15 = vrot.slane %v3016_v11, 2 }
  0xf4   : >> { %4356 = vmatpush3.bf16.msra.mxu0 %v4670_v18  ;;  %2785 = vmatmul.mubr.bf16.vlgmr.msra.gmra.mrb[24].mxu1 %v2646_v23  ;;  %v3026_v13 = vrot.slane %v3024_v9, 2 }
  0xf5   : >> { %4357 = vmatprep.subr.bf16.mxu0 %v4672_v20  ;;  %4378 = vmatpush3.bf16.msra.mxu1 %v4671_v22  ;;  %v3023_v12 = vrot.slane %v3021_v8, 1  ;;  %v3019_v17 = vor.u32 %v3018_v15, %v3015_v14 }
  0xf6   : >> { %4379 = vmatprep.subr.bf16.mxu1 %v4673_v26  ;;  %2964 = vmatprep.mubr.bf16.mxu0 %v2833_v7 }
  0xf7   : >> { %v3027_v16 = vor.u32 %v3026_v13, %v3023_v12 }
  0xf8   : >> { %4358 = vmatpush3.bf16.msra.mxu0 %v4674_v25 }
  0xf9   : >> { %4359 = vmatprep.subr.bf16.mxu0 %v4676_v27  ;;  %4380 = vmatpush3.bf16.msra.mxu1 %v4675_v28 }
  0xfa   : >> { %4381 = vmatprep.subr.bf16.mxu1 %v4677_v30  ;;  %3158 = vmatprep.mubr.bf16.mxu1 %v3027_v16 }
  0xfc   : >> { %4360 = vmatpush3.bf16.msra.mxu0 %v4678_v29 }
  0xfd   : >> { %4361 = vmatprep.subr.bf16.mxu0 %v4680_v31  ;;  %4382 = vmatpush3.bf16.msra.mxu1 %v4679_v33 }
  0xfe   : >> { %4383 = vmatprep.subr.bf16.mxu1 %v4681_v38 }
 0x100   : >> { %4362 = vmatpush3.bf16.msra.mxu0 %v4682_v35 }
 0x101   : >> { %4363 = vmatprep.subr.bf16.mxu0 %v4684_v40  ;;  %4384 = vmatpush3.bf16.msra.mxu1 %v4683_v41 }
 0x102   : >> { %4385 = vmatprep.subr.bf16.mxu1 %v4685_v44 }
 0x104   : >> { %4364 = vmatpush3.bf16.msra.mxu0 %v4686_v42 }
 0x105   : >> { %4365 = vmatprep.subr.bf16.mxu0 %v4688_v47  ;;  %4386 = vmatpush3.bf16.msra.mxu1 %v4687_v49 }
 0x106   : >> { %v4063_v43 = vpop.f32.mrb[0].mxu0  ;;  %4387 = vmatprep.subr.bf16.mxu1 %v4689_v53 }
 0x107   : >> { %v4085_v32 = vpop.f32.mrb[0].mxu1  ;;  %v4064_v45 = vpop.f32.mrb[1].mxu0 }
 0x108   : >> { %v4086_v34 = vpop.f32.mrb[1].mxu1  ;;  %v4065_v46 = vadd.f32 %v4064_v45, %v4063_v43  ;;  %v4066_v48 = vpop.f32.mrb[2].mxu0  ;;  %4366 = vmatpush3.bf16.msra.mxu0 %v4690_v52 }
 0x109   : >> { %v4087_v36 = vadd.f32 %v4086_v34, %v4085_v32  ;;  %v4088_v37 = vpop.f32.mrb[2].mxu1  ;;  %v4067_v50 = vpop.f32.mrb[3].mxu0  ;;  %4367 = vmatprep.subr.bf16.mxu0 %v4692_v54  ;;  %4388 = vmatpush3.bf16.msra.mxu1 %v4691_v55 }
 0x10a   : >> { %v4089_v39 = vpop.f32.mrb[3].mxu1  ;;  %4389 = vmatprep.subr.bf16.mxu1 %v4693_v57 }
 0x10b   : >> { %v544_v51 = vadd.f32 %v4087_v36, %v4065_v46 }
 0x10c   : >> { %4368 = vmatpush3.bf16.msra.mxu0 %v4694_v56 }
 0x10d   : >> { %4369 = vmatprep.subr.bf16.mxu0 %v4696_v58  ;;  %4390 = vmatpush3.bf16.msra.mxu1 %v4695_v59 }
 0x10e   : >> { %4391 = vmatprep.subr.bf16.mxu1 %v4697_v61 }
 0x110   : >> { %4370 = vmatpush3.bf16.msra.mxu0 %v4698_v60 }
 0x111   : >> { %4392 = vmatpush3.bf16.msra.mxu1 %v4699_v5 }
 0x113   : >> { %2965 = vmatmul.mubr.bf16.vlgmr.msra.gmra.mrb[28].mxu0 %v2832_v6 }
 0x114   : >> { %3159 = vmatmul.mubr.bf16.vlgmr.msra.gmra.mrb[28].mxu1 %v3019_v17 }
 0x126   : >> { %v4107_v18 = vpop.f32.mrb[4].mxu0 }
 0x127   : >> { %v4129_v19 = vpop.f32.mrb[4].mxu1  ;;  %v4108_v20 = vpop.f32.mrb[5].mxu0 }
 0x128   : >> { %v4109_v21 = vadd.f32 %v4108_v20, %v4107_v18  ;;  %v4130_v22 = vpop.f32.mrb[5].mxu1  ;;  %v4110_v23 = vpop.f32.mrb[6].mxu0 }
 0x129   : >> { %v4131_v24 = vadd.f32 %v4130_v22, %v4129_v19  ;;  %v4132_v25 = vpop.f32.mrb[6].mxu1  ;;  %v4111_v26 = vpop.f32.mrb[7].mxu0 }
 0x12a   : >> { %v728_v27 = vadd.f32 %v4109_v21, %v544_v51  ;;  %v4133_v28 = vpop.f32.mrb[7].mxu1 }
 0x12c   : >> { %v922_v29 = vadd.f32 %v4131_v24, %v728_v27 }
 0x146   : >> { %v4151_v30 = vpop.f32.mrb[8].mxu0 }
 0x147   : >> { %v4152_v31 = vpop.f32.mrb[9].mxu0  ;;  %v4173_v35 = vpop.f32.mrb[8].mxu1 }
 0x148   : >> { %v4153_v32 = vadd.f32 %v4152_v31, %v4151_v30  ;;  %v4154_v33 = vpop.f32.mrb[10].mxu0  ;;  %v4174_v37 = vpop.f32.mrb[9].mxu1 }
 0x149   : >> { %v4155_v34 = vpop.f32.mrb[11].mxu0  ;;  %v4175_v38 = vadd.f32 %v4174_v37, %v4173_v35  ;;  %v4176_v39 = vpop.f32.mrb[10].mxu1 }
 0x14a   : >> { %v1104_v36 = vadd.f32 %v4153_v32, %v922_v29  ;;  %v4177_v40 = vpop.f32.mrb[11].mxu1 }
 0x14c   : >> { %v1296_v41 = vadd.f32 %v4175_v38, %v1104_v36 }
 0x166   : >> { %v4195_v42 = vpop.f32.mrb[12].mxu0 }
 0x167   : >> { %v4196_v43 = vpop.f32.mrb[13].mxu0  ;;  %v4217_v47 = vpop.f32.mrb[12].mxu1 }
 0x168   : >> { %v4197_v44 = vadd.f32 %v4196_v43, %v4195_v42  ;;  %v4198_v45 = vpop.f32.mrb[14].mxu0  ;;  %v4218_v49 = vpop.f32.mrb[13].mxu1 }
 0x169   : >> { %v4199_v46 = vpop.f32.mrb[15].mxu0  ;;  %v4219_v50 = vadd.f32 %v4218_v49, %v4217_v47  ;;  %v4220_v51 = vpop.f32.mrb[14].mxu1 }
 0x16a   : >> { %v1476_v48 = vadd.f32 %v4197_v44, %v1296_v41  ;;  %v4221_v52 = vpop.f32.mrb[15].mxu1 }
 0x16c   : >> { %v1670_v53 = vadd.f32 %v4219_v50, %v1476_v48 }
 0x186   : >> { %v4239_v54 = vpop.f32.mrb[16].mxu0 }
 0x187   : >> { %v4240_v55 = vpop.f32.mrb[17].mxu0  ;;  %v4261_v60 = vpop.f32.mrb[16].mxu1 }
 0x188   : >> { %v4241_v56 = vadd.f32 %v4240_v55, %v4239_v54  ;;  %v4242_v57 = vpop.f32.mrb[18].mxu0  ;;  %v4262_v61 = vpop.f32.mrb[17].mxu1 }
 0x189   : >> { %v4243_v58 = vpop.f32.mrb[19].mxu0  ;;  %v4263_v62 = vadd.f32 %v4262_v61, %v4261_v60  ;;  %v4264_v63 = vpop.f32.mrb[18].mxu1 }
 0x18a   : >> { %v1852_v59 = vadd.f32 %v4241_v56, %v1670_v53  ;;  %v4265_v1 = vpop.f32.mrb[19].mxu1 }
 0x18c   : >> { %v2044_v2 = vadd.f32 %v4263_v62, %v1852_v59 }
 0x1a6   : >> { %v4283_v3 = vpop.f32.mrb[20].mxu0 }
 0x1a7   : >> { %v4284_v4 = vpop.f32.mrb[21].mxu0  ;;  %v4305_v8 = vpop.f32.mrb[20].mxu1 }
 0x1a8   : >> { %v4285_v5 = vadd.f32 %v4284_v4, %v4283_v3  ;;  %v4286_v6 = vpop.f32.mrb[22].mxu0  ;;  %v4306_v10 = vpop.f32.mrb[21].mxu1 }
 0x1a9   : >> { %v4287_v7 = vpop.f32.mrb[23].mxu0  ;;  %v4307_v11 = vadd.f32 %v4306_v10, %v4305_v8  ;;  %v4308_v12 = vpop.f32.mrb[22].mxu1 }
 0x1aa   : >> { %v2224_v9 = vadd.f32 %v4285_v5, %v2044_v2  ;;  %v4309_v13 = vpop.f32.mrb[23].mxu1 }
 0x1ac   : >> { %v2418_v14 = vadd.f32 %v4307_v11, %v2224_v9 }
 0x1c6   : >> { %v4327_v15 = vpop.f32.mrb[24].mxu0 }
 0x1c7   : >> { %v4328_v16 = vpop.f32.mrb[25].mxu0  ;;  %v4349_v21 = vpop.f32.mrb[24].mxu1 }
 0x1c8   : >> { %v4329_v17 = vadd.f32 %v4328_v16, %v4327_v15  ;;  %v4330_v18 = vpop.f32.mrb[26].mxu0  ;;  %v4350_v22 = vpop.f32.mrb[25].mxu1 }
 0x1c9   : >> { %v4331_v19 = vpop.f32.mrb[27].mxu0  ;;  %v4351_v23 = vadd.f32 %v4350_v22, %v4349_v21  ;;  %v4352_v24 = vpop.f32.mrb[26].mxu1 }
 0x1ca   : >> { %v2600_v20 = vadd.f32 %v4329_v17, %v2418_v14  ;;  %v4353_v25 = vpop.f32.mrb[27].mxu1 }
 0x1cc   : >> { %v2792_v26 = vadd.f32 %v4351_v23, %v2600_v20 }
 0x1e6   : >> { %v4371_v27 = vpop.f32.mrb[28].mxu0 }
 0x1e7   : >> { %v4372_v28 = vpop.f32.mrb[29].mxu0  ;;  %v4393_v32 = vpop.f32.mrb[28].mxu1 }
 0x1e8   : >> { %v4373_v29 = vadd.f32 %v4372_v28, %v4371_v27  ;;  %v4374_v30 = vpop.f32.mrb[30].mxu0  ;;  %v4394_v34 = vpop.f32.mrb[29].mxu1 }
 0x1e9   : >> { %v4375_v31 = vpop.f32.mrb[31].mxu0  ;;  %v4395_v35 = vadd.f32 %v4394_v34, %v4393_v32  ;;  %v4396_v36 = vpop.f32.mrb[30].mxu1 }
 0x1ea   : >> { %v2972_v33 = vadd.f32 %v4373_v29, %v2792_v26  ;;  %v4397_v37 = vpop.f32.mrb[31].mxu1  ;;  %177 = sbr.rel (!%p175_p4) target bundleno = 17 (0x11), region = 89 }
 0x1ec   : >> { %v3166_v38 = vadd.f32 %v4395_v35, %v2972_v33 }
 0x1ee   : >> { %v3173_v39 = vadd.f32 %v4751_v0, %v3166_v38 }
 0x1f0   : >> { %3175 = vst [vmem:[%s3174_s30] sm:$0x3] %v3173_v39 }
 0x1f1 PF: > { %s13_s12 = sadd.s32 1, %s4714_s12  }
 0x1f2   : > { %p10_p5 = scmp.ge.s32.totalorder %s13_s12, 4  }
 0x1f4   :  { %12 = sbr.rel (!%p10_p5) target bundleno = 1 (0x1), region = 100 }

</bundles_post_ra>
